<compile_context>
chip_gen: v7x
topology: tpu7x:2x2x1
jax: 0.10.0
libtpu: 0.0.40
codegen_flags: <defaults>
</compile_context>

<pallas_src>
import functools
import math

import jax
import jax.numpy as jnp
from jax import lax
from jax.experimental import pallas as pl
from jax.experimental.pallas import tpu as pltpu

_NEG = float(jnp.finfo(jnp.float32).min)   # max-pool sentinel (never leaves the max)
_SLOPE = 0.1                               # GraphEmbedder.forward passes negative_slope=0.1


def _lrelu(v):
    return jnp.where(v >= 0, v, _SLOPE * v)


def _vpu_linear(x, w, b):
    # [G,In] @ [In,Out] + [1,Out] via VPU broadcast-mul + sublane reduce (no MXU push/pop).
    return jnp.sum(x[:, :, None] * w[None, :, :], axis=1) + b


def _fused_graph_embedder_kernel(
        num_graphs, pooling_ratio,
        # per-task data (one grid step == one graph-batch / MAML task)
        x_ref, a_ref, bcol_ref, brow_ref,
        # layer 1  (SAGEConv + SAGPooling params)
        wl1_ref, wr1_ref, bc1_ref, wrel1_ref, wroot1_ref, bp1_ref,
        # layer 2
        wl2_ref, wr2_ref, bc2_ref, wrel2_ref, wroot2_ref, bp2_ref,
        # layer 3
        wl3_ref, wr3_ref, bc3_ref, wrel3_ref, wroot3_ref, bp3_ref,
        # MLP head
        w1_ref, b1_ref, w2_ref, b2_ref, w3_ref, b3_ref,
        # outputs
        logits_ref, emb_ref, score_ref):
    f32, bf16 = jnp.float32, jnp.bfloat16
    n = x_ref.shape[0]
    g = num_graphs

    a = a_ref[...]                          # [N,N] bf16 (0/1 exact), filtered in place
    h = x_ref[...]                          # [N,Fin] f32 node features
    bcol = bcol_ref[...]                    # [N,1] int32 graph id
    brow = brow_ref[...]                    # [1,N] int32 graph id

    idx_col = lax.broadcasted_iota(jnp.int32, (n, 1), 0)
    idx_row = lax.broadcasted_iota(jnp.int32, (1, n), 1)
    oh_ng = (bcol == lax.broadcasted_iota(jnp.int32, (n, g), 1)).astype(f32)   # [N,G]
    oh_gn = (lax.broadcasted_iota(jnp.int32, (g, n), 0) == brow).astype(f32)   # [G,N]

    sel_col = jnp.ones((n, 1), f32)         # nodes still selected (kept in place)
    sel_row = jnp.ones((1, n), f32)

    layers = ((wl1_ref, wr1_ref, bc1_ref, wrel1_ref, wroot1_ref, bp1_ref),
              (wl2_ref, wr2_ref, bc2_ref, wrel2_ref, wroot2_ref, bp2_ref),
              (wl3_ref, wr3_ref, bc3_ref, wrel3_ref, wroot3_ref, bp3_ref))

    readouts = []
    for wl_ref, wr_ref, bc_ref, wrel_ref, wroot_ref, bp_ref in layers:
        # --- SAGEConv (mean aggr) + leaky_relu(0.1) ---
        # mean-normalisation uses an EUP reciprocal of the [N,1] degree column and
        # is applied to the [N,H] matmul result, never to the [N,N] adjacency.
        h_bf = h.astype(bf16)
        deg = jnp.sum(a, axis=1, keepdims=True, dtype=f32)                   # [N,1]
        inv_deg = pl.reciprocal(jnp.maximum(deg, 1.0))                       # [N,1]
        agg = jnp.dot(a, h_bf, preferred_element_type=f32) * inv_deg         # [N,Fin]
        # two accumulating MXU pushes (agg@Wl + x@Wr) instead of a lane-axis concat
        h = _lrelu(jnp.dot(agg.astype(bf16), wl_ref[...], preferred_element_type=f32)
                   + jnp.dot(h_bf, wr_ref[...], preferred_element_type=f32)
                   + bc_ref[...])                                            # [N,H]

        # --- SAGPooling score GNN (PyG GraphConv, add aggr); H->1 projection on the VPU ---
        h_bf = h.astype(bf16)
        agg2 = jnp.dot(a, h_bf, preferred_element_type=f32)                  # [N,H]
        score = (jnp.sum(agg2 * wrel_ref[...] + h * wroot_ref[...],
                         axis=1, keepdims=True) + bp_ref[...])               # [N,1]

        # --- in-kernel top-k node selection per graph (rank by score) ---
        # TODO(synk): on exact score ties the lower node index wins, which
        # approximates (may differ from) PyG's sort-based topk ordering.
        score_row = jnp.transpose(score)                                     # [1,N] (XLU)
        higher = (score_row > score) | ((score_row == score) & (idx_row < idx_col))
        valid = higher & (bcol == brow) & (sel_col > 0.5) & (sel_row > 0.5)  # [N,N] bool
        rank = jnp.sum(valid.astype(f32), axis=1, keepdims=True)             # [N,1]
        counts = jnp.sum(oh_ng * sel_col, axis=0, keepdims=True)             # [1,G]
        k = jnp.ceil(pooling_ratio * counts)                                 # [1,G]
        k_node = jnp.sum(oh_ng * k, axis=1, keepdims=True)                   # [N,1]
        sel_col = sel_col * (rank < k_node).astype(f32)
        sel_row = jnp.transpose(sel_col)                                     # [1,N] (XLU)

        # --- SAGPooling multiplier + filter_adj (nodes stay in place) ---
        h = h * jnp.tanh(score) * sel_col
        a = a * sel_col.astype(bf16) * sel_row.astype(bf16)

        # --- readout [global_max_pool | global_mean_pool] -> [G,2H]; fused masked reductions ---
        sel_gn = oh_gn * sel_row                                             # [G,N]
        cnt = jnp.sum(sel_gn, axis=1, keepdims=True)                         # [G,1]
        m3 = sel_gn[:, :, None] > 0.5                                        # [G,N,1]
        hb = h[None, :, :]                                                   # [1,N,H]
        gmp = jnp.max(jnp.where(m3, hb, _NEG), axis=1)                       # [G,H]
        gmp = jnp.where(cnt > 0.0, gmp, 0.0)                                 # empty-graph guard
        gap = (jnp.sum(jnp.where(m3, hb, 0.0), axis=1)
               * pl.reciprocal(jnp.maximum(cnt, 1.0)))                       # [G,H]
        readouts.append(jnp.concatenate([gmp, gap], axis=1))                 # [G,2H]

    # --- NodeInformationScore: mean_i sum_h |((I - D^-1/2 A D^-1/2) h)_i| over kept nodes ---
    deg_r = jnp.sum(a, axis=1, keepdims=True, dtype=f32)                     # [N,1]
    deg_c = jnp.sum(a, axis=0, keepdims=True, dtype=f32)                     # [1,N]
    dis_r = jnp.where(deg_r > 0, lax.rsqrt(jnp.maximum(deg_r, 1.0)), 0.0)
    dis_c = jnp.where(deg_c > 0, lax.rsqrt(jnp.maximum(deg_c, 1.0)), 0.0)
    h_src = (h * jnp.transpose(dis_c)).astype(bf16)                          # col-scale on [N,H]
    prop = dis_r * jnp.dot(a, h_src, preferred_element_type=f32)             # [N,H]
    per_node = jnp.sum(jnp.abs(h - prop), axis=1, keepdims=True) * sel_col   # [N,1]
    total = jnp.sum(per_node, axis=0, keepdims=True)                         # [1,1]
    nsel = jnp.maximum(jnp.sum(sel_col, axis=0, keepdims=True), 1.0)         # [1,1]
    score_ref[...] = total / nsel

    # --- head: graph_emb = sum_l lrelu(x_l); 3-layer MLP kept on the VPU (M=G is tiny) ---
    x1, x2, x3 = readouts
    emb = _lrelu(x1) + _lrelu(x2) + _lrelu(x3)                               # [G,2H]
    emb_ref[...] = emb
    inv_nrm = lax.rsqrt(jnp.maximum(jnp.sum(emb * emb, axis=-1, keepdims=True), 1e-24))
    xn = emb * inv_nrm                                                       # F.normalize(p=2)
    t = _lrelu(_vpu_linear(xn, w1_ref[...], b1_ref[...]))
    t = _lrelu(_vpu_linear(t, w2_ref[...], b2_ref[...]))
    logits_ref[...] = _vpu_linear(t, w3_ref[...], b3_ref[...])


# ------------------------------ JAX wrapper ----------------------------------

def graph_embedder_forward(params, x, adj, batch, *, num_graphs, pooling_ratio):
    """x: [B,N,F] (or [N,F]), adj: [B,N,N], batch: [B,N] int graph ids."""
    single = (x.ndim == 2)
    if single:
        x, adj, batch = x[None], adj[None], batch[None]
    b, n, feat = x.shape
    hidden = params["conv1"]["wl"].shape[1]
    half = params["lin2"]["w"].shape[1]
    num_classes = params["lin3"]["w"].shape[1]
    g = int(num_graphs)

    bcol = batch.astype(jnp.int32).reshape(b, n, 1)
    brow = batch.astype(jnp.int32).reshape(b, 1, n)
    adj_bf = adj.astype(jnp.bfloat16)   # 0/1 adjacency is exact in bf16; halves DMA + VMEM

    def task_spec(shape):   # per-task tensors: tiled over the batch grid, leading dim squeezed
        nd = len(shape)
        return pl.BlockSpec((None,) + shape, lambda i, _nd=nd: (i,) + (0,) * _nd)

    def shared_spec(shape):  # weights: constant index_map -> one block, resident across steps
        nd = len(shape)
        return pl.BlockSpec(shape, lambda i, _nd=nd: (0,) * _nd)

    args = [x, adj_bf, bcol, brow]
    in_specs = [task_spec((n, feat)), task_spec((n, n)),
                task_spec((n, 1)), task_spec((1, n))]

    def add(arr):
        args.append(arr)
        in_specs.append(shared_spec(arr.shape))

    for i in (1, 2, 3):
        cp, pp = params[f"conv{i}"], params[f"pool{i}"]
        add(cp["wl"].astype(jnp.bfloat16))       # [Fin,H]  MXU operand -> bf16
        add(cp["wr"].astype(jnp.bfloat16))       # [Fin,H]  MXU operand -> bf16
        add(cp["b"])                              # [1,H]    f32
        add(pp["wrel"].reshape(1, -1))            # [1,H]    VPU path, f32
        add(pp["wroot"].reshape(1, -1))           # [1,H]    VPU path, f32
        add(pp["b"])                              # [1,1]
    for name in ("lin1", "lin2", "lin3"):
        add(params[name]["w"])                    # VPU head path, f32
        add(params[name]["b"])

    out_shape = (jax.ShapeDtypeStruct((b, g, num_classes), jnp.float32),
                 jax.ShapeDtypeStruct((b, g, 2 * hidden), jnp.float32),
                 jax.ShapeDtypeStruct((b, 1, 1), jnp.float32))
    out_specs = (task_spec((g, num_classes)),
                 task_spec((g, 2 * hidden)),
                 task_spec((1, 1)))

    # Explicit scoped-VMEM budget: double-buffered per-task tiles + resident weights + workspace.
    task_bytes = n * n * 2 + n * feat * 4 + 2 * n * 4
    weight_bytes = sum(int(a.size) * a.dtype.itemsize for a in args[4:])
    work_bytes = 6 * n * n * 4 + 24 * n * hidden * 4
    vmem_limit = int(min(64 * 1024 * 1024,
                         max(32 * 1024 * 1024,
                             2 * task_bytes + weight_bytes + work_bytes)))

    flops_layer = (2 * n * n * max(feat, hidden)      # neighbor aggregation
                   + 4 * n * max(feat, hidden) * hidden  # two conv matmuls
                   + 2 * n * n * hidden)              # score-GNN aggregation
    cost = pl.CostEstimate(
        flops=int(b * (3 * flops_layer + 2 * n * n * hidden + 12 * n * hidden
                       + 2 * g * (2 * hidden * hidden + hidden * half + half * num_classes))),
        transcendentals=int(b * (6 * n + 2 * g)),
        bytes_accessed=int(sum(int(a.size) * a.dtype.itemsize for a in args)
                           + b * (g * num_classes + g * 2 * hidden + 1) * 4))

    kernel = functools.partial(_fused_graph_embedder_kernel, g, float(pooling_ratio))
    logits, graph_emb, score = pl.pallas_call(
        kernel,
        grid=(b,),
        out_shape=out_shape,
        in_specs=in_specs,
        out_specs=out_specs,
        compiler_params=pltpu.CompilerParams(
            dimension_semantics=("parallel",),   # shard tasks across TCs on v7x
            vmem_limit_bytes=vmem_limit),
        cost_estimate=cost,
    )(*args)

    score_mean = score[:, 0, 0]
    if single:
        return logits[0], score_mean[0], graph_emb[0]
    return logits, score_mean, graph_emb


def init_params(key, feature_dim, hidden_dim, num_classes):
    ks = iter(jax.random.split(key, 32))

    def w(fan_in, fan_out):
        return jax.random.normal(next(ks), (fan_in, fan_out), jnp.float32) / math.sqrt(fan_in)

    def b(fan_out):
        return jax.random.normal(next(ks), (1, fan_out), jnp.float32) * 0.01

    p = {}
    dims = [(feature_dim, hidden_dim), (hidden_dim, hidden_dim), (hidden_dim, hidden_dim)]
    for i, (fi, fo) in enumerate(dims, start=1):
        p[f"conv{i}"] = {"wl": w(fi, fo), "wr": w(fi, fo), "b": b(fo)}
        p[f"pool{i}"] = {"wrel": w(hidden_dim, 1), "wroot": w(hidden_dim, 1), "b": b(1)}
    p["lin1"] = {"w": w(2 * hidden_dim, hidden_dim), "b": b(hidden_dim)}
    p["lin2"] = {"w": w(hidden_dim, hidden_dim // 2), "b": b(hidden_dim // 2)}
    p["lin3"] = {"w": w(hidden_dim // 2, num_classes), "b": b(num_classes)}
    return p


if __name__ == "__main__":
    key = jax.random.PRNGKey(0)
    k_param, k_x = jax.random.split(key)

    feature_dim, hidden_dim, num_classes = 16, 32, 4
    pooling_ratio = 0.5
    # dropout_ratio is a ctor arg of GraphEmbedder but unused in its forward().
    num_tasks = 3            # grid dimension: independent graph-batches (MAML tasks)
    num_graphs = 2
    nodes_per_graph = 16
    n = num_graphs * nodes_per_graph

    params = init_params(k_param, feature_dim, hidden_dim, num_classes)
    x = jax.random.normal(k_x, (num_tasks, n, feature_dim), jnp.float32)
    batch = jnp.broadcast_to(
        jnp.repeat(jnp.arange(num_graphs, dtype=jnp.int32), nodes_per_graph)[None],
        (num_tasks, n))

    # Two disjoint graphs per task: ring + chord(+3) edges, symmetric, no self loops.
    src_l, dst_l = [], []
    for gg in range(num_graphs):
        off = gg * nodes_per_graph
        for i in range(nodes_per_graph):
            for d in (1, 3):
                j = (i + d) % nodes_per_graph
                src_l += [off + i, off + j]
                dst_l += [off + j, off + i]
    src = jnp.asarray(src_l, jnp.int32)
    dst = jnp.asarray(dst_l, jnp.int32)
    adj1 = jnp.zeros((n, n), jnp.float32).at[dst, src].set(1.0)  # A[i,j]=1 for edge j->i
    adj = jnp.broadcast_to(adj1[None], (num_tasks, n, n))

    fwd = jax.jit(functools.partial(graph_embedder_forward,
                                    num_graphs=num_graphs,
                                    pooling_ratio=pooling_ratio))
    logits, score_mean, graph_emb = fwd(params, x, adj, batch)
    jax.block_until_ready((logits, score_mean, graph_emb))

    assert logits.shape == (num_tasks, num_graphs, num_classes)
    assert graph_emb.shape == (num_tasks, num_graphs, 2 * hidden_dim)
    assert score_mean.shape == (num_tasks,)
    print("KERNEL_OK")
</pallas_src>

<mosaic_0001>
module attributes {stable_mosaic.version = 11 : i64} {
  func.func @_fused_graph_embedder_kernel(%arg0: i32, %arg1: memref<1x32x16xf32, #tpu.memory_space<vmem>>, %arg2: memref<1x32x32xbf16, #tpu.memory_space<vmem>>, %arg3: memref<1x32x1xi32, #tpu.memory_space<vmem>>, %arg4: memref<1x1x32xi32, #tpu.memory_space<vmem>>, %arg5: memref<16x32xbf16, #tpu.memory_space<vmem>>, %arg6: memref<16x32xbf16, #tpu.memory_space<vmem>>, %arg7: memref<1x32xf32, #tpu.memory_space<vmem>>, %arg8: memref<1x32xf32, #tpu.memory_space<vmem>>, %arg9: memref<1x32xf32, #tpu.memory_space<vmem>>, %arg10: memref<1x1xf32, #tpu.memory_space<vmem>>, %arg11: memref<32x32xbf16, #tpu.memory_space<vmem>>, %arg12: memref<32x32xbf16, #tpu.memory_space<vmem>>, %arg13: memref<1x32xf32, #tpu.memory_space<vmem>>, %arg14: memref<1x32xf32, #tpu.memory_space<vmem>>, %arg15: memref<1x32xf32, #tpu.memory_space<vmem>>, %arg16: memref<1x1xf32, #tpu.memory_space<vmem>>, %arg17: memref<32x32xbf16, #tpu.memory_space<vmem>>, %arg18: memref<32x32xbf16, #tpu.memory_space<vmem>>, %arg19: memref<1x32xf32, #tpu.memory_space<vmem>>, %arg20: memref<1x32xf32, #tpu.memory_space<vmem>>, %arg21: memref<1x32xf32, #tpu.memory_space<vmem>>, %arg22: memref<1x1xf32, #tpu.memory_space<vmem>>, %arg23: memref<64x32xf32, #tpu.memory_space<vmem>>, %arg24: memref<1x32xf32, #tpu.memory_space<vmem>>, %arg25: memref<32x16xf32, #tpu.memory_space<vmem>>, %arg26: memref<1x16xf32, #tpu.memory_space<vmem>>, %arg27: memref<16x4xf32, #tpu.memory_space<vmem>>, %arg28: memref<1x4xf32, #tpu.memory_space<vmem>>, %arg29: memref<1x2x4xf32, #tpu.memory_space<vmem>>, %arg30: memref<1x2x64xf32, #tpu.memory_space<vmem>>, %arg31: memref<1x1x1xf32, #tpu.memory_space<vmem>>) attributes {dimension_semantics = [#tpu.dimension_semantics<parallel>], iteration_bounds = array<i64: 3>, scalar_prefetch = 0 : i64, scratch_operands = 0 : i64, tpu.core_type = #tpu.core_type<tc>, window_params = [{transform_indices = @transform_0, window_bounds = array<i64: 1, 32, 16>}, {transform_indices = @transform_1, window_bounds = array<i64: 1, 32, 32>}, {transform_indices = @transform_2, window_bounds = array<i64: 1, 32, 1>}, {transform_indices = @transform_3, window_bounds = array<i64: 1, 1, 32>}, {pipeline_mode = #tpu.pipeline_mode<synchronous>, transform_indices = @transform_4, window_bounds = array<i64: 16, 32>}, {pipeline_mode = #tpu.pipeline_mode<synchronous>, transform_indices = @transform_5, window_bounds = array<i64: 16, 32>}, {pipeline_mode = #tpu.pipeline_mode<synchronous>, transform_indices = @transform_6, window_bounds = array<i64: 1, 32>}, {pipeline_mode = #tpu.pipeline_mode<synchronous>, transform_indices = @transform_7, window_bounds = array<i64: 1, 32>}, {pipeline_mode = #tpu.pipeline_mode<synchronous>, transform_indices = @transform_8, window_bounds = array<i64: 1, 32>}, {pipeline_mode = #tpu.pipeline_mode<synchronous>, transform_indices = @transform_9, window_bounds = array<i64: 1, 1>}, {pipeline_mode = #tpu.pipeline_mode<synchronous>, transform_indices = @transform_10, window_bounds = array<i64: 32, 32>}, {pipeline_mode = #tpu.pipeline_mode<synchronous>, transform_indices = @transform_11, window_bounds = array<i64: 32, 32>}, {pipeline_mode = #tpu.pipeline_mode<synchronous>, transform_indices = @transform_12, window_bounds = array<i64: 1, 32>}, {pipeline_mode = #tpu.pipeline_mode<synchronous>, transform_indices = @transform_13, window_bounds = array<i64: 1, 32>}, {pipeline_mode = #tpu.pipeline_mode<synchronous>, transform_indices = @transform_14, window_bounds = array<i64: 1, 32>}, {pipeline_mode = #tpu.pipeline_mode<synchronous>, transform_indices = @transform_15, window_bounds = array<i64: 1, 1>}, {pipeline_mode = #tpu.pipeline_mode<synchronous>, transform_indices = @transform_16, window_bounds = array<i64: 32, 32>}, {pipeline_mode = #tpu.pipeline_mode<synchronous>, transform_indices = @transform_17, window_bounds = array<i64: 32, 32>}, {pipeline_mode = #tpu.pipeline_mode<synchronous>, transform_indices = @transform_18, window_bounds = array<i64: 1, 32>}, {pipeline_mode = #tpu.pipeline_mode<synchronous>, transform_indices = @transform_19, window_bounds = array<i64: 1, 32>}, {pipeline_mode = #tpu.pipeline_mode<synchronous>, transform_indices = @transform_20, window_bounds = array<i64: 1, 32>}, {pipeline_mode = #tpu.pipeline_mode<synchronous>, transform_indices = @transform_21, window_bounds = array<i64: 1, 1>}, {pipeline_mode = #tpu.pipeline_mode<synchronous>, transform_indices = @transform_22, window_bounds = array<i64: 64, 32>}, {pipeline_mode = #tpu.pipeline_mode<synchronous>, transform_indices = @transform_23, window_bounds = array<i64: 1, 32>}, {pipeline_mode = #tpu.pipeline_mode<synchronous>, transform_indices = @transform_24, window_bounds = array<i64: 32, 16>}, {pipeline_mode = #tpu.pipeline_mode<synchronous>, transform_indices = @transform_25, window_bounds = array<i64: 1, 16>}, {pipeline_mode = #tpu.pipeline_mode<synchronous>, transform_indices = @transform_26, window_bounds = array<i64: 16, 4>}, {pipeline_mode = #tpu.pipeline_mode<synchronous>, transform_indices = @transform_27, window_bounds = array<i64: 1, 4>}, {transform_indices = @transform_28, window_bounds = array<i64: 1, 2, 4>}, {transform_indices = @transform_29, window_bounds = array<i64: 1, 2, 64>}, {transform_indices = @transform_30, window_bounds = array<i64: 1, 1, 1>}]} {
    %c0 = arith.constant 0 : index
    %c0_0 = arith.constant 0 : index
    %c0_1 = arith.constant 0 : index
    %0 = vector.load %arg2[%c0, %c0_0, %c0_1] : memref<1x32x32xbf16, #tpu.memory_space<vmem>>, vector<1x32x32xbf16>
    %1 = vector.shape_cast %0 : vector<1x32x32xbf16> to vector<32x32xbf16>
    %c0_2 = arith.constant 0 : index
    %c0_3 = arith.constant 0 : index
    %c0_4 = arith.constant 0 : index
    %2 = vector.load %arg1[%c0_2, %c0_3, %c0_4] : memref<1x32x16xf32, #tpu.memory_space<vmem>>, vector<1x32x16xf32>
    %3 = vector.shape_cast %2 : vector<1x32x16xf32> to vector<32x16xf32>
    %c0_5 = arith.constant 0 : index
    %c0_6 = arith.constant 0 : index
    %c0_7 = arith.constant 0 : index
    %4 = vector.load %arg3[%c0_5, %c0_6, %c0_7] : memref<1x32x1xi32, #tpu.memory_space<vmem>>, vector<1x32x1xi32>
    %5 = vector.shape_cast %4 : vector<1x32x1xi32> to vector<32x1xi32>
    %c0_8 = arith.constant 0 : index
    %c0_9 = arith.constant 0 : index
    %c0_10 = arith.constant 0 : index
    %6 = vector.load %arg4[%c0_8, %c0_9, %c0_10] : memref<1x1x32xi32, #tpu.memory_space<vmem>>, vector<1x1x32xi32>
    %7 = vector.shape_cast %6 : vector<1x1x32xi32> to vector<1x32xi32>
    %8 = tpu.iota {dimensions = array<i32: 0>} : vector<32x1xi32>
    %9 = tpu.iota {dimensions = array<i32: 1>} : vector<1x32xi32>
    %10 = tpu.iota {dimensions = array<i32: 1>} : vector<32x2xi32>
    %11 = vector.broadcast %5 : vector<32x1xi32> to vector<32x2xi32>
    %12 = arith.cmpi eq, %11, %10 : vector<32x2xi32>
    %13 = arith.extui %12 : vector<32x2xi1> to vector<32x2xi32>
    %14 = arith.sitofp %13 : vector<32x2xi32> to vector<32x2xf32>
    %15 = tpu.iota {dimensions = array<i32: 0>} : vector<2x32xi32>
    %16 = vector.broadcast %7 : vector<1x32xi32> to vector<2x32xi32>
    %17 = arith.cmpi eq, %15, %16 : vector<2x32xi32>
    %18 = arith.extui %17 : vector<2x32xi1> to vector<2x32xi32>
    %19 = arith.sitofp %18 : vector<2x32xi32> to vector<2x32xf32>
    %cst = arith.constant 1.000000e+00 : f32
    %20 = vector.broadcast %cst : f32 to vector<32x1xf32>
    %cst_11 = arith.constant 1.000000e+00 : f32
    %21 = vector.broadcast %cst_11 : f32 to vector<1x32xf32>
    %22 = arith.truncf %3 : vector<32x16xf32> to vector<32x16xbf16>
    %23 = arith.extf %1 : vector<32x32xbf16> to vector<32x32xf32>
    %cst_12 = arith.constant dense<0.000000e+00> : vector<32xf32>
    %24 = vector.multi_reduction <add>, %23, %cst_12 [1] : vector<32x32xf32> to vector<32xf32>
    %25 = vector.shape_cast %24 : vector<32xf32> to vector<32x1xf32>
    %cst_13 = arith.constant 1.000000e+00 : f32
    %26 = vector.broadcast %cst_13 : f32 to vector<32x1xf32>
    %27 = arith.maximumf %25, %26 : vector<32x1xf32>
    %28 = tpu.reciprocal %27 : vector<32x1xf32> -> vector<32x1xf32>
    %cst_14 = arith.constant dense<0.000000e+00> : vector<32x16xf32>
    %29 = tpu.matmul %1, %22, %cst_14 {dimension_numbers = #tpu.dot_dimension_numbers<[1], [0], [0], [1], [0, 0, 1, 1], [], []>} : vector<32x32xbf16>, vector<32x16xbf16>, vector<32x16xf32> -> vector<32x16xf32>
    %30 = vector.broadcast %28 : vector<32x1xf32> to vector<32x16xf32>
    %31 = arith.mulf %29, %30 : vector<32x16xf32>
    %32 = arith.truncf %31 : vector<32x16xf32> to vector<32x16xbf16>
    %c0_15 = arith.constant 0 : index
    %c0_16 = arith.constant 0 : index
    %33 = vector.load %arg5[%c0_15, %c0_16] : memref<16x32xbf16, #tpu.memory_space<vmem>>, vector<16x32xbf16>
    %cst_17 = arith.constant dense<0.000000e+00> : vector<32x32xf32>
    %34 = tpu.matmul %32, %33, %cst_17 {dimension_numbers = #tpu.dot_dimension_numbers<[1], [0], [0], [1], [0, 0, 1, 1], [], []>} : vector<32x16xbf16>, vector<16x32xbf16>, vector<32x32xf32> -> vector<32x32xf32>
    %c0_18 = arith.constant 0 : index
    %c0_19 = arith.constant 0 : index
    %35 = vector.load %arg6[%c0_18, %c0_19] : memref<16x32xbf16, #tpu.memory_space<vmem>>, vector<16x32xbf16>
    %cst_20 = arith.constant dense<0.000000e+00> : vector<32x32xf32>
    %36 = tpu.matmul %22, %35, %cst_20 {dimension_numbers = #tpu.dot_dimension_numbers<[1], [0], [0], [1], [0, 0, 1, 1], [], []>} : vector<32x16xbf16>, vector<16x32xbf16>, vector<32x32xf32> -> vector<32x32xf32>
    %37 = arith.addf %34, %36 : vector<32x32xf32>
    %c0_21 = arith.constant 0 : index
    %c0_22 = arith.constant 0 : index
    %38 = vector.load %arg7[%c0_21, %c0_22] : memref<1x32xf32, #tpu.memory_space<vmem>>, vector<1x32xf32>
    %39 = vector.broadcast %38 : vector<1x32xf32> to vector<32x32xf32>
    %40 = arith.addf %37, %39 : vector<32x32xf32>
    %cst_23 = arith.constant 0.000000e+00 : f32
    %41 = vector.broadcast %cst_23 : f32 to vector<32x32xf32>
    %42 = arith.cmpf oge, %40, %41 : vector<32x32xf32>
    %cst_24 = arith.constant 1.000000e-01 : f32
    %43 = vector.broadcast %cst_24 : f32 to vector<32x32xf32>
    %44 = arith.mulf %43, %40 : vector<32x32xf32>
    %45 = arith.select %42, %40, %44 : vector<32x32xi1>, vector<32x32xf32>
    %46 = arith.truncf %45 : vector<32x32xf32> to vector<32x32xbf16>
    %cst_25 = arith.constant dense<0.000000e+00> : vector<32x32xf32>
    %47 = tpu.matmul %1, %46, %cst_25 {dimension_numbers = #tpu.dot_dimension_numbers<[1], [0], [0], [1], [0, 0, 1, 1], [], []>} : vector<32x32xbf16>, vector<32x32xbf16>, vector<32x32xf32> -> vector<32x32xf32>
    %c0_26 = arith.constant 0 : index
    %c0_27 = arith.constant 0 : index
    %48 = vector.load %arg8[%c0_26, %c0_27] : memref<1x32xf32, #tpu.memory_space<vmem>>, vector<1x32xf32>
    %49 = vector.broadcast %48 : vector<1x32xf32> to vector<32x32xf32>
    %50 = arith.mulf %47, %49 : vector<32x32xf32>
    %c0_28 = arith.constant 0 : index
    %c0_29 = arith.constant 0 : index
    %51 = vector.load %arg9[%c0_28, %c0_29] : memref<1x32xf32, #tpu.memory_space<vmem>>, vector<1x32xf32>
    %52 = vector.broadcast %51 : vector<1x32xf32> to vector<32x32xf32>
    %53 = arith.mulf %45, %52 : vector<32x32xf32>
    %54 = arith.addf %50, %53 : vector<32x32xf32>
    %cst_30 = arith.constant dense<0.000000e+00> : vector<32xf32>
    %55 = vector.multi_reduction <add>, %54, %cst_30 [1] : vector<32x32xf32> to vector<32xf32>
    %56 = vector.shape_cast %55 : vector<32xf32> to vector<32x1xf32>
    %c0_31 = arith.constant 0 : index
    %c0_32 = arith.constant 0 : index
    %57 = vector.load %arg10[%c0_31, %c0_32] : memref<1x1xf32, #tpu.memory_space<vmem>>, vector<1x1xf32>
    %58 = vector.broadcast %57 : vector<1x1xf32> to vector<32x1xf32>
    %59 = arith.addf %56, %58 : vector<32x1xf32>
    %60 = tpu.transpose %59, [1, 0] : vector<32x1xf32> -> vector<1x32xf32>
    %61 = vector.broadcast %60 : vector<1x32xf32> to vector<32x32xf32>
    %62 = vector.broadcast %59 : vector<32x1xf32> to vector<32x32xf32>
    %63 = arith.cmpf ogt, %61, %62 : vector<32x32xf32>
    %64 = vector.broadcast %60 : vector<1x32xf32> to vector<32x32xf32>
    %65 = vector.broadcast %59 : vector<32x1xf32> to vector<32x32xf32>
    %66 = arith.cmpf oeq, %64, %65 : vector<32x32xf32>
    %67 = vector.broadcast %9 : vector<1x32xi32> to vector<32x32xi32>
    %68 = vector.broadcast %8 : vector<32x1xi32> to vector<32x32xi32>
    %69 = arith.cmpi slt, %67, %68 : vector<32x32xi32>
    %70 = arith.andi %66, %69 : vector<32x32xi1>
    %71 = arith.ori %63, %70 : vector<32x32xi1>
    %72 = vector.broadcast %5 : vector<32x1xi32> to vector<32x32xi32>
    %73 = vector.broadcast %7 : vector<1x32xi32> to vector<32x32xi32>
    %74 = arith.cmpi eq, %72, %73 : vector<32x32xi32>
    %75 = arith.andi %71, %74 : vector<32x32xi1>
    %cst_33 = arith.constant 5.000000e-01 : f32
    %76 = vector.broadcast %cst_33 : f32 to vector<32x1xf32>
    %77 = arith.cmpf ogt, %20, %76 : vector<32x1xf32>
    %78 = vector.broadcast %77 : vector<32x1xi1> to vector<32x32xi1>
    %79 = arith.andi %75, %78 : vector<32x32xi1>
    %cst_34 = arith.constant 5.000000e-01 : f32
    %80 = vector.broadcast %cst_34 : f32 to vector<1x32xf32>
    %81 = arith.cmpf ogt, %21, %80 : vector<1x32xf32>
    %82 = vector.broadcast %81 : vector<1x32xi1> to vector<32x32xi1>
    %83 = arith.andi %79, %82 : vector<32x32xi1>
    %84 = arith.extui %83 : vector<32x32xi1> to vector<32x32xi32>
    %85 = arith.sitofp %84 : vector<32x32xi32> to vector<32x32xf32>
    %cst_35 = arith.constant dense<0.000000e+00> : vector<32xf32>
    %86 = vector.multi_reduction <add>, %85, %cst_35 [1] : vector<32x32xf32> to vector<32xf32>
    %87 = vector.shape_cast %86 : vector<32xf32> to vector<32x1xf32>
    %88 = vector.broadcast %20 : vector<32x1xf32> to vector<32x2xf32>
    %89 = arith.mulf %14, %88 : vector<32x2xf32>
    %cst_36 = arith.constant dense<0.000000e+00> : vector<2xf32>
    %90 = vector.multi_reduction <add>, %89, %cst_36 [0] : vector<32x2xf32> to vector<2xf32>
    %91 = vector.shape_cast %90 : vector<2xf32> to vector<1x2xf32>
    %cst_37 = arith.constant 5.000000e-01 : f32
    %92 = vector.broadcast %cst_37 : f32 to vector<1x2xf32>
    %93 = arith.mulf %92, %91 : vector<1x2xf32>
    %94 = math.ceil %93 : vector<1x2xf32>
    %95 = vector.broadcast %94 : vector<1x2xf32> to vector<32x2xf32>
    %96 = arith.mulf %14, %95 : vector<32x2xf32>
    %cst_38 = arith.constant dense<0.000000e+00> : vector<32xf32>
    %97 = vector.multi_reduction <add>, %96, %cst_38 [1] : vector<32x2xf32> to vector<32xf32>
    %98 = vector.shape_cast %97 : vector<32xf32> to vector<32x1xf32>
    %99 = arith.cmpf olt, %87, %98 : vector<32x1xf32>
    %100 = arith.extui %99 : vector<32x1xi1> to vector<32x1xi32>
    %101 = arith.sitofp %100 : vector<32x1xi32> to vector<32x1xf32>
    %102 = arith.mulf %20, %101 : vector<32x1xf32>
    %103 = tpu.transpose %102, [1, 0] : vector<32x1xf32> -> vector<1x32xf32>
    %104 = math.tanh %59 : vector<32x1xf32>
    %105 = vector.broadcast %104 : vector<32x1xf32> to vector<32x32xf32>
    %106 = arith.mulf %45, %105 : vector<32x32xf32>
    %107 = vector.broadcast %102 : vector<32x1xf32> to vector<32x32xf32>
    %108 = arith.mulf %106, %107 : vector<32x32xf32>
    %109 = arith.truncf %102 : vector<32x1xf32> to vector<32x1xbf16>
    %110 = vector.broadcast %109 : vector<32x1xbf16> to vector<32x32xbf16>
    %111 = arith.mulf %1, %110 : vector<32x32xbf16>
    %112 = arith.truncf %103 : vector<1x32xf32> to vector<1x32xbf16>
    %113 = vector.broadcast %112 : vector<1x32xbf16> to vector<32x32xbf16>
    %114 = arith.mulf %111, %113 : vector<32x32xbf16>
    %115 = vector.broadcast %103 : vector<1x32xf32> to vector<2x32xf32>
    %116 = arith.mulf %19, %115 : vector<2x32xf32>
    %cst_39 = arith.constant dense<0.000000e+00> : vector<2xf32>
    %117 = vector.multi_reduction <add>, %116, %cst_39 [1] : vector<2x32xf32> to vector<2xf32>
    %118 = vector.shape_cast %117 : vector<2xf32> to vector<2x1xf32>
    %119 = vector.shape_cast %116 : vector<2x32xf32> to vector<2x32x1xf32>
    %cst_40 = arith.constant 5.000000e-01 : f32
    %120 = vector.broadcast %cst_40 : f32 to vector<2x32x1xf32>
    %121 = arith.cmpf ogt, %119, %120 : vector<2x32x1xf32>
    %122 = vector.shape_cast %108 : vector<32x32xf32> to vector<1x32x32xf32>
    %cst_41 = arith.constant -3.40282347E+38 : f32
    %123 = vector.shape_cast %121 : vector<2x32x1xi1> to vector<2x32x1xi1>
    %124 = vector.broadcast %123 : vector<2x32x1xi1> to vector<2x32x32xi1>
    %125 = vector.shape_cast %122 : vector<1x32x32xf32> to vector<1x32x32xf32>
    %126 = vector.broadcast %125 : vector<1x32x32xf32> to vector<2x32x32xf32>
    %127 = vector.broadcast %cst_41 : f32 to vector<2x32x32xf32>
    %128 = arith.select %124, %126, %127 : vector<2x32x32xi1>, vector<2x32x32xf32>
    %cst_42 = arith.constant dense<0xFF800000> : vector<2x32xf32>
    %129 = vector.multi_reduction <maximumf>, %128, %cst_42 [1] : vector<2x32x32xf32> to vector<2x32xf32>
    %cst_43 = arith.constant 0.000000e+00 : f32
    %130 = vector.broadcast %cst_43 : f32 to vector<2x1xf32>
    %131 = arith.cmpf ogt, %118, %130 : vector<2x1xf32>
    %cst_44 = arith.constant 0.000000e+00 : f32
    %132 = vector.shape_cast %131 : vector<2x1xi1> to vector<2x1xi1>
    %133 = vector.broadcast %132 : vector<2x1xi1> to vector<2x32xi1>
    %134 = vector.broadcast %cst_44 : f32 to vector<2x32xf32>
    %135 = arith.select %133, %129, %134 : vector<2x32xi1>, vector<2x32xf32>
    %cst_45 = arith.constant 0.000000e+00 : f32
    %136 = vector.shape_cast %121 : vector<2x32x1xi1> to vector<2x32x1xi1>
    %137 = vector.broadcast %136 : vector<2x32x1xi1> to vector<2x32x32xi1>
    %138 = vector.shape_cast %122 : vector<1x32x32xf32> to vector<1x32x32xf32>
    %139 = vector.broadcast %138 : vector<1x32x32xf32> to vector<2x32x32xf32>
    %140 = vector.broadcast %cst_45 : f32 to vector<2x32x32xf32>
    %141 = arith.select %137, %139, %140 : vector<2x32x32xi1>, vector<2x32x32xf32>
    %cst_46 = arith.constant dense<0.000000e+00> : vector<2x32xf32>
    %142 = vector.multi_reduction <add>, %141, %cst_46 [1] : vector<2x32x32xf32> to vector<2x32xf32>
    %cst_47 = arith.constant 1.000000e+00 : f32
    %143 = vector.broadcast %cst_47 : f32 to vector<2x1xf32>
    %144 = arith.maximumf %118, %143 : vector<2x1xf32>
    %145 = tpu.reciprocal %144 : vector<2x1xf32> -> vector<2x1xf32>
    %146 = vector.broadcast %145 : vector<2x1xf32> to vector<2x32xf32>
    %147 = arith.mulf %142, %146 : vector<2x32xf32>
    %148 = tpu.concatenate %135, %147 in 1 : vector<2x32xf32>, vector<2x32xf32> -> vector<2x64xf32>
    %149 = arith.truncf %108 : vector<32x32xf32> to vector<32x32xbf16>
    %150 = arith.extf %114 : vector<32x32xbf16> to vector<32x32xf32>
    %cst_48 = arith.constant dense<0.000000e+00> : vector<32xf32>
    %151 = vector.multi_reduction <add>, %150, %cst_48 [1] : vector<32x32xf32> to vector<32xf32>
    %152 = vector.shape_cast %151 : vector<32xf32> to vector<32x1xf32>
    %cst_49 = arith.constant 1.000000e+00 : f32
    %153 = vector.broadcast %cst_49 : f32 to vector<32x1xf32>
    %154 = arith.maximumf %152, %153 : vector<32x1xf32>
    %155 = tpu.reciprocal %154 : vector<32x1xf32> -> vector<32x1xf32>
    %cst_50 = arith.constant dense<0.000000e+00> : vector<32x32xf32>
    %156 = tpu.matmul %114, %149, %cst_50 {dimension_numbers = #tpu.dot_dimension_numbers<[1], [0], [0], [1], [0, 0, 1, 1], [], []>} : vector<32x32xbf16>, vector<32x32xbf16>, vector<32x32xf32> -> vector<32x32xf32>
    %157 = vector.broadcast %155 : vector<32x1xf32> to vector<32x32xf32>
    %158 = arith.mulf %156, %157 : vector<32x32xf32>
    %159 = arith.truncf %158 : vector<32x32xf32> to vector<32x32xbf16>
    %c0_51 = arith.constant 0 : index
    %c0_52 = arith.constant 0 : index
    %160 = vector.load %arg11[%c0_51, %c0_52] : memref<32x32xbf16, #tpu.memory_space<vmem>>, vector<32x32xbf16>
    %cst_53 = arith.constant dense<0.000000e+00> : vector<32x32xf32>
    %161 = tpu.matmul %159, %160, %cst_53 {dimension_numbers = #tpu.dot_dimension_numbers<[1], [0], [0], [1], [0, 0, 1, 1], [], []>} : vector<32x32xbf16>, vector<32x32xbf16>, vector<32x32xf32> -> vector<32x32xf32>
    %c0_54 = arith.constant 0 : index
    %c0_55 = arith.constant 0 : index
    %162 = vector.load %arg12[%c0_54, %c0_55] : memref<32x32xbf16, #tpu.memory_space<vmem>>, vector<32x32xbf16>
    %cst_56 = arith.constant dense<0.000000e+00> : vector<32x32xf32>
    %163 = tpu.matmul %149, %162, %cst_56 {dimension_numbers = #tpu.dot_dimension_numbers<[1], [0], [0], [1], [0, 0, 1, 1], [], []>} : vector<32x32xbf16>, vector<32x32xbf16>, vector<32x32xf32> -> vector<32x32xf32>
    %164 = arith.addf %161, %163 : vector<32x32xf32>
    %c0_57 = arith.constant 0 : index
    %c0_58 = arith.constant 0 : index
    %165 = vector.load %arg13[%c0_57, %c0_58] : memref<1x32xf32, #tpu.memory_space<vmem>>, vector<1x32xf32>
    %166 = vector.broadcast %165 : vector<1x32xf32> to vector<32x32xf32>
    %167 = arith.addf %164, %166 : vector<32x32xf32>
    %cst_59 = arith.constant 0.000000e+00 : f32
    %168 = vector.broadcast %cst_59 : f32 to vector<32x32xf32>
    %169 = arith.cmpf oge, %167, %168 : vector<32x32xf32>
    %cst_60 = arith.constant 1.000000e-01 : f32
    %170 = vector.broadcast %cst_60 : f32 to vector<32x32xf32>
    %171 = arith.mulf %170, %167 : vector<32x32xf32>
    %172 = arith.select %169, %167, %171 : vector<32x32xi1>, vector<32x32xf32>
    %173 = arith.truncf %172 : vector<32x32xf32> to vector<32x32xbf16>
    %cst_61 = arith.constant dense<0.000000e+00> : vector<32x32xf32>
    %174 = tpu.matmul %114, %173, %cst_61 {dimension_numbers = #tpu.dot_dimension_numbers<[1], [0], [0], [1], [0, 0, 1, 1], [], []>} : vector<32x32xbf16>, vector<32x32xbf16>, vector<32x32xf32> -> vector<32x32xf32>
    %c0_62 = arith.constant 0 : index
    %c0_63 = arith.constant 0 : index
    %175 = vector.load %arg14[%c0_62, %c0_63] : memref<1x32xf32, #tpu.memory_space<vmem>>, vector<1x32xf32>
    %176 = vector.broadcast %175 : vector<1x32xf32> to vector<32x32xf32>
    %177 = arith.mulf %174, %176 : vector<32x32xf32>
    %c0_64 = arith.constant 0 : index
    %c0_65 = arith.constant 0 : index
    %178 = vector.load %arg15[%c0_64, %c0_65] : memref<1x32xf32, #tpu.memory_space<vmem>>, vector<1x32xf32>
    %179 = vector.broadcast %178 : vector<1x32xf32> to vector<32x32xf32>
    %180 = arith.mulf %172, %179 : vector<32x32xf32>
    %181 = arith.addf %177, %180 : vector<32x32xf32>
    %cst_66 = arith.constant dense<0.000000e+00> : vector<32xf32>
    %182 = vector.multi_reduction <add>, %181, %cst_66 [1] : vector<32x32xf32> to vector<32xf32>
    %183 = vector.shape_cast %182 : vector<32xf32> to vector<32x1xf32>
    %c0_67 = arith.constant 0 : index
    %c0_68 = arith.constant 0 : index
    %184 = vector.load %arg16[%c0_67, %c0_68] : memref<1x1xf32, #tpu.memory_space<vmem>>, vector<1x1xf32>
    %185 = vector.broadcast %184 : vector<1x1xf32> to vector<32x1xf32>
    %186 = arith.addf %183, %185 : vector<32x1xf32>
    %187 = tpu.transpose %186, [1, 0] : vector<32x1xf32> -> vector<1x32xf32>
    %188 = vector.broadcast %187 : vector<1x32xf32> to vector<32x32xf32>
    %189 = vector.broadcast %186 : vector<32x1xf32> to vector<32x32xf32>
    %190 = arith.cmpf ogt, %188, %189 : vector<32x32xf32>
    %191 = vector.broadcast %187 : vector<1x32xf32> to vector<32x32xf32>
    %192 = vector.broadcast %186 : vector<32x1xf32> to vector<32x32xf32>
    %193 = arith.cmpf oeq, %191, %192 : vector<32x32xf32>
    %194 = vector.broadcast %9 : vector<1x32xi32> to vector<32x32xi32>
    %195 = vector.broadcast %8 : vector<32x1xi32> to vector<32x32xi32>
    %196 = arith.cmpi slt, %194, %195 : vector<32x32xi32>
    %197 = arith.andi %193, %196 : vector<32x32xi1>
    %198 = arith.ori %190, %197 : vector<32x32xi1>
    %199 = vector.broadcast %5 : vector<32x1xi32> to vector<32x32xi32>
    %200 = vector.broadcast %7 : vector<1x32xi32> to vector<32x32xi32>
    %201 = arith.cmpi eq, %199, %200 : vector<32x32xi32>
    %202 = arith.andi %198, %201 : vector<32x32xi1>
    %cst_69 = arith.constant 5.000000e-01 : f32
    %203 = vector.broadcast %cst_69 : f32 to vector<32x1xf32>
    %204 = arith.cmpf ogt, %102, %203 : vector<32x1xf32>
    %205 = vector.broadcast %204 : vector<32x1xi1> to vector<32x32xi1>
    %206 = arith.andi %202, %205 : vector<32x32xi1>
    %cst_70 = arith.constant 5.000000e-01 : f32
    %207 = vector.broadcast %cst_70 : f32 to vector<1x32xf32>
    %208 = arith.cmpf ogt, %103, %207 : vector<1x32xf32>
    %209 = vector.broadcast %208 : vector<1x32xi1> to vector<32x32xi1>
    %210 = arith.andi %206, %209 : vector<32x32xi1>
    %211 = arith.extui %210 : vector<32x32xi1> to vector<32x32xi32>
    %212 = arith.sitofp %211 : vector<32x32xi32> to vector<32x32xf32>
    %cst_71 = arith.constant dense<0.000000e+00> : vector<32xf32>
    %213 = vector.multi_reduction <add>, %212, %cst_71 [1] : vector<32x32xf32> to vector<32xf32>
    %214 = vector.shape_cast %213 : vector<32xf32> to vector<32x1xf32>
    %215 = vector.broadcast %102 : vector<32x1xf32> to vector<32x2xf32>
    %216 = arith.mulf %14, %215 : vector<32x2xf32>
    %cst_72 = arith.constant dense<0.000000e+00> : vector<2xf32>
    %217 = vector.multi_reduction <add>, %216, %cst_72 [0] : vector<32x2xf32> to vector<2xf32>
    %218 = vector.shape_cast %217 : vector<2xf32> to vector<1x2xf32>
    %cst_73 = arith.constant 5.000000e-01 : f32
    %219 = vector.broadcast %cst_73 : f32 to vector<1x2xf32>
    %220 = arith.mulf %219, %218 : vector<1x2xf32>
    %221 = math.ceil %220 : vector<1x2xf32>
    %222 = vector.broadcast %221 : vector<1x2xf32> to vector<32x2xf32>
    %223 = arith.mulf %14, %222 : vector<32x2xf32>
    %cst_74 = arith.constant dense<0.000000e+00> : vector<32xf32>
    %224 = vector.multi_reduction <add>, %223, %cst_74 [1] : vector<32x2xf32> to vector<32xf32>
    %225 = vector.shape_cast %224 : vector<32xf32> to vector<32x1xf32>
    %226 = arith.cmpf olt, %214, %225 : vector<32x1xf32>
    %227 = arith.extui %226 : vector<32x1xi1> to vector<32x1xi32>
    %228 = arith.sitofp %227 : vector<32x1xi32> to vector<32x1xf32>
    %229 = arith.mulf %102, %228 : vector<32x1xf32>
    %230 = tpu.transpose %229, [1, 0] : vector<32x1xf32> -> vector<1x32xf32>
    %231 = math.tanh %186 : vector<32x1xf32>
    %232 = vector.broadcast %231 : vector<32x1xf32> to vector<32x32xf32>
    %233 = arith.mulf %172, %232 : vector<32x32xf32>
    %234 = vector.broadcast %229 : vector<32x1xf32> to vector<32x32xf32>
    %235 = arith.mulf %233, %234 : vector<32x32xf32>
    %236 = arith.truncf %229 : vector<32x1xf32> to vector<32x1xbf16>
    %237 = vector.broadcast %236 : vector<32x1xbf16> to vector<32x32xbf16>
    %238 = arith.mulf %114, %237 : vector<32x32xbf16>
    %239 = arith.truncf %230 : vector<1x32xf32> to vector<1x32xbf16>
    %240 = vector.broadcast %239 : vector<1x32xbf16> to vector<32x32xbf16>
    %241 = arith.mulf %238, %240 : vector<32x32xbf16>
    %242 = vector.broadcast %230 : vector<1x32xf32> to vector<2x32xf32>
    %243 = arith.mulf %19, %242 : vector<2x32xf32>
    %cst_75 = arith.constant dense<0.000000e+00> : vector<2xf32>
    %244 = vector.multi_reduction <add>, %243, %cst_75 [1] : vector<2x32xf32> to vector<2xf32>
    %245 = vector.shape_cast %244 : vector<2xf32> to vector<2x1xf32>
    %246 = vector.shape_cast %243 : vector<2x32xf32> to vector<2x32x1xf32>
    %cst_76 = arith.constant 5.000000e-01 : f32
    %247 = vector.broadcast %cst_76 : f32 to vector<2x32x1xf32>
    %248 = arith.cmpf ogt, %246, %247 : vector<2x32x1xf32>
    %249 = vector.shape_cast %235 : vector<32x32xf32> to vector<1x32x32xf32>
    %cst_77 = arith.constant -3.40282347E+38 : f32
    %250 = vector.shape_cast %248 : vector<2x32x1xi1> to vector<2x32x1xi1>
    %251 = vector.broadcast %250 : vector<2x32x1xi1> to vector<2x32x32xi1>
    %252 = vector.shape_cast %249 : vector<1x32x32xf32> to vector<1x32x32xf32>
    %253 = vector.broadcast %252 : vector<1x32x32xf32> to vector<2x32x32xf32>
    %254 = vector.broadcast %cst_77 : f32 to vector<2x32x32xf32>
    %255 = arith.select %251, %253, %254 : vector<2x32x32xi1>, vector<2x32x32xf32>
    %cst_78 = arith.constant dense<0xFF800000> : vector<2x32xf32>
    %256 = vector.multi_reduction <maximumf>, %255, %cst_78 [1] : vector<2x32x32xf32> to vector<2x32xf32>
    %cst_79 = arith.constant 0.000000e+00 : f32
    %257 = vector.broadcast %cst_79 : f32 to vector<2x1xf32>
    %258 = arith.cmpf ogt, %245, %257 : vector<2x1xf32>
    %cst_80 = arith.constant 0.000000e+00 : f32
    %259 = vector.shape_cast %258 : vector<2x1xi1> to vector<2x1xi1>
    %260 = vector.broadcast %259 : vector<2x1xi1> to vector<2x32xi1>
    %261 = vector.broadcast %cst_80 : f32 to vector<2x32xf32>
    %262 = arith.select %260, %256, %261 : vector<2x32xi1>, vector<2x32xf32>
    %cst_81 = arith.constant 0.000000e+00 : f32
    %263 = vector.shape_cast %248 : vector<2x32x1xi1> to vector<2x32x1xi1>
    %264 = vector.broadcast %263 : vector<2x32x1xi1> to vector<2x32x32xi1>
    %265 = vector.shape_cast %249 : vector<1x32x32xf32> to vector<1x32x32xf32>
    %266 = vector.broadcast %265 : vector<1x32x32xf32> to vector<2x32x32xf32>
    %267 = vector.broadcast %cst_81 : f32 to vector<2x32x32xf32>
    %268 = arith.select %264, %266, %267 : vector<2x32x32xi1>, vector<2x32x32xf32>
    %cst_82 = arith.constant dense<0.000000e+00> : vector<2x32xf32>
    %269 = vector.multi_reduction <add>, %268, %cst_82 [1] : vector<2x32x32xf32> to vector<2x32xf32>
    %cst_83 = arith.constant 1.000000e+00 : f32
    %270 = vector.broadcast %cst_83 : f32 to vector<2x1xf32>
    %271 = arith.maximumf %245, %270 : vector<2x1xf32>
    %272 = tpu.reciprocal %271 : vector<2x1xf32> -> vector<2x1xf32>
    %273 = vector.broadcast %272 : vector<2x1xf32> to vector<2x32xf32>
    %274 = arith.mulf %269, %273 : vector<2x32xf32>
    %275 = tpu.concatenate %262, %274 in 1 : vector<2x32xf32>, vector<2x32xf32> -> vector<2x64xf32>
    %276 = arith.truncf %235 : vector<32x32xf32> to vector<32x32xbf16>
    %277 = arith.extf %241 : vector<32x32xbf16> to vector<32x32xf32>
    %cst_84 = arith.constant dense<0.000000e+00> : vector<32xf32>
    %278 = vector.multi_reduction <add>, %277, %cst_84 [1] : vector<32x32xf32> to vector<32xf32>
    %279 = vector.shape_cast %278 : vector<32xf32> to vector<32x1xf32>
    %cst_85 = arith.constant 1.000000e+00 : f32
    %280 = vector.broadcast %cst_85 : f32 to vector<32x1xf32>
    %281 = arith.maximumf %279, %280 : vector<32x1xf32>
    %282 = tpu.reciprocal %281 : vector<32x1xf32> -> vector<32x1xf32>
    %cst_86 = arith.constant dense<0.000000e+00> : vector<32x32xf32>
    %283 = tpu.matmul %241, %276, %cst_86 {dimension_numbers = #tpu.dot_dimension_numbers<[1], [0], [0], [1], [0, 0, 1, 1], [], []>} : vector<32x32xbf16>, vector<32x32xbf16>, vector<32x32xf32> -> vector<32x32xf32>
    %284 = vector.broadcast %282 : vector<32x1xf32> to vector<32x32xf32>
    %285 = arith.mulf %283, %284 : vector<32x32xf32>
    %286 = arith.truncf %285 : vector<32x32xf32> to vector<32x32xbf16>
    %c0_87 = arith.constant 0 : index
    %c0_88 = arith.constant 0 : index
    %287 = vector.load %arg17[%c0_87, %c0_88] : memref<32x32xbf16, #tpu.memory_space<vmem>>, vector<32x32xbf16>
    %cst_89 = arith.constant dense<0.000000e+00> : vector<32x32xf32>
    %288 = tpu.matmul %286, %287, %cst_89 {dimension_numbers = #tpu.dot_dimension_numbers<[1], [0], [0], [1], [0, 0, 1, 1], [], []>} : vector<32x32xbf16>, vector<32x32xbf16>, vector<32x32xf32> -> vector<32x32xf32>
    %c0_90 = arith.constant 0 : index
    %c0_91 = arith.constant 0 : index
    %289 = vector.load %arg18[%c0_90, %c0_91] : memref<32x32xbf16, #tpu.memory_space<vmem>>, vector<32x32xbf16>
    %cst_92 = arith.constant dense<0.000000e+00> : vector<32x32xf32>
    %290 = tpu.matmul %276, %289, %cst_92 {dimension_numbers = #tpu.dot_dimension_numbers<[1], [0], [0], [1], [0, 0, 1, 1], [], []>} : vector<32x32xbf16>, vector<32x32xbf16>, vector<32x32xf32> -> vector<32x32xf32>
    %291 = arith.addf %288, %290 : vector<32x32xf32>
    %c0_93 = arith.constant 0 : index
    %c0_94 = arith.constant 0 : index
    %292 = vector.load %arg19[%c0_93, %c0_94] : memref<1x32xf32, #tpu.memory_space<vmem>>, vector<1x32xf32>
    %293 = vector.broadcast %292 : vector<1x32xf32> to vector<32x32xf32>
    %294 = arith.addf %291, %293 : vector<32x32xf32>
    %cst_95 = arith.constant 0.000000e+00 : f32
    %295 = vector.broadcast %cst_95 : f32 to vector<32x32xf32>
    %296 = arith.cmpf oge, %294, %295 : vector<32x32xf32>
    %cst_96 = arith.constant 1.000000e-01 : f32
    %297 = vector.broadcast %cst_96 : f32 to vector<32x32xf32>
    %298 = arith.mulf %297, %294 : vector<32x32xf32>
    %299 = arith.select %296, %294, %298 : vector<32x32xi1>, vector<32x32xf32>
    %300 = arith.truncf %299 : vector<32x32xf32> to vector<32x32xbf16>
    %cst_97 = arith.constant dense<0.000000e+00> : vector<32x32xf32>
    %301 = tpu.matmul %241, %300, %cst_97 {dimension_numbers = #tpu.dot_dimension_numbers<[1], [0], [0], [1], [0, 0, 1, 1], [], []>} : vector<32x32xbf16>, vector<32x32xbf16>, vector<32x32xf32> -> vector<32x32xf32>
    %c0_98 = arith.constant 0 : index
    %c0_99 = arith.constant 0 : index
    %302 = vector.load %arg20[%c0_98, %c0_99] : memref<1x32xf32, #tpu.memory_space<vmem>>, vector<1x32xf32>
    %303 = vector.broadcast %302 : vector<1x32xf32> to vector<32x32xf32>
    %304 = arith.mulf %301, %303 : vector<32x32xf32>
    %c0_100 = arith.constant 0 : index
    %c0_101 = arith.constant 0 : index
    %305 = vector.load %arg21[%c0_100, %c0_101] : memref<1x32xf32, #tpu.memory_space<vmem>>, vector<1x32xf32>
    %306 = vector.broadcast %305 : vector<1x32xf32> to vector<32x32xf32>
    %307 = arith.mulf %299, %306 : vector<32x32xf32>
    %308 = arith.addf %304, %307 : vector<32x32xf32>
    %cst_102 = arith.constant dense<0.000000e+00> : vector<32xf32>
    %309 = vector.multi_reduction <add>, %308, %cst_102 [1] : vector<32x32xf32> to vector<32xf32>
    %310 = vector.shape_cast %309 : vector<32xf32> to vector<32x1xf32>
    %c0_103 = arith.constant 0 : index
    %c0_104 = arith.constant 0 : index
    %311 = vector.load %arg22[%c0_103, %c0_104] : memref<1x1xf32, #tpu.memory_space<vmem>>, vector<1x1xf32>
    %312 = vector.broadcast %311 : vector<1x1xf32> to vector<32x1xf32>
    %313 = arith.addf %310, %312 : vector<32x1xf32>
    %314 = tpu.transpose %313, [1, 0] : vector<32x1xf32> -> vector<1x32xf32>
    %315 = vector.broadcast %314 : vector<1x32xf32> to vector<32x32xf32>
    %316 = vector.broadcast %313 : vector<32x1xf32> to vector<32x32xf32>
    %317 = arith.cmpf ogt, %315, %316 : vector<32x32xf32>
    %318 = vector.broadcast %314 : vector<1x32xf32> to vector<32x32xf32>
    %319 = vector.broadcast %313 : vector<32x1xf32> to vector<32x32xf32>
    %320 = arith.cmpf oeq, %318, %319 : vector<32x32xf32>
    %321 = vector.broadcast %9 : vector<1x32xi32> to vector<32x32xi32>
    %322 = vector.broadcast %8 : vector<32x1xi32> to vector<32x32xi32>
    %323 = arith.cmpi slt, %321, %322 : vector<32x32xi32>
    %324 = arith.andi %320, %323 : vector<32x32xi1>
    %325 = arith.ori %317, %324 : vector<32x32xi1>
    %326 = vector.broadcast %5 : vector<32x1xi32> to vector<32x32xi32>
    %327 = vector.broadcast %7 : vector<1x32xi32> to vector<32x32xi32>
    %328 = arith.cmpi eq, %326, %327 : vector<32x32xi32>
    %329 = arith.andi %325, %328 : vector<32x32xi1>
    %cst_105 = arith.constant 5.000000e-01 : f32
    %330 = vector.broadcast %cst_105 : f32 to vector<32x1xf32>
    %331 = arith.cmpf ogt, %229, %330 : vector<32x1xf32>
    %332 = vector.broadcast %331 : vector<32x1xi1> to vector<32x32xi1>
    %333 = arith.andi %329, %332 : vector<32x32xi1>
    %cst_106 = arith.constant 5.000000e-01 : f32
    %334 = vector.broadcast %cst_106 : f32 to vector<1x32xf32>
    %335 = arith.cmpf ogt, %230, %334 : vector<1x32xf32>
    %336 = vector.broadcast %335 : vector<1x32xi1> to vector<32x32xi1>
    %337 = arith.andi %333, %336 : vector<32x32xi1>
    %338 = arith.extui %337 : vector<32x32xi1> to vector<32x32xi32>
    %339 = arith.sitofp %338 : vector<32x32xi32> to vector<32x32xf32>
    %cst_107 = arith.constant dense<0.000000e+00> : vector<32xf32>
    %340 = vector.multi_reduction <add>, %339, %cst_107 [1] : vector<32x32xf32> to vector<32xf32>
    %341 = vector.shape_cast %340 : vector<32xf32> to vector<32x1xf32>
    %342 = vector.broadcast %229 : vector<32x1xf32> to vector<32x2xf32>
    %343 = arith.mulf %14, %342 : vector<32x2xf32>
    %cst_108 = arith.constant dense<0.000000e+00> : vector<2xf32>
    %344 = vector.multi_reduction <add>, %343, %cst_108 [0] : vector<32x2xf32> to vector<2xf32>
    %345 = vector.shape_cast %344 : vector<2xf32> to vector<1x2xf32>
    %cst_109 = arith.constant 5.000000e-01 : f32
    %346 = vector.broadcast %cst_109 : f32 to vector<1x2xf32>
    %347 = arith.mulf %346, %345 : vector<1x2xf32>
    %348 = math.ceil %347 : vector<1x2xf32>
    %349 = vector.broadcast %348 : vector<1x2xf32> to vector<32x2xf32>
    %350 = arith.mulf %14, %349 : vector<32x2xf32>
    %cst_110 = arith.constant dense<0.000000e+00> : vector<32xf32>
    %351 = vector.multi_reduction <add>, %350, %cst_110 [1] : vector<32x2xf32> to vector<32xf32>
    %352 = vector.shape_cast %351 : vector<32xf32> to vector<32x1xf32>
    %353 = arith.cmpf olt, %341, %352 : vector<32x1xf32>
    %354 = arith.extui %353 : vector<32x1xi1> to vector<32x1xi32>
    %355 = arith.sitofp %354 : vector<32x1xi32> to vector<32x1xf32>
    %356 = arith.mulf %229, %355 : vector<32x1xf32>
    %357 = tpu.transpose %356, [1, 0] : vector<32x1xf32> -> vector<1x32xf32>
    %358 = math.tanh %313 : vector<32x1xf32>
    %359 = vector.broadcast %358 : vector<32x1xf32> to vector<32x32xf32>
    %360 = arith.mulf %299, %359 : vector<32x32xf32>
    %361 = vector.broadcast %356 : vector<32x1xf32> to vector<32x32xf32>
    %362 = arith.mulf %360, %361 : vector<32x32xf32>
    %363 = arith.truncf %356 : vector<32x1xf32> to vector<32x1xbf16>
    %364 = vector.broadcast %363 : vector<32x1xbf16> to vector<32x32xbf16>
    %365 = arith.mulf %241, %364 : vector<32x32xbf16>
    %366 = arith.truncf %357 : vector<1x32xf32> to vector<1x32xbf16>
    %367 = vector.broadcast %366 : vector<1x32xbf16> to vector<32x32xbf16>
    %368 = arith.mulf %365, %367 : vector<32x32xbf16>
    %369 = vector.broadcast %357 : vector<1x32xf32> to vector<2x32xf32>
    %370 = arith.mulf %19, %369 : vector<2x32xf32>
    %cst_111 = arith.constant dense<0.000000e+00> : vector<2xf32>
    %371 = vector.multi_reduction <add>, %370, %cst_111 [1] : vector<2x32xf32> to vector<2xf32>
    %372 = vector.shape_cast %371 : vector<2xf32> to vector<2x1xf32>
    %373 = vector.shape_cast %370 : vector<2x32xf32> to vector<2x32x1xf32>
    %cst_112 = arith.constant 5.000000e-01 : f32
    %374 = vector.broadcast %cst_112 : f32 to vector<2x32x1xf32>
    %375 = arith.cmpf ogt, %373, %374 : vector<2x32x1xf32>
    %376 = vector.shape_cast %362 : vector<32x32xf32> to vector<1x32x32xf32>
    %cst_113 = arith.constant -3.40282347E+38 : f32
    %377 = vector.shape_cast %375 : vector<2x32x1xi1> to vector<2x32x1xi1>
    %378 = vector.broadcast %377 : vector<2x32x1xi1> to vector<2x32x32xi1>
    %379 = vector.shape_cast %376 : vector<1x32x32xf32> to vector<1x32x32xf32>
    %380 = vector.broadcast %379 : vector<1x32x32xf32> to vector<2x32x32xf32>
    %381 = vector.broadcast %cst_113 : f32 to vector<2x32x32xf32>
    %382 = arith.select %378, %380, %381 : vector<2x32x32xi1>, vector<2x32x32xf32>
    %cst_114 = arith.constant dense<0xFF800000> : vector<2x32xf32>
    %383 = vector.multi_reduction <maximumf>, %382, %cst_114 [1] : vector<2x32x32xf32> to vector<2x32xf32>
    %cst_115 = arith.constant 0.000000e+00 : f32
    %384 = vector.broadcast %cst_115 : f32 to vector<2x1xf32>
    %385 = arith.cmpf ogt, %372, %384 : vector<2x1xf32>
    %cst_116 = arith.constant 0.000000e+00 : f32
    %386 = vector.shape_cast %385 : vector<2x1xi1> to vector<2x1xi1>
    %387 = vector.broadcast %386 : vector<2x1xi1> to vector<2x32xi1>
    %388 = vector.broadcast %cst_116 : f32 to vector<2x32xf32>
    %389 = arith.select %387, %383, %388 : vector<2x32xi1>, vector<2x32xf32>
    %cst_117 = arith.constant 0.000000e+00 : f32
    %390 = vector.shape_cast %375 : vector<2x32x1xi1> to vector<2x32x1xi1>
    %391 = vector.broadcast %390 : vector<2x32x1xi1> to vector<2x32x32xi1>
    %392 = vector.shape_cast %376 : vector<1x32x32xf32> to vector<1x32x32xf32>
    %393 = vector.broadcast %392 : vector<1x32x32xf32> to vector<2x32x32xf32>
    %394 = vector.broadcast %cst_117 : f32 to vector<2x32x32xf32>
    %395 = arith.select %391, %393, %394 : vector<2x32x32xi1>, vector<2x32x32xf32>
    %cst_118 = arith.constant dense<0.000000e+00> : vector<2x32xf32>
    %396 = vector.multi_reduction <add>, %395, %cst_118 [1] : vector<2x32x32xf32> to vector<2x32xf32>
    %cst_119 = arith.constant 1.000000e+00 : f32
    %397 = vector.broadcast %cst_119 : f32 to vector<2x1xf32>
    %398 = arith.maximumf %372, %397 : vector<2x1xf32>
    %399 = tpu.reciprocal %398 : vector<2x1xf32> -> vector<2x1xf32>
    %400 = vector.broadcast %399 : vector<2x1xf32> to vector<2x32xf32>
    %401 = arith.mulf %396, %400 : vector<2x32xf32>
    %402 = tpu.concatenate %389, %401 in 1 : vector<2x32xf32>, vector<2x32xf32> -> vector<2x64xf32>
    %403 = arith.extf %368 : vector<32x32xbf16> to vector<32x32xf32>
    %cst_120 = arith.constant dense<0.000000e+00> : vector<32xf32>
    %404 = vector.multi_reduction <add>, %403, %cst_120 [1] : vector<32x32xf32> to vector<32xf32>
    %405 = vector.shape_cast %404 : vector<32xf32> to vector<32x1xf32>
    %406 = arith.extf %368 : vector<32x32xbf16> to vector<32x32xf32>
    %cst_121 = arith.constant dense<0.000000e+00> : vector<32xf32>
    %407 = vector.multi_reduction <add>, %406, %cst_121 [0] : vector<32x32xf32> to vector<32xf32>
    %408 = vector.shape_cast %407 : vector<32xf32> to vector<1x32xf32>
    %cst_122 = arith.constant 0.000000e+00 : f32
    %409 = vector.broadcast %cst_122 : f32 to vector<32x1xf32>
    %410 = arith.cmpf ogt, %405, %409 : vector<32x1xf32>
    %cst_123 = arith.constant 1.000000e+00 : f32
    %411 = vector.broadcast %cst_123 : f32 to vector<32x1xf32>
    %412 = arith.maximumf %405, %411 : vector<32x1xf32>
    %413 = math.rsqrt %412 : vector<32x1xf32>
    %cst_124 = arith.constant 0.000000e+00 : f32
    %414 = vector.broadcast %cst_124 : f32 to vector<32x1xf32>
    %415 = arith.select %410, %413, %414 : vector<32x1xi1>, vector<32x1xf32>
    %cst_125 = arith.constant 0.000000e+00 : f32
    %416 = vector.broadcast %cst_125 : f32 to vector<1x32xf32>
    %417 = arith.cmpf ogt, %408, %416 : vector<1x32xf32>
    %cst_126 = arith.constant 1.000000e+00 : f32
    %418 = vector.broadcast %cst_126 : f32 to vector<1x32xf32>
    %419 = arith.maximumf %408, %418 : vector<1x32xf32>
    %420 = math.rsqrt %419 : vector<1x32xf32>
    %cst_127 = arith.constant 0.000000e+00 : f32
    %421 = vector.broadcast %cst_127 : f32 to vector<1x32xf32>
    %422 = arith.select %417, %420, %421 : vector<1x32xi1>, vector<1x32xf32>
    %423 = tpu.transpose %422, [1, 0] : vector<1x32xf32> -> vector<32x1xf32>
    %424 = vector.broadcast %423 : vector<32x1xf32> to vector<32x32xf32>
    %425 = arith.mulf %362, %424 : vector<32x32xf32>
    %426 = arith.truncf %425 : vector<32x32xf32> to vector<32x32xbf16>
    %cst_128 = arith.constant dense<0.000000e+00> : vector<32x32xf32>
    %427 = tpu.matmul %368, %426, %cst_128 {dimension_numbers = #tpu.dot_dimension_numbers<[1], [0], [0], [1], [0, 0, 1, 1], [], []>} : vector<32x32xbf16>, vector<32x32xbf16>, vector<32x32xf32> -> vector<32x32xf32>
    %428 = vector.broadcast %415 : vector<32x1xf32> to vector<32x32xf32>
    %429 = arith.mulf %428, %427 : vector<32x32xf32>
    %430 = arith.subf %362, %429 : vector<32x32xf32>
    %431 = math.absf %430 : vector<32x32xf32>
    %cst_129 = arith.constant dense<0.000000e+00> : vector<32xf32>
    %432 = vector.multi_reduction <add>, %431, %cst_129 [1] : vector<32x32xf32> to vector<32xf32>
    %433 = vector.shape_cast %432 : vector<32xf32> to vector<32x1xf32>
    %434 = arith.mulf %433, %356 : vector<32x1xf32>
    %cst_130 = arith.constant dense<0.000000e+00> : vector<1xf32>
    %435 = vector.multi_reduction <add>, %434, %cst_130 [0] : vector<32x1xf32> to vector<1xf32>
    %436 = vector.shape_cast %435 : vector<1xf32> to vector<1x1xf32>
    %cst_131 = arith.constant dense<0.000000e+00> : vector<1xf32>
    %437 = vector.multi_reduction <add>, %356, %cst_131 [0] : vector<32x1xf32> to vector<1xf32>
    %438 = vector.shape_cast %437 : vector<1xf32> to vector<1x1xf32>
    %cst_132 = arith.constant 1.000000e+00 : f32
    %439 = vector.broadcast %cst_132 : f32 to vector<1x1xf32>
    %440 = arith.maximumf %438, %439 : vector<1x1xf32>
    %441 = arith.divf %436, %440 : vector<1x1xf32>
    %c0_133 = arith.constant 0 : index
    %c0_134 = arith.constant 0 : index
    %c0_135 = arith.constant 0 : index
    %442 = vector.load %arg31[%c0_133, %c0_134, %c0_135] : memref<1x1x1xf32, #tpu.memory_space<vmem>>, vector<1x1x1xf32>
    %443 = vector.shape_cast %442 : vector<1x1x1xf32> to vector<1x1xf32>
    %444 = vector.shape_cast %441 : vector<1x1xf32> to vector<1x1x1xf32>
    tpu.vector_store %arg31[%c0_133, %c0_134, %c0_135], %444 {strides = array<i32>} : memref<1x1x1xf32, #tpu.memory_space<vmem>>, vector<1x1x1xf32>,
    %cst_136 = arith.constant 0.000000e+00 : f32
    %445 = vector.broadcast %cst_136 : f32 to vector<2x64xf32>
    %446 = arith.cmpf oge, %148, %445 : vector<2x64xf32>
    %cst_137 = arith.constant 1.000000e-01 : f32
    %447 = vector.broadcast %cst_137 : f32 to vector<2x64xf32>
    %448 = arith.mulf %447, %148 : vector<2x64xf32>
    %449 = arith.select %446, %148, %448 : vector<2x64xi1>, vector<2x64xf32>
    %cst_138 = arith.constant 0.000000e+00 : f32
    %450 = vector.broadcast %cst_138 : f32 to vector<2x64xf32>
    %451 = arith.cmpf oge, %275, %450 : vector<2x64xf32>
    %cst_139 = arith.constant 1.000000e-01 : f32
    %452 = vector.broadcast %cst_139 : f32 to vector<2x64xf32>
    %453 = arith.mulf %452, %275 : vector<2x64xf32>
    %454 = arith.select %451, %275, %453 : vector<2x64xi1>, vector<2x64xf32>
    %455 = arith.addf %449, %454 : vector<2x64xf32>
    %cst_140 = arith.constant 0.000000e+00 : f32
    %456 = vector.broadcast %cst_140 : f32 to vector<2x64xf32>
    %457 = arith.cmpf oge, %402, %456 : vector<2x64xf32>
    %cst_141 = arith.constant 1.000000e-01 : f32
    %458 = vector.broadcast %cst_141 : f32 to vector<2x64xf32>
    %459 = arith.mulf %458, %402 : vector<2x64xf32>
    %460 = arith.select %457, %402, %459 : vector<2x64xi1>, vector<2x64xf32>
    %461 = arith.addf %455, %460 : vector<2x64xf32>
    %c0_142 = arith.constant 0 : index
    %c0_143 = arith.constant 0 : index
    %c0_144 = arith.constant 0 : index
    %462 = vector.load %arg30[%c0_142, %c0_143, %c0_144] : memref<1x2x64xf32, #tpu.memory_space<vmem>>, vector<1x2x64xf32>
    %463 = vector.shape_cast %462 : vector<1x2x64xf32> to vector<2x64xf32>
    %464 = vector.shape_cast %461 : vector<2x64xf32> to vector<1x2x64xf32>
    tpu.vector_store %arg30[%c0_142, %c0_143, %c0_144], %464 {strides = array<i32>} : memref<1x2x64xf32, #tpu.memory_space<vmem>>, vector<1x2x64xf32>,
    %465 = arith.mulf %461, %461 : vector<2x64xf32>
    %cst_145 = arith.constant dense<0.000000e+00> : vector<2xf32>
    %466 = vector.multi_reduction <add>, %465, %cst_145 [1] : vector<2x64xf32> to vector<2xf32>
    %467 = vector.shape_cast %466 : vector<2xf32> to vector<2x1xf32>
    %cst_146 = arith.constant 1.000000e-24 : f32
    %468 = vector.broadcast %cst_146 : f32 to vector<2x1xf32>
    %469 = arith.maximumf %467, %468 : vector<2x1xf32>
    %470 = math.rsqrt %469 : vector<2x1xf32>
    %471 = vector.broadcast %470 : vector<2x1xf32> to vector<2x64xf32>
    %472 = arith.mulf %461, %471 : vector<2x64xf32>
    %c0_147 = arith.constant 0 : index
    %c0_148 = arith.constant 0 : index
    %473 = vector.load %arg23[%c0_147, %c0_148] : memref<64x32xf32, #tpu.memory_space<vmem>>, vector<64x32xf32>
    %c0_149 = arith.constant 0 : index
    %c0_150 = arith.constant 0 : index
    %474 = vector.load %arg24[%c0_149, %c0_150] : memref<1x32xf32, #tpu.memory_space<vmem>>, vector<1x32xf32>
    %475 = vector.shape_cast %472 : vector<2x64xf32> to vector<2x64x1xf32>
    %476 = vector.shape_cast %473 : vector<64x32xf32> to vector<1x64x32xf32>
    %477 = vector.broadcast %475 : vector<2x64x1xf32> to vector<2x64x32xf32>
    %478 = vector.broadcast %476 : vector<1x64x32xf32> to vector<2x64x32xf32>
    %479 = arith.mulf %477, %478 : vector<2x64x32xf32>
    %cst_151 = arith.constant dense<0.000000e+00> : vector<2x32xf32>
    %480 = vector.multi_reduction <add>, %479, %cst_151 [1] : vector<2x64x32xf32> to vector<2x32xf32>
    %481 = vector.broadcast %474 : vector<1x32xf32> to vector<2x32xf32>
    %482 = arith.addf %480, %481 : vector<2x32xf32>
    %cst_152 = arith.constant 0.000000e+00 : f32
    %483 = vector.broadcast %cst_152 : f32 to vector<2x32xf32>
    %484 = arith.cmpf oge, %482, %483 : vector<2x32xf32>
    %cst_153 = arith.constant 1.000000e-01 : f32
    %485 = vector.broadcast %cst_153 : f32 to vector<2x32xf32>
    %486 = arith.mulf %485, %482 : vector<2x32xf32>
    %487 = arith.select %484, %482, %486 : vector<2x32xi1>, vector<2x32xf32>
    %c0_154 = arith.constant 0 : index
    %c0_155 = arith.constant 0 : index
    %488 = vector.load %arg25[%c0_154, %c0_155] : memref<32x16xf32, #tpu.memory_space<vmem>>, vector<32x16xf32>
    %c0_156 = arith.constant 0 : index
    %c0_157 = arith.constant 0 : index
    %489 = vector.load %arg26[%c0_156, %c0_157] : memref<1x16xf32, #tpu.memory_space<vmem>>, vector<1x16xf32>
    %490 = vector.shape_cast %487 : vector<2x32xf32> to vector<2x32x1xf32>
    %491 = vector.shape_cast %488 : vector<32x16xf32> to vector<1x32x16xf32>
    %492 = vector.broadcast %490 : vector<2x32x1xf32> to vector<2x32x16xf32>
    %493 = vector.broadcast %491 : vector<1x32x16xf32> to vector<2x32x16xf32>
    %494 = arith.mulf %492, %493 : vector<2x32x16xf32>
    %cst_158 = arith.constant dense<0.000000e+00> : vector<2x16xf32>
    %495 = vector.multi_reduction <add>, %494, %cst_158 [1] : vector<2x32x16xf32> to vector<2x16xf32>
    %496 = vector.broadcast %489 : vector<1x16xf32> to vector<2x16xf32>
    %497 = arith.addf %495, %496 : vector<2x16xf32>
    %cst_159 = arith.constant 0.000000e+00 : f32
    %498 = vector.broadcast %cst_159 : f32 to vector<2x16xf32>
    %499 = arith.cmpf oge, %497, %498 : vector<2x16xf32>
    %cst_160 = arith.constant 1.000000e-01 : f32
    %500 = vector.broadcast %cst_160 : f32 to vector<2x16xf32>
    %501 = arith.mulf %500, %497 : vector<2x16xf32>
    %502 = arith.select %499, %497, %501 : vector<2x16xi1>, vector<2x16xf32>
    %c0_161 = arith.constant 0 : index
    %c0_162 = arith.constant 0 : index
    %503 = vector.load %arg27[%c0_161, %c0_162] : memref<16x4xf32, #tpu.memory_space<vmem>>, vector<16x4xf32>
    %c0_163 = arith.constant 0 : index
    %c0_164 = arith.constant 0 : index
    %504 = vector.load %arg28[%c0_163, %c0_164] : memref<1x4xf32, #tpu.memory_space<vmem>>, vector<1x4xf32>
    %505 = vector.shape_cast %502 : vector<2x16xf32> to vector<2x16x1xf32>
    %506 = vector.shape_cast %503 : vector<16x4xf32> to vector<1x16x4xf32>
    %507 = vector.broadcast %505 : vector<2x16x1xf32> to vector<2x16x4xf32>
    %508 = vector.broadcast %506 : vector<1x16x4xf32> to vector<2x16x4xf32>
    %509 = arith.mulf %507, %508 : vector<2x16x4xf32>
    %cst_165 = arith.constant dense<0.000000e+00> : vector<2x4xf32>
    %510 = vector.multi_reduction <add>, %509, %cst_165 [1] : vector<2x16x4xf32> to vector<2x4xf32>
    %511 = vector.broadcast %504 : vector<1x4xf32> to vector<2x4xf32>
    %512 = arith.addf %510, %511 : vector<2x4xf32>
    %c0_166 = arith.constant 0 : index
    %c0_167 = arith.constant 0 : index
    %c0_168 = arith.constant 0 : index
    %513 = vector.load %arg29[%c0_166, %c0_167, %c0_168] : memref<1x2x4xf32, #tpu.memory_space<vmem>>, vector<1x2x4xf32>
    %514 = vector.shape_cast %513 : vector<1x2x4xf32> to vector<2x4xf32>
    %515 = vector.shape_cast %512 : vector<2x4xf32> to vector<1x2x4xf32>
    tpu.vector_store %arg29[%c0_166, %c0_167, %c0_168], %515 {strides = array<i32>} : memref<1x2x4xf32, #tpu.memory_space<vmem>>, vector<1x2x4xf32>,
    return
  }
  func.func @transform_0(%arg0: i32) -> (i32, i32, i32) {
    %c0_i32 = arith.constant 0 : i32
    %c0_i32_0 = arith.constant 0 : i32
    %c0_i32_1 = arith.constant 0 : i32
    return %arg0, %c0_i32, %c0_i32_0 : i32, i32, i32
  }
  func.func @transform_1(%arg0: i32) -> (i32, i32, i32) {
    %c0_i32 = arith.constant 0 : i32
    %c0_i32_0 = arith.constant 0 : i32
    %c0_i32_1 = arith.constant 0 : i32
    return %arg0, %c0_i32, %c0_i32_0 : i32, i32, i32
  }
  func.func @transform_2(%arg0: i32) -> (i32, i32, i32) {
    %c0_i32 = arith.constant 0 : i32
    %c0_i32_0 = arith.constant 0 : i32
    %c0_i32_1 = arith.constant 0 : i32
    return %arg0, %c0_i32, %c0_i32_0 : i32, i32, i32
  }
  func.func @transform_3(%arg0: i32) -> (i32, i32, i32) {
    %c0_i32 = arith.constant 0 : i32
    %c0_i32_0 = arith.constant 0 : i32
    %c0_i32_1 = arith.constant 0 : i32
    return %arg0, %c0_i32, %c0_i32_0 : i32, i32, i32
  }
  func.func @transform_4(%arg0: i32) -> (i32, i32) {
    %c0_i32 = arith.constant 0 : i32
    %c0_i32_0 = arith.constant 0 : i32
    %c0_i32_1 = arith.constant 0 : i32
    return %c0_i32, %c0_i32_0 : i32, i32
  }
  func.func @transform_5(%arg0: i32) -> (i32, i32) {
    %c0_i32 = arith.constant 0 : i32
    %c0_i32_0 = arith.constant 0 : i32
    %c0_i32_1 = arith.constant 0 : i32
    return %c0_i32, %c0_i32_0 : i32, i32
  }
  func.func @transform_6(%arg0: i32) -> (i32, i32) {
    %c0_i32 = arith.constant 0 : i32
    %c0_i32_0 = arith.constant 0 : i32
    %c0_i32_1 = arith.constant 0 : i32
    return %c0_i32, %c0_i32_0 : i32, i32
  }
  func.func @transform_7(%arg0: i32) -> (i32, i32) {
    %c0_i32 = arith.constant 0 : i32
    %c0_i32_0 = arith.constant 0 : i32
    %c0_i32_1 = arith.constant 0 : i32
    return %c0_i32, %c0_i32_0 : i32, i32
  }
  func.func @transform_8(%arg0: i32) -> (i32, i32) {
    %c0_i32 = arith.constant 0 : i32
    %c0_i32_0 = arith.constant 0 : i32
    %c0_i32_1 = arith.constant 0 : i32
    return %c0_i32, %c0_i32_0 : i32, i32
  }
  func.func @transform_9(%arg0: i32) -> (i32, i32) {
    %c0_i32 = arith.constant 0 : i32
    %c0_i32_0 = arith.constant 0 : i32
    %c0_i32_1 = arith.constant 0 : i32
    return %c0_i32, %c0_i32_0 : i32, i32
  }
  func.func @transform_10(%arg0: i32) -> (i32, i32) {
    %c0_i32 = arith.constant 0 : i32
    %c0_i32_0 = arith.constant 0 : i32
    %c0_i32_1 = arith.constant 0 : i32
    return %c0_i32, %c0_i32_0 : i32, i32
  }
  func.func @transform_11(%arg0: i32) -> (i32, i32) {
    %c0_i32 = arith.constant 0 : i32
    %c0_i32_0 = arith.constant 0 : i32
    %c0_i32_1 = arith.constant 0 : i32
    return %c0_i32, %c0_i32_0 : i32, i32
  }
  func.func @transform_12(%arg0: i32) -> (i32, i32) {
    %c0_i32 = arith.constant 0 : i32
    %c0_i32_0 = arith.constant 0 : i32
    %c0_i32_1 = arith.constant 0 : i32
    return %c0_i32, %c0_i32_0 : i32, i32
  }
  func.func @transform_13(%arg0: i32) -> (i32, i32) {
    %c0_i32 = arith.constant 0 : i32
    %c0_i32_0 = arith.constant 0 : i32
    %c0_i32_1 = arith.constant 0 : i32
    return %c0_i32, %c0_i32_0 : i32, i32
  }
  func.func @transform_14(%arg0: i32) -> (i32, i32) {
    %c0_i32 = arith.constant 0 : i32
    %c0_i32_0 = arith.constant 0 : i32
    %c0_i32_1 = arith.constant 0 : i32
    return %c0_i32, %c0_i32_0 : i32, i32
  }
  func.func @transform_15(%arg0: i32) -> (i32, i32) {
    %c0_i32 = arith.constant 0 : i32
    %c0_i32_0 = arith.constant 0 : i32
    %c0_i32_1 = arith.constant 0 : i32
    return %c0_i32, %c0_i32_0 : i32, i32
  }
  func.func @transform_16(%arg0: i32) -> (i32, i32) {
    %c0_i32 = arith.constant 0 : i32
    %c0_i32_0 = arith.constant 0 : i32
    %c0_i32_1 = arith.constant 0 : i32
    return %c0_i32, %c0_i32_0 : i32, i32
  }
  func.func @transform_17(%arg0: i32) -> (i32, i32) {
    %c0_i32 = arith.constant 0 : i32
    %c0_i32_0 = arith.constant 0 : i32
    %c0_i32_1 = arith.constant 0 : i32
    return %c0_i32, %c0_i32_0 : i32, i32
  }
  func.func @transform_18(%arg0: i32) -> (i32, i32) {
    %c0_i32 = arith.constant 0 : i32
    %c0_i32_0 = arith.constant 0 : i32
    %c0_i32_1 = arith.constant 0 : i32
    return %c0_i32, %c0_i32_0 : i32, i32
  }
  func.func @transform_19(%arg0: i32) -> (i32, i32) {
    %c0_i32 = arith.constant 0 : i32
    %c0_i32_0 = arith.constant 0 : i32
    %c0_i32_1 = arith.constant 0 : i32
    return %c0_i32, %c0_i32_0 : i32, i32
  }
  func.func @transform_20(%arg0: i32) -> (i32, i32) {
    %c0_i32 = arith.constant 0 : i32
    %c0_i32_0 = arith.constant 0 : i32
    %c0_i32_1 = arith.constant 0 : i32
    return %c0_i32, %c0_i32_0 : i32, i32
  }
  func.func @transform_21(%arg0: i32) -> (i32, i32) {
    %c0_i32 = arith.constant 0 : i32
    %c0_i32_0 = arith.constant 0 : i32
    %c0_i32_1 = arith.constant 0 : i32
    return %c0_i32, %c0_i32_0 : i32, i32
  }
  func.func @transform_22(%arg0: i32) -> (i32, i32) {
    %c0_i32 = arith.constant 0 : i32
    %c0_i32_0 = arith.constant 0 : i32
    %c0_i32_1 = arith.constant 0 : i32
    return %c0_i32, %c0_i32_0 : i32, i32
  }
  func.func @transform_23(%arg0: i32) -> (i32, i32) {
    %c0_i32 = arith.constant 0 : i32
    %c0_i32_0 = arith.constant 0 : i32
    %c0_i32_1 = arith.constant 0 : i32
    return %c0_i32, %c0_i32_0 : i32, i32
  }
  func.func @transform_24(%arg0: i32) -> (i32, i32) {
    %c0_i32 = arith.constant 0 : i32
    %c0_i32_0 = arith.constant 0 : i32
    %c0_i32_1 = arith.constant 0 : i32
    return %c0_i32, %c0_i32_0 : i32, i32
  }
  func.func @transform_25(%arg0: i32) -> (i32, i32) {
    %c0_i32 = arith.constant 0 : i32
    %c0_i32_0 = arith.constant 0 : i32
    %c0_i32_1 = arith.constant 0 : i32
    return %c0_i32, %c0_i32_0 : i32, i32
  }
  func.func @transform_26(%arg0: i32) -> (i32, i32) {
    %c0_i32 = arith.constant 0 : i32
    %c0_i32_0 = arith.constant 0 : i32
    %c0_i32_1 = arith.constant 0 : i32
    return %c0_i32, %c0_i32_0 : i32, i32
  }
  func.func @transform_27(%arg0: i32) -> (i32, i32) {
    %c0_i32 = arith.constant 0 : i32
    %c0_i32_0 = arith.constant 0 : i32
    %c0_i32_1 = arith.constant 0 : i32
    return %c0_i32, %c0_i32_0 : i32, i32
  }
  func.func @transform_28(%arg0: i32) -> (i32, i32, i32) {
    %c0_i32 = arith.constant 0 : i32
    %c0_i32_0 = arith.constant 0 : i32
    %c0_i32_1 = arith.constant 0 : i32
    return %arg0, %c0_i32, %c0_i32_0 : i32, i32, i32
  }
  func.func @transform_29(%arg0: i32) -> (i32, i32, i32) {
    %c0_i32 = arith.constant 0 : i32
    %c0_i32_0 = arith.constant 0 : i32
    %c0_i32_1 = arith.constant 0 : i32
    return %arg0, %c0_i32, %c0_i32_0 : i32, i32, i32
  }
  func.func @transform_30(%arg0: i32) -> (i32, i32, i32) {
    %c0_i32 = arith.constant 0 : i32
    %c0_i32_0 = arith.constant 0 : i32
    %c0_i32_1 = arith.constant 0 : i32
    return %arg0, %c0_i32, %c0_i32_0 : i32, i32, i32
  }
}

</mosaic_0001>

<bundles_post_ra>
// kernel: graph_embedder_forward.1
= control target key start
LH: loop header
LB: loop body
LE: loop exit
PB: predicated region body
PF: predicated region fallthrough
CT: control target
= control target key end

     0   :  { %s4771_s6 = smov 1   ;;  %s4772_s10 = smov 2   ;;  %s6192_s0 = inlined_call_operand.smem [shape: u32[31], index: -1, kind: input, shape index: {}] }
   0x1   :  { %s4816_s5 = sld [smem:[%s6192_s0]]   ;;  %s4773_s14 = smov 3  }
   0x2   :  { %s4821_s9 = sld [smem:[%s6192_s0 + %s4771_s6]]   ;;  %s4774_s18 = smov 4  }
   0x3   :  { %s4826_s13 = sld [smem:[%s6192_s0 + %s4772_s10]]   ;;  %s4775_s22 = smov 5  }
   0x4   :  { %s4831_s17 = sld [smem:[%s6192_s0 + %s4773_s14]]   ;;  %s4776_s26 = smov 6  }
   0x5   :  { %s4836_s21 = sld [smem:[%s6192_s0 + %s4774_s18]]   ;;  %s4777_s30 = smov 7  }
   0x6   :  { %s4841_s25 = sld [smem:[%s6192_s0 + %s4775_s22]]   ;;  %s4778_s4 = smov 8  }
   0x7   :  { %6219 = sst [smem:[#allocation11_spill]] %s4816_s5  ;;  %s4779_s10 = smov 9  }
   0x8   :  { %6220 = sst [smem:[#allocation12_spill]] %s4821_s9  ;;  %s4780_s15 = smov 10  }
   0x9   :  { %s4846_s29 = sld [smem:[%s6192_s0 + %s4776_s26]]   ;;  %s4781_s20 = smov 11  }
   0xa   :  { %s4851_s3 = sld [smem:[%s6192_s0 + %s4777_s30]]   ;;  %s4782_s26 = smov 12  }
   0xb   :  { %s4856_s8 = sld [smem:[%s6192_s0 + %s4778_s4]]   ;;  %s4783_s1 = smov 13  }
   0xc   :  { %s4215_s14 = sld [smem:[%s6192_s0 + %s4779_s10]]   ;;  %s4784_s7 = smov 14  }
   0xd   :  { %s4864_s19 = sld [smem:[%s6192_s0 + %s4780_s15]]   ;;  %s4785_s15 = smov 16  }
   0xe   :  { %s4869_s24 = sld [smem:[%s6192_s0 + %s4781_s20]]   ;;  %s4786_s22 = smov 17  }
   0xf   :  { %s4874_s30 = sld [smem:[%s6192_s0 + %s4782_s26]]   ;;  %s4787_s28 = smov 18  }
  0x10   :  { %6221 = sst [smem:[#allocation13_spill]] %s4851_s3  ;;  %s4800_s10 = smov 21  }
  0x11   :  { %6222 = sst [smem:[#allocation14_spill]] %s4856_s8 }
  0x12   :  { %s4879_s6 = sld [smem:[%s6192_s0 + %s4783_s1]]   ;;  %v67_v0 = vstv %s4215_s14  ;;  %s4789_s14 = smov 20  }
  0x13   :  { %s4884_s12 = sld [smem:[%s6192_s0 + %s4784_s7]]   ;;  %68 = vst [vmem:[#allocation2] sm:$0x1] %v67_v0  ;;  %s4788_s7 = smov 19  }
  0x14   :  { %s4889_s20 = sld [smem:[%s6192_s0 + %s4785_s15]]  }
  0x15   :  { %s4894_s27 = sld [smem:[%s6192_s0 + %s4786_s22]]   ;;  %s4790_s22 = smov 22  }
  0x16   :  { %s4899_s4 = sld [smem:[%s6192_s0 + %s4787_s28]]   ;;  %s4791_s28 = smov 23  }
  0x17   :  { %s4904_s15 = sld [smem:[%s6192_s0 + %s4788_s7]]   ;;  %s4792_s7 = smov 24  }
  0x18   :  { %6223 = sst [smem:[#allocation15_spill]] %s4879_s6 }
  0x19   :  { %6224 = sst [smem:[#allocation16_spill]] %s4884_s12 }
  0x1a   :  { %6225 = sst [smem:[#allocation17_spill]] %s4889_s20  ;;  %s4794_s20 = smov 26  }
  0x1b   :  { %6226 = sst [smem:[#allocation18_spill]] %s4894_s27 }
  0x1c   :  { %6227 = sst [smem:[#allocation19_spill]] %s4899_s4 }
  0x1d   :  { %6228 = sst [smem:[#allocation20_spill]] %s4904_s15 }
  0x1e   :  { %s4909_s23 = sld [smem:[%s6192_s0 + %s4789_s14]]   ;;  %s4793_s14 = smov 25  }
  0x1f   :  { %s4914_s27 = sld [smem:[%s6192_s0 + %s4790_s22]]  }
  0x20   :  { %s4919_s4 = sld [smem:[%s6192_s0 + %s4791_s28]]   ;;  %s4795_s28 = smov 27  }
  0x21   :  { %s4924_s15 = sld [smem:[%s6192_s0 + %s4792_s7]]   ;;  %s4796_s7 = smov 28  }
  0x24   :  { %6229 = sst [smem:[#allocation21_spill]] %s4909_s23 }
  0x25   :  { %6230 = sst [smem:[#allocation22_spill]] %s4914_s27 }
  0x26   :  { %6231 = sst [smem:[#allocation23_spill]] %s4919_s4 }
  0x27   :  { %6232 = sst [smem:[#allocation24_spill]] %s4924_s15 }
  0x28   :  { %s4929_s23 = sld [smem:[%s6192_s0 + %s4793_s14]]   ;;  %s4797_s14 = smov 29  }
  0x29   :  { %s4934_s27 = sld [smem:[%s6192_s0 + %s4794_s20]]   ;;  %s4798_s20 = smov 30  }
  0x2a   :  { %s4939_s4 = sld [smem:[%s6192_s0 + %s4795_s28]]   ;;  %s4799_s28 = smov 15  }
  0x2b   :  { %s4944_s15 = sld [smem:[%s6192_s0 + %s4796_s7]]  }
  0x2e   :  { %6233 = sst [smem:[#allocation25_spill]] %s4929_s23 }
  0x2f   :  { %6234 = sst [smem:[#allocation26_spill]] %s4934_s27 }
  0x30   :  { %6235 = sst [smem:[#allocation27_spill]] %s4939_s4 }
  0x31   :  { %6236 = sst [smem:[#allocation28_spill]] %s4944_s15 }
  0x32   :  { %s4949_s23 = sld [smem:[%s6192_s0 + %s4797_s14]]  }
  0x33   :  { %s4954_s27 = sld [smem:[%s6192_s0 + %s4798_s20]]  }
  0x34   :  { %s4221_s4 = sld [smem:[%s6192_s0 + %s4799_s28]]  }
  0x35   :  { %s4227_s15 = sld [smem:[%s6192_s0 + %s4800_s10]]  }
  0x3a   :  { %v69_v1 = vstv %s4221_s4 }
  0x3b   :  { %70 = vst [vmem:[#allocation3] sm:$0x1] %v69_v1  ;;  %v71_v2 = vstv %s4227_s15 }
  0x3c   :  { %72 = vst [vmem:[#allocation4] sm:$0x1] %v71_v2 }
  0x3d   :  { %73 = vsyncpa [#allocation6], 0 }
  0x3e   :  { %75 = vsyncpa [#allocation6 + $0x1], 0 }
  0x3f   :  { %76 = vsyncpa [#allocation8], 0 }
  0x40   :  { %78 = vsyncpa [#allocation8 + $0x1], 0  ;;  %s4962_s14 = smov 0   ;;  %s4964_s16 = smov 0  }
  0x41   :  { %s4966_s18 = smov 0   ;;  %s4968_s20 = smov 0  }
  0x42 LB: > { %s4983_s0 = sadd.s32 4294967295, %s4769_s20   ;;  %s4238_s4 = sadd.s32 4294967294, %s4769_s20   ;;  %s4769_s20 = sphi %s4968_s20, %s6301_s20   ;;  %s4765_s18 = sphi %s4966_s18, %s6300_s18   ;;  %s4761_s16 = sphi %s4964_s16, %s6299_s16   ;;  %s4757_s14 = sphi %s4962_s14, %s6298_s14  }
  0x43   : > { %s4987_s15 = sadd.s32 1, %s4769_s20   ;;  %s699_s22 = sadd.s32 1, %s4765_s18 }
  0x44   : > { %s696_s26 = ssub.s32 %s4769_s20, %s4987_s15  ;;  %p709_p0 = scmp.ne.s32.totalorder %s4765_s18, %s4761_s16 }
  0x45   : > { %p697_p1 = scmp.eq.s32.totalorder %s696_s26, 0  ;;  %p710_p2 = scmp.eq.s32.totalorder %s4983_s0, 2 }
  0x46   : > { %p715_p3 = scmp.ne.s32.totalorder %s4761_s16, %s4757_s14  ;;  %p716_p4 = scmp.eq.s32.totalorder %s4238_s4, 2 }
  0x47   : > { %s4998_s28 = scalar_select %p697_p1, %s4765_s18, %s699_s22  }
  0x48   : > { %p5000_p5 = por %p710_p2, %p709_p0  ;;  %p5004_p6 = por %p716_p4, %p715_p3 }
  0x49   : > { %p4241_p7 = scmp.ge.s32.totalorder %s4769_s20, 1  ;;  %p888_p8 = scmp.lt.s32.totalorder %s4769_s20, 4 }
  0x4b   : > { %p889_p9 = pnand %p4241_p7, %p888_p8 }
  0x4d   : > { %892 = sbr.rel (%p889_p9) target bundleno = 4980 (0x1374), region = 132 }
  0x54   : > { %s6239_s5 = sld [smem:[#allocation11_spill]]  ;;  %s6240_s9 = sld [smem:[#allocation12_spill]]  ;;  %vm1066_vm0 = vcmask 261120   ;;  %v4596_v23 = vld [vmem:[%s4841_s25] sm:$0xff]   ;;  %vm6199_vm1 = vcmask 130048   ;;  %v6209_v47 = vmov 0  }
  0x55   : > { %p987_p10 = scmp.lt.s32.totalorder %s4983_s0, 2  ;;  %v4597_v24 = vld [vmem:[%s4836_s21] sm:$0xff]   ;;  %4409 = vmatprep.subr.bf16.mxu1 %v4596_v23  ;;  %4593 = vset.pattern.permute.xlu1 %v6209_v47  ;;  %s6241_s3 = sld [smem:[#allocation13_spill]]  ;;  %vm6200_vm8 = vcmask 15360  }
  0x56   : > { %4410 = vmatpush3.bf16.msra.mxu1 %v4596_v23  ;;  %4592 = vset.pattern.permute.xlu0 %v6209_v47  ;;  %v4266_v51 = vld [vmem:[%s4846_s29] ss:$0 sm:$0xff]  ;;  %s6242_s8 = sld [smem:[#allocation14_spill]]  ;;  %s6243_s6 = sld [smem:[#allocation15_spill]] }
  0x57   : > { %s5012_s10 = scalar_select %p987_p10, %s4983_s0, 2  ;;  %4415 = vmatprep.subr.bf16.mxu1 %v4597_v24 }
  0x58   : > { %s6244_s12 = sld [smem:[#allocation16_spill]] }
  0x59   : > { %s4348_s7 = sshll.u32 %s5012_s10, 5  ;;  %s4349_s11 = sshll.u32 %s5012_s10, 4 }
  0x5a   : > { %s991_s4 = scalar_lea.vmem %s6239_s5, %s4348_s7  ;;  %s996_s22 = scalar_lea.vmem %s6240_s9, %s4349_s11 }
  0x5b   : > { %v1013_v3 = vld [vmem:[%s991_s4] sm:$0xff]  ;;  %v1014_v4 = vld [vmem:[%s991_s4 + $0x8] sm:$0xff]  ;;  %v1015_v5 = vld [vmem:[%s991_s4 + $0x10] sm:$0xff]  ;;  %s5055_s26 = scalar_lea.vmem %s4826_s13, %s4348_s7  ;;  %s5158_s7 = scalar_lea.vmem %s4831_s17, %s5012_s10 }
  0x5c   : > { %v1060_v6 = vpack.c.bf16 %v1014_v4, %v1013_v3  ;;  %v1016_v7 = vld [vmem:[%s991_s4 + $0x18] sm:$0xff]  ;;  %v5020_v8 = vld [vmem:[%s996_s22] sm:$0xf]  ;;  %v5022_v9 = vld [vmem:[%s996_s22 + $0x4] sm:$0xf]  ;;  %s6251_s11 = sld [smem:[#allocation18_spill]] }
  0x5d   : > { %v1061_v10 = vpack.c.bf16 %v1016_v7, %v1015_v5  ;;  %v4256_v11 = vcombine.low %v5020_v8, %v5022_v9  ;;  %v5026_v12 = vld [vmem:[%s996_s22 + $0x8] sm:$0xf]  ;;  %v5028_v13 = vld [vmem:[%s996_s22 + $0xc] sm:$0xf]  ;;  %v1062_v14 = vunpack.c.l.bf16 %v5020_v8  ;;  %v1063_v15 = vunpack.c.l.bf16 %v5022_v9  ;;  %v1019_v49 = vld [vmem:[%s5055_s26 + $0x10] sm:$0xff]  ;;  %s6253_s4 = sld [smem:[#allocation17_spill]] }
  0x5e   : > { %4401 = vmatprep.subr.bf16.mxu0 %v1060_v6  ;;  %v1064_v16 = vunpack.c.l.bf16 %v5026_v12  ;;  %v1065_v17 = vunpack.c.l.bf16 %v5028_v13  ;;  %v5040_v21 = vcombine.low %v5026_v12, %v5028_v13  ;;  %4411 = vmatprep.mubr.msk.bf16.mxu1 %vm6199_vm1, %v1060_v6  ;;  %v1018_v48 = vld [vmem:[%s5055_s26 + $0x8] sm:$0xff]  ;;  %v1020_v50 = vld [vmem:[%s5055_s26 + $0x18] sm:$0xff]  ;;  %v4270_v7 = vld [vmem:[%s6242_s8] ss:$0 sm:$0xff]  ;;  %s6254_s22 = sld [smem:[#allocation19_spill]]  ;;  %s4806_s9 = smov [#allocation7]  }
  0x5f   : > { %4402 = vmatpush3.bf16.msra.mxu0 %v1060_v6  ;;  %4405 = vmatprep.mubr.msk.bf16.mxu0 %vm1066_vm0, %v4256_v11  ;;  %v1067_v18 = vsel %vm1066_vm0, %v1062_v14, 0.0  ;;  %v1070_v20 = vsel %vm1066_vm0, %v1063_v15, 0.0  ;;  %v4269_v6 = vld [vmem:[%s6241_s3] ss:$0 sm:$0xff]  ;;  %s6283_s3 = sld [smem:[#allocation23_spill]] }
  0x60   : > { %4403 = vmatprep.subr.bf16.mxu0 %v1061_v10  ;;  %v1073_v19 = vsel %vm1066_vm0, %v1064_v16, 0.0  ;;  %1068 = vadd.xlane.f32.xlu0 %v1067_v18  ;;  %v1076_v22 = vsel %vm1066_vm0, %v1065_v17, 0.0 }
  0x61   : > { %1074 = vadd.xlane.f32.xlu1 %v1073_v19  ;;  %4412 = vmatmul.mubr.msk.bf16.vlgmr.msra.gmra.mrb[0].mxu1 %vm6199_vm1, %v1061_v10 }
  0x62   : > { %4416 = vmatpush3.bf16.msra.mxu1 %v4597_v24 }
  0x63   : > { %4404 = vmatpush3.bf16.msra.mxu0 %v1061_v10 }
  0x64   : > { %1071 = vadd.xlane.f32.xlu0 %v1070_v20 }
  0x65   : > { %1077 = vadd.xlane.f32.xlu1 %v1076_v22 }
  0x66   : > { %4406 = vmatmul.mubr.msk.bf16.vlgmr.msra.gmra.mrb[0].mxu0 %vm1066_vm0, %v5040_v21 }
  0x67   : > { %4425 = vmatprep.mubr.msk.bf16.mxu0 %vm1066_vm0, %v4256_v11 }
  0x76   : > { %1033 = vperm.xlu1 %4593, %v1018_v48  }
  0x7a   : > { %1036 = vperm.xlu1 %4593, %v1019_v49  }
  0x7e   : > { %1039 = vperm.xlu1 %4593, %v1020_v50  }
  0xed   : > { %v1069_v26 = vpop.xlane.xlu0 %1068 }
  0xee   : > { %v1075_v25 = vpop.xlane.xlu1 %1074  ;;  %v1079_v32 = vmax.f32 %v1069_v26, 1.0 }
  0xef   : > { %v1081_v29 = vmax.f32 %v1075_v25, 1.0 }
  0xf1   : > { %v1072_v28 = vpop.xlane.xlu0 %1071  ;;  %4606 = vrcp.f32 %v1081_v29 }
  0xf2   : > { %v1078_v27 = vpop.xlane.xlu1 %1077  ;;  %v1080_v31 = vmax.f32 %v1072_v28, 1.0 }
  0xf3   : > { %v1082_v30 = vmax.f32 %v1078_v27, 1.0 }
  0xf5   : > { %4608 = vrcp.f32 %v1082_v30 }
  0xf6   : > { %4610 = vrcp.f32 %v1080_v31 }
  0xf7   : > { %4612 = vrcp.f32 %v1079_v32  ;;  %v1017_v32 = vld [vmem:[%s5055_s26] sm:$0xff]  ;;  %s6258_s26 = sld [smem:[#allocation20_spill]] }
  0xfb   : > { %v4607_v33 = vpop.eup %4606 }
  0xff   : > { %v4609_v34 = vpop.eup %4608 }
 0x100   : > { %v4611_v36 = vpop.eup %4610 }
 0x101   : > { %v4613_v39 = vpop.eup %4612 }
 0x139   : > { %v4407_v35 = vpop.f32.mrb[0].mxu0 }
 0x13a   : > { %v1137_v37 = vpop.f32.mrb[1].mxu0  ;;  %v1154_v40 = vmul.f32 %v4607_v33, %v4407_v35  ;;  %v5088_v33 = vpop.permute.xlu1 %1033 }
 0x13b   : > { %v4408_v38 = vpop.f32.mrb[2].mxu0  ;;  %v1152_v43 = vmul.f32 %v4613_v39, %v1137_v37 }
 0x13c   : > { %v1155_v41 = vmul.f32 %v4609_v34, %v4408_v38  ;;  %v1140_v42 = vpop.f32.mrb[3].mxu0  ;;  %v4271_v38 = vld [vmem:[#allocation2] ss:$0 sm:$0xff] }
 0x13d   : > { %v1153_v44 = vmul.f32 %v4611_v36, %v1140_v42  ;;  %v1022_v36 = vlaneseq }
 0x13e   : > { %v1157_v45 = vpack.c.bf16 %v1155_v41, %v1154_v40  ;;  %v5090_v34 = vpop.permute.xlu1 %1036 }
 0x13f   : > { %v1156_v46 = vpack.c.bf16 %v1153_v44, %v1152_v43  ;;  %v5094_v40 = vand.u32 127, %v1022_v36  ;;  %v6207_v44 = vmov 0.0  }
 0x141   : > { %4417 = vmatprep.mubr.msk.bf16.mxu1 %vm6199_vm1, %v1156_v46  ;;  %vm1042_vm6 = vcmp.eq.s32.totalorder %v5088_v33, %v5094_v40  ;;  %vm1043_vm7 = vcmp.eq.s32.totalorder %v5090_v34, %v5094_v40 }
 0x142   : > { %4418 = vmatmul.mubr.msk.bf16.vlgmr.msra.gmra.mrb[0].mxu1 %vm6199_vm1, %v1157_v45  ;;  %v5092_v37 = vpop.permute.xlu1 %1039  ;;  %v5107_v45 = vsel %vm1042_vm6, 1.0, %v6207_v44  ;;  %v5118_v49 = vsel %vm1043_vm7, 1.0, %v6207_v44 }
 0x143   : > { %vm1044_vm9 = vcmp.eq.s32.totalorder %v5092_v37, %v5094_v40 }
 0x215   : > { %v4419_v52 = vpop.f32.mrb[0].mxu1 }
 0x216   : > { %v1270_v53 = vpop.f32.mrb[1].mxu1  ;;  %v1294_v54 = vadd.f32 %v4419_v52, %v4266_v51  ;;  %v1521_v52 = vsel %vm6200_vm8, %v5107_v45, 0.0 }
 0x217   : > { %v1292_v55 = vadd.f32 %v4266_v51, %v1270_v53  ;;  %v4420_v56 = vpop.f32.mrb[2].mxu1 }
 0x218   : > { %v1295_v57 = vadd.f32 %v4420_v56, %v4266_v51  ;;  %v1273_v58 = vpop.f32.mrb[3].mxu1  ;;  %v1302_v62 = vmul.f32 0.1, %v1294_v54  ;;  %vm1298_vm5 = vcmp.ge.f32.partialorder %v1294_v54, 0.0  ;;  %v1523_v56 = vsel %vm6200_vm8, %v5118_v49, 0.0 }
 0x219   : > { %v1300_v59 = vmul.f32 0.1, %v1292_v55  ;;  %v1293_v60 = vadd.f32 %v4266_v51, %v1273_v58  ;;  %vm1296_vm2 = vcmp.ge.f32.partialorder %v1292_v55, 0.0 }
 0x21a   : > { %vm1299_vm3 = vcmp.ge.f32.partialorder %v1295_v57, 0.0  ;;  %v1303_v61 = vmul.f32 0.1, %v1295_v57  ;;  %v5071_v4 = vsel %vm1298_vm5, %v1294_v54, %v1302_v62  ;;  %v5129_v54 = vsel %vm1044_vm9, 1.0, %v6207_v44 }
 0x21b   : > { %vm1297_vm4 = vcmp.ge.f32.partialorder %v1293_v60, 0.0  ;;  %v1301_v63 = vmul.f32 0.1, %v1293_v60  ;;  %v5063_v0 = vsel %vm1296_vm2, %v1292_v55, %v1300_v59  ;;  %v1379_v24 = vmul.f32 %v4270_v7, %v5071_v4 }
 0x21c   : > { %v5065_v1 = vsel %vm1299_vm3, %v1295_v57, %v1303_v61  ;;  %v1377_v17 = vmul.f32 %v4270_v7, %v5063_v0  ;;  %v1525_v59 = vsel %vm6200_vm8, %v5129_v54, 0.0 }
 0x21d   : > { %v5067_v2 = vsel %vm1297_vm4, %v1293_v60, %v1301_v63  ;;  %v1309_v5 = vpack.c.bf16 %v5065_v1, %v5071_v4  ;;  %v1380_v20 = vmul.f32 %v4270_v7, %v5065_v1 }
 0x21e   : > { %v1308_v3 = vpack.c.bf16 %v5067_v2, %v5063_v0 }
 0x220   : > { %4421 = vmatprep.subr.bf16.mxu0 %v1308_v3 }
 0x221   : > { %4422 = vmatpush3.bf16.msra.mxu0 %v1308_v3 }
 0x222   : > { %4423 = vmatprep.subr.bf16.mxu0 %v1309_v5 }
 0x225   : > { %4424 = vmatpush3.bf16.msra.mxu0 %v1309_v5 }
 0x228   : > { %4426 = vmatmul.mubr.msk.bf16.vlgmr.msra.gmra.mrb[4].mxu0 %vm1066_vm0, %v5040_v21  ;;  %v1378_v21 = vmul.f32 %v4270_v7, %v5067_v2 }
 0x2fb   : > { %v4427_v10 = vpop.f32.mrb[4].mxu0 }
 0x2fc   : > { %v1344_v11 = vpop.f32.mrb[5].mxu0  ;;  %v1368_v14 = vmul.f32 %v4427_v10, %v4269_v6 }
 0x2fd   : > { %v1366_v15 = vmul.f32 %v4269_v6, %v1344_v11  ;;  %v4428_v16 = vpop.f32.mrb[6].mxu0 }
 0x2fe   : > { %v1369_v18 = vmul.f32 %v4428_v16, %v4269_v6  ;;  %v1347_v19 = vpop.f32.mrb[7].mxu0  ;;  %v1383_v27 = vadd.f32 %v1379_v24, %v1368_v14 }
 0x2ff   : > { %v1367_v22 = vmul.f32 %v4269_v6, %v1347_v19  ;;  %v1381_v23 = vadd.f32 %v1377_v17, %v1366_v15 }
 0x300   : > { %v1384_v25 = vadd.f32 %v1380_v20, %v1369_v18  ;;  %v1391_v30 = vsel %vm1066_vm0, %v1383_v27, 0.0 }
 0x301   : > { %v1385_v26 = vsel %vm1066_vm0, %v1381_v23, 0.0  ;;  %v1382_v29 = vadd.f32 %v1378_v21, %v1367_v22  ;;  %v5148_v23 = vshrl.u32 %v1022_v36, 7 }
 0x302   : > { %1386 = vadd.xlane.f32.xlu0 %v1385_v26  ;;  %v1394_v28 = vsel %vm1066_vm0, %v1384_v25, 0.0 }
 0x303   : > { %1395 = vadd.xlane.f32.xlu1 %v1394_v28  ;;  %v1388_v31 = vsel %vm1066_vm0, %v1382_v29, 0.0  ;;  %v5151_v25 = vsub.s32 0, %v5148_v23  ;;  %v5154_v21 = vadd.s32 24, %v5148_v23  ;;  %v5161_v27 = vadd.s32 16, %v5148_v23  ;;  %v5167_v29 = vld [vmem:[%s5158_s7] ss:$0 sm:$0xff] }
 0x304   : > { %vm6203_vm3 = vcmp.eq.s32.totalorder %v5092_v37, %v5167_v29 }
 0x305   : > { %vm6204_vm11 = vcmp.lt.s32.totalorder %v5094_v40, %v5154_v21  ;;  %vm1474_vm2 = vcmp.lt.s32.totalorder %v5094_v40, %v5161_v27 }
 0x306   : > { %1392 = vadd.xlane.f32.xlu0 %v1391_v30 }
 0x307   : > { %1389 = vadd.xlane.f32.xlu1 %v1388_v31 }
 0x31c   : > { %1030 = vperm.xlu0 %4592, %v1017_v32  }
 0x38f   : > { %v1387_v35 = vpop.xlane.xlu0 %1386 }
 0x390   : > { %v1396_v42 = vpop.xlane.xlu1 %1395  ;;  %v5101_v43 = vadd.f32 %v4271_v38, %v1387_v35 }
 0x391   : > { %v5113_v48 = vadd.f32 %v4271_v38, %v1396_v42 }
 0x392   : > { %4614 = vtanh.f32 %v5101_v43 }
 0x393   : > { %v1393_v39 = vpop.xlane.xlu0 %1392 }
 0x394   : > { %v5096_v41 = vadd.f32 %v4271_v38, %v1393_v39  ;;  %v1390_v50 = vpop.xlane.xlu1 %1389 }
 0x395   : > { %v5133_v57 = vadd.f32 %v4271_v38, %v1390_v50 }
 0x396   : > { %1456 = vperm.xlu1 %4593, %v5096_v41  }
 0x397   : > { %4616 = vtanh.f32 %v5133_v57 }
 0x398   : > { %4618 = vtanh.f32 %v5096_v41 }
 0x399   : > { %4620 = vtanh.f32 %v5113_v48 }
 0x39a   : > { %1446 = vperm.xlu1 %4593, %v5101_v43  }
 0x39b   : > { %v5109_v46 = vpop.permute.xlu0 %1030 }
 0x39c   : > { %vm1041_vm10 = vcmp.eq.s32.totalorder %v5109_v46, %v5094_v40  ;;  %v4615_v50 = vpop.eup %4614 }
 0x39d   : > { %v5121_v51 = vsel %vm1041_vm10, 1.0, %v6207_v44  ;;  %vm1472_vm10 = vcmp.lt.s32.totalorder %v5094_v40, %v5148_v23 }
 0x39e   : > { %v1520_v53 = vsel %vm6200_vm8, %v5121_v51, 0.0  ;;  %1461 = vperm.xlu1 %4593, %v5113_v48  }
 0x39f   : > { %v1522_v55 = vadd.f32 %v1521_v52, %v1520_v53  ;;  %v5207_v52 = vadd.s32 8, %v5148_v23 }
 0x3a1   : > { %v1524_v58 = vadd.f32 %v1523_v56, %v1522_v55  ;;  %v4617_v55 = vpop.eup %4616 }
 0x3a2   : > { %1451 = vperm.xlu1 %4593, %v5133_v57   ;;  %v4619_v56 = vpop.eup %4618 }
 0x3a3   : > { %v1526_v60 = vadd.f32 %v1525_v59, %v1524_v58  ;;  %v4598_v58 = vld [vmem:[%s4869_s24] sm:$0xff]   ;;  %v4621_v59 = vpop.eup %4620 }
 0x3a4   : > { %4437 = vmatprep.subr.bf16.mxu0 %v4598_v58 }
 0x3a5   : > { %v1527_v61 = vrot.slane %v1526_v60, 4  ;;  %4438 = vmatpush3.bf16.msra.mxu0 %v4598_v58 }
 0x3a7   : > { %v1528_v62 = vadd.f32 %v1527_v61, %v1526_v60  ;;  %v4599_v60 = vld [vmem:[%s4869_s24 + $0x8] sm:$0xff]  }
 0x3a8   : > { %4439 = vmatprep.subr.bf16.mxu0 %v4599_v60 }
 0x3a9   : > { %v1529_v63 = vrot.slane %v1528_v62, 2  ;;  %4440 = vmatpush3.bf16.msra.mxu0 %v4599_v60 }
 0x3ab   : > { %v1530_v3 = vadd.f32 %v1529_v63, %v1528_v62 }
 0x3ad   : > { %v1531_v5 = vrot.slane %v1530_v3, 1 }
 0x3af   : > { %v1532_v6 = vadd.f32 %v1531_v5, %v1530_v3 }
 0x3b1   : > { %v1533_v7 = vmul.f32 0.5, %v1532_v6 }
 0x3b3   : > { %v1534_v10 = vceil.f32 %v1533_v7 }
 0x3b5   : > { %v1535_v11 = vmul.f32 %v5121_v51, %v1534_v10  ;;  %v1536_v15 = vmul.f32 %v5107_v45, %v1534_v10  ;;  %v1537_v17 = vmul.f32 %v5118_v49, %v1534_v10  ;;  %v1538_v39 = vmul.f32 %v5129_v54, %v1534_v10 }
 0x3b7   : > { %v1539_v14 = vsel %vm6200_vm8, %v1535_v11, 0.0  ;;  %v1542_v16 = vsel %vm6200_vm8, %v1536_v15, 0.0  ;;  %v1545_v18 = vsel %vm6200_vm8, %v1537_v17, 0.0  ;;  %v1548_v42 = vsel %vm6200_vm8, %v1538_v39, 0.0 }
 0x3b8   : > { %1540 = vadd.xlane.f32.xlu0 %v1539_v14 }
 0x3bc   : > { %1543 = vadd.xlane.f32.xlu0 %v1542_v16 }
 0x3c0   : > { %1546 = vadd.xlane.f32.xlu0 %v1545_v18 }
 0x3cb   : > { %1408 = vxpose.xlu1.b32.start [1/4] (short) (narrow) %v5101_v43, 8 }
 0x3cf   : > { %1409 = vxpose.xlu1.b32.cont [2/4] (short) (narrow) %v5133_v57, 8 }
 0x3d3   : > { %1410 = vxpose.xlu1.b32.cont [3/4] (short) (narrow) %v5096_v41, 8 }
 0x3d7   : > { %1411 = vxpose.xlu1.b32.end [4/4] (short) (narrow) %v5113_v48, 8 }
 0x415   : > { %v1457_v19 = vpop.permute.xlu1 %1456 }
 0x419   : > { %v1447_v20 = vpop.permute.xlu1 %1446 }
 0x41d   : > { %v1462_v22 = vpop.permute.xlu1 %1461 }
 0x421   : > { %v1452_v24 = vpop.permute.xlu1 %1451 }
 0x445   : > { %v1541_v61 = vpop.xlane.xlu0 %1540 }
 0x449   : > { %v1544_v62 = vpop.xlane.xlu0 %1543 }
 0x44b   : > { %v1424_v26 = vpop.trf.xlu1 }
 0x44c   : > { %v1443_v28 = vrot.slane %v1424_v26, %v5151_v25 }
 0x44d   : > { %v1547_v63 = vpop.xlane.xlu0 %1546 }
 0x44e   : > { %vm1467_vm12 = vcmp.gt.f32.partialorder %v1443_v28, %v1462_v22  ;;  %vm1471_vm13 = vcmp.eq.f32.partialorder %v1443_v28, %v1462_v22  ;;  %vm1470_vm15 = vcmp.eq.f32.partialorder %v1443_v28, %v1457_v19  ;;  %vm1466_vm5 = vcmp.gt.f32.partialorder %v1443_v28, %v1457_v19 }
 0x44f   : > { %vm1479_vm14 = vmand %vm1471_vm13, %vm6204_vm11  ;;  %vm1468_vm9 = vcmp.eq.f32.partialorder %v1443_v28, %v1447_v20  ;;  %vm6205_vm13 = vcmp.eq.s32.totalorder %v5090_v34, %v5167_v29 }
 0x450   : > { %vm1483_vm4 = vmor %vm1467_vm12, %vm1479_vm14  ;;  %vm1464_vm14 = vcmp.gt.f32.partialorder %v1443_v28, %v1447_v20 }
 0x451   : > { %vm1491_vm6 = vmand %vm1483_vm4, %vm6203_vm3 }
 0x452   : > { %v4275_v30 = vsel %vm1491_vm6, 1.0, %v6207_v44  ;;  %vm1478_vm7 = vmand %vm1470_vm15, %vm1474_vm2  ;;  %vm6206_vm6 = vcmp.eq.s32.totalorder %v5109_v46, %v5167_v29 }
 0x453   : > { %v1516_v31 = vsel %vm1066_vm0, %v4275_v30, 0.0  ;;  %vm1482_vm12 = vmor %vm1466_vm5, %vm1478_vm7  ;;  %vm1469_vm7 = vcmp.eq.f32.partialorder %v1443_v28, %v1452_v24 }
 0x454   : > { %1517 = vadd.xlane.f32.xlu1 %v1516_v31  ;;  %vm1490_vm4 = vmand %vm1482_vm12, %vm6205_vm13 }
 0x455   : > { %v4274_v32 = vsel %vm1490_vm4, 1.0, %v6207_v44  ;;  %vm1476_vm15 = vmand %vm1468_vm9, %vm1472_vm10  ;;  %vm1465_vm9 = vcmp.gt.f32.partialorder %v1443_v28, %v1452_v24  ;;  %vm6201_vm4 = vcmp.eq.s32.totalorder %v5088_v33, %v5167_v29 }
 0x456   : > { %v1513_v35 = vsel %vm1066_vm0, %v4274_v32, 0.0  ;;  %vm1480_vm1 = vmor %vm1464_vm14, %vm1476_vm15  ;;  %v4804_v32 = vmov 1985246804  }
 0x457   : > { %1514 = vadd.xlane.f32.xlu0 %v1513_v35  ;;  %vm1488_vm5 = vmand %vm1480_vm1, %vm6206_vm6  ;;  %vm6202_vm1 = vcmp.lt.s32.totalorder %v5094_v40, %v5207_v52  ;;  %v1639_v35 = vunpack.c.l.s4 %v4804_v32 }
 0x458   : > { %v4272_v36 = vsel %vm1488_vm5, 1.0, %v6207_v44  ;;  %vm1477_vm12 = vmand %vm1469_vm7, %vm6202_vm1 }
 0x459   : > { %v1507_v38 = vsel %vm1066_vm0, %v4272_v36, 0.0  ;;  %vm1481_vm14 = vmor %vm1465_vm9, %vm1477_vm12 }
 0x45a   : > { %vm1489_vm15 = vmand %vm1481_vm14, %vm6201_vm4 }
 0x45b   : > { %1508 = vadd.xlane.f32.xlu0 %v1507_v38  ;;  %v4273_v43 = vsel %vm1489_vm15, 1.0, %v6207_v44  ;;  %v1640_v38 = vunpack.c.0.s8 %v1639_v35 }
 0x45c   : > { %v1510_v53 = vsel %vm1066_vm0, %v4273_v43, 0.0 }
 0x45f   : > { %1549 = vadd.xlane.f32.xlu0 %v1548_v42  ;;  %v5270_v42 = vsub.s32 %v1640_v38, %v5148_v23 }
 0x475   : > { %1601 = vperm.xlu0 %4592, %v4615_v50  }
 0x494   : > { %1511 = vadd.xlane.f32.xlu0 %v1510_v53 }
 0x4aa   : > { %1606 = vperm.xlu0 %4592, %v4617_v55  }
 0x4ae   : > { %1611 = vperm.xlu0 %4592, %v4619_v56  }
 0x4b2   : > { %1616 = vperm.xlu0 %4592, %v4621_v59  }
 0x4e1   : > { %v1518_v10 = vpop.xlane.xlu1 %1517 }
 0x4e4   : > { %v1515_v57 = vpop.xlane.xlu0 %1514 }
 0x4e5   : > { %vm1553_vm9 = vcmp.lt.f32.partialorder %v1515_v57, %v1547_v63 }
 0x4e6   : > { %v5235_v11 = vsel %vm1553_vm9, 1.0, %v6207_v44 }
 0x4e8   : > { %v1509_v3 = vpop.xlane.xlu0 %1508 }
 0x4e9   : > { %vm1551_vm5 = vcmp.lt.f32.partialorder %v1509_v3, %v1541_v61 }
 0x4ea   : > { %v5227_v41 = vsel %vm1551_vm5, 1.0, %v6207_v44 }
 0x4eb   : > { %1563 = vxpose.xlu0.b32.start [1/4] (short) (narrow) %v5227_v41, 8 }
 0x4ec   : > { %v1550_v48 = vpop.xlane.xlu0 %1549 }
 0x4ed   : > { %vm1554_vm12 = vcmp.lt.f32.partialorder %v1518_v10, %v1550_v48 }
 0x4ee   : > { %v5241_v17 = vsel %vm1554_vm12, 1.0, %v6207_v44 }
 0x4ef   : > { %v1628_v39 = vpack.c.bf16 %v5241_v17, %v5235_v11 }
 0x4f1   : > { %v1658_v56 = vrot.slane %v1628_v39, %v5270_v42 }
 0x4f3   : > { %v1666_v63 = vmul.bf16 %v1658_v56, %v5028_v13 }
 0x4f4   : > { %v1602_v5 = vpop.permute.xlu0 %1601 }
 0x4f5   : > { %v1619_v14 = vmul.f32 %v1602_v5, %v5063_v0 }
 0x4f7   : > { %v5244_v18 = vmul.f32 %v5227_v41, %v1619_v14 }
 0x521   : > { %v1512_v6 = vpop.xlane.xlu0 %1511 }
 0x522   : > { %vm1552_vm7 = vcmp.lt.f32.partialorder %v1512_v6, %v1544_v62 }
 0x523   : > { %v5231_v7 = vsel %vm1552_vm7, 1.0, %v6207_v44 }
 0x524   : > { %1564 = vxpose.xlu0.b32.cont [2/4] (short) (narrow) %v5231_v7, 8  ;;  %v1627_v50 = vpack.c.bf16 %v5231_v7, %v5227_v41 }
 0x526   : > { %v1644_v59 = vrot.slane %v1627_v50, %v5270_v42 }
 0x528   : > { %1565 = vxpose.xlu0.b32.cont [3/4] (short) (narrow) %v5235_v11, 8  ;;  %v1664_v48 = vmul.bf16 %v1644_v59, %v5022_v9 }
 0x529   : > { %v1607_v15 = vpop.permute.xlu0 %1606 }
 0x52a   : > { %v1620_v16 = vmul.f32 %v1607_v15, %v5067_v2 }
 0x52c   : > { %v5247_v19 = vmul.f32 %v5231_v7, %v1620_v16  ;;  %1566 = vxpose.xlu0.b32.end [4/4] (short) (narrow) %v5241_v17, 8 }
 0x52d   : > { %v1612_v20 = vpop.permute.xlu0 %1611 }
 0x52e   : > { %v1847_v0 = vpack.c.bf16 %v5247_v19, %v5244_v18  ;;  %v1621_v22 = vmul.f32 %v1612_v20, %v5071_v4  ;;  %v4803_v4 = vmov 839922192  }
 0x52f   : > { %v1632_v31 = vunpack.c.l.s4 %v4803_v4 }
 0x530   : > { %4429 = vmatprep.subr.bf16.mxu1 %v1847_v0  ;;  %4441 = vmatprep.mubr.msk.bf16.mxu0 %vm1066_vm0, %v1847_v0  ;;  %v5256_v26 = vmul.f32 %v5235_v11, %v1621_v22 }
 0x531   : > { %4430 = vmatpush3.bf16.msra.mxu1 %v1847_v0  ;;  %v1617_v2 = vpop.permute.xlu0 %1616  ;;  %v1633_v36 = vunpack.c.0.s8 %v1632_v31 }
 0x532   : > { %v1622_v24 = vmul.f32 %v1617_v2, %v5065_v1 }
 0x533   : > { %v5265_v1 = vsub.s32 %v1633_v36, %v5148_v23 }
 0x534   : > { %v5259_v28 = vmul.f32 %v5241_v17, %v1622_v24  ;;  %v4600_v24 = vld [vmem:[%s4864_s19] sm:$0xff]  }
 0x535   : > { %v1651_v55 = vrot.slane %v1628_v39, %v5265_v1  ;;  %v1637_v58 = vrot.slane %v1627_v50, %v5265_v1  ;;  %4445 = vmatprep.subr.bf16.mxu0 %v4600_v24 }
 0x536   : > { %v1848_v30 = vpack.c.bf16 %v5259_v28, %v5256_v26 }
 0x537   : > { %v1665_v62 = vmul.bf16 %v1651_v55, %v5026_v12  ;;  %v1663_v3 = vmul.bf16 %v1637_v58, %v5020_v8 }
 0x538   : > { %4431 = vmatprep.subr.bf16.mxu1 %v1848_v30  ;;  %4442 = vmatmul.mubr.msk.bf16.vlgmr.msra.gmra.mrb[8].mxu0 %vm1066_vm0, %v1848_v30 }
 0x539   : > { %4432 = vmatpush3.bf16.msra.mxu1 %v1848_v30  ;;  %4446 = vmatpush3.bf16.msra.mxu0 %v4600_v24  ;;  %v4601_v30 = vld [vmem:[%s4864_s19 + $0x8] sm:$0xff]  }
 0x53a   : > { %4447 = vmatprep.subr.bf16.mxu0 %v4601_v30 }
 0x53d   : > { %4448 = vmatpush3.bf16.msra.mxu0 %v4601_v30 }
 0x5a0   : > { %v5274_v43 = vpop.trf.xlu0 }
 0x5a1   : > { %v1667_v53 = vpack.c.bf16 %v5274_v43, %v5274_v43  ;;  %vm2301_vm9 = vcmp.gt.f32.partialorder %v5274_v43, 0.5 }
 0x5a3   : > { %v1669_v60 = vpack.i.b16 %v1667_v53, %v1667_v53 }
 0x5a5   : > { %v1674_v61 = vrot.slane %v1669_v60, %v5151_v25 }
 0x5a7   : > { %v4280_v57 = vcombine.low %v1674_v61, %v1674_v61 }
 0x5a9   : > { %v5287_v5 = vmul.bf16 %v4280_v57, %v1663_v3  ;;  %v5289_v6 = vmul.bf16 %v4280_v57, %v1664_v48  ;;  %v5291_v10 = vmul.bf16 %v4280_v57, %v1665_v62  ;;  %v5293_v14 = vmul.bf16 %v4280_v57, %v1666_v63 }
 0x5ab   : > { %v4281_v15 = vcombine.low %v5287_v5, %v5289_v6  ;;  %v5299_v12 = vcombine.low %v5291_v10, %v5293_v14  ;;  %v1849_v8 = vunpack.c.l.bf16 %v5287_v5  ;;  %v1850_v13 = vunpack.c.l.bf16 %v5289_v6 }
 0x5ac   : > { %v1851_v20 = vunpack.c.l.bf16 %v5291_v10  ;;  %v1852_v22 = vunpack.c.l.bf16 %v5293_v14 }
 0x5ad   : > { %4433 = vmatprep.mubr.msk.bf16.mxu1 %vm1066_vm0, %v4281_v15  ;;  %v1853_v9 = vsel %vm1066_vm0, %v1849_v8, 0.0  ;;  %v1856_v16 = vsel %vm1066_vm0, %v1850_v13, 0.0 }
 0x5ae   : > { %4434 = vmatmul.mubr.msk.bf16.vlgmr.msra.gmra.mrb[4].mxu1 %vm1066_vm0, %v5299_v12  ;;  %1854 = vadd.xlane.f32.xlu1 %v1853_v9  ;;  %v1859_v0 = vsel %vm1066_vm0, %v1851_v20, 0.0  ;;  %v1862_v2 = vsel %vm1066_vm0, %v1852_v22, 0.0  ;;  %v4293_v9 = vld [vmem:[%s4874_s30] ss:$0 sm:$0xff] }
 0x5af   : > { %4457 = vmatprep.mubr.msk.bf16.mxu1 %vm1066_vm0, %v4281_v15 }
 0x5b2   : > { %1857 = vadd.xlane.f32.xlu1 %v1856_v16 }
 0x5b6   : > { %1860 = vadd.xlane.f32.xlu1 %v1859_v0 }
 0x5ba   : > { %1863 = vadd.xlane.f32.xlu1 %v1862_v2 }
 0x63b   : > { %v1855_v4 = vpop.xlane.xlu1 %1854 }
 0x63c   : > { %v1865_v36 = vmax.f32 %v1855_v4, 1.0 }
 0x63e   : > { %4622 = vrcp.f32 %v1865_v36 }
 0x63f   : > { %v1858_v31 = vpop.xlane.xlu1 %1857 }
 0x640   : > { %v1866_v50 = vmax.f32 %v1858_v31, 1.0 }
 0x643   : > { %v1861_v32 = vpop.xlane.xlu1 %1860 }
 0x644   : > { %v1867_v38 = vmax.f32 %v1861_v32, 1.0 }
 0x646   : > { %4624 = vrcp.f32 %v1867_v38 }
 0x647   : > { %v1864_v35 = vpop.xlane.xlu1 %1863 }
 0x648   : > { %v1868_v39 = vmax.f32 %v1864_v35, 1.0  ;;  %v4623_v53 = vpop.eup %4622 }
 0x64a   : > { %4626 = vrcp.f32 %v1868_v39 }
 0x64b   : > { %4628 = vrcp.f32 %v1866_v50 }
 0x650   : > { %v4625_v56 = vpop.eup %4624 }
 0x654   : > { %v4627_v59 = vpop.eup %4626 }
 0x655   : > { %v4629_v61 = vpop.eup %4628 }
 0x681   : > { %v4435_v55 = vpop.f32.mrb[4].mxu1 }
 0x682   : > { %v1923_v58 = vpop.f32.mrb[5].mxu1  ;;  %v1940_v62 = vmul.f32 %v4625_v56, %v4435_v55  ;;  %v4296_v56 = vld [vmem:[%s6243_s6] ss:$0 sm:$0xff] }
 0x683   : > { %v4436_v60 = vpop.f32.mrb[6].mxu1  ;;  %v1938_v3 = vmul.f32 %v4623_v53, %v1923_v58  ;;  %v4297_v58 = vld [vmem:[%s6244_s12] ss:$0 sm:$0xff] }
 0x684   : > { %v1941_v63 = vmul.f32 %v4627_v59, %v4436_v60  ;;  %v1926_v57 = vpop.f32.mrb[7].mxu1 }
 0x685   : > { %v1939_v48 = vmul.f32 %v4629_v61, %v1926_v57 }
 0x686   : > { %v1943_v15 = vpack.c.bf16 %v1941_v63, %v1940_v62 }
 0x687   : > { %v1942_v8 = vpack.c.bf16 %v1939_v48, %v1938_v3 }
 0x689   : > { %4449 = vmatprep.mubr.msk.bf16.mxu0 %vm1066_vm0, %v1942_v8 }
 0x68a   : > { %4450 = vmatmul.mubr.msk.bf16.vlgmr.msra.gmra.mrb[8].mxu0 %vm1066_vm0, %v1943_v15 }
 0x75d   : > { %v4451_v13 = vpop.f32.mrb[8].mxu0 }
 0x75e   : > { %v2071_v16 = vpop.f32.mrb[9].mxu0  ;;  %v2095_v20 = vadd.f32 %v4451_v13, %v4293_v9 }
 0x75f   : > { %v2093_v0 = vadd.f32 %v4293_v9, %v2071_v16  ;;  %v4452_v22 = vpop.f32.mrb[10].mxu0 }
 0x760   : > { %v2096_v2 = vadd.f32 %v4452_v22, %v4293_v9  ;;  %v2074_v24 = vpop.f32.mrb[11].mxu0  ;;  %v2103_v32 = vmul.f32 0.1, %v2095_v20  ;;  %vm2099_vm7 = vcmp.ge.f32.partialorder %v2095_v20, 0.0 }
 0x761   : > { %v2101_v30 = vmul.f32 0.1, %v2093_v0  ;;  %v2094_v4 = vadd.f32 %v4293_v9, %v2074_v24  ;;  %vm2097_vm14 = vcmp.ge.f32.partialorder %v2093_v0, 0.0 }
 0x762   : > { %vm2100_vm15 = vcmp.ge.f32.partialorder %v2096_v2, 0.0  ;;  %v2104_v31 = vmul.f32 0.1, %v2096_v2  ;;  %v5326_v53 = vsel %vm2099_vm7, %v2095_v20, %v2103_v32 }
 0x763   : > { %vm2098_vm5 = vcmp.ge.f32.partialorder %v2094_v4, 0.0  ;;  %v2102_v35 = vmul.f32 0.1, %v2094_v4  ;;  %v5318_v36 = vsel %vm2097_vm14, %v2093_v0, %v2101_v30  ;;  %v2180_v62 = vmul.f32 %v4297_v58, %v5326_v53 }
 0x764   : > { %v5320_v38 = vsel %vm2100_vm15, %v2096_v2, %v2104_v31  ;;  %v2178_v15 = vmul.f32 %v4297_v58, %v5318_v36  ;;  %v2332_v31 = vmul.f32 %v5227_v41, %v5121_v51 }
 0x765   : > { %v5322_v39 = vsel %vm2098_vm5, %v2094_v4, %v2102_v35  ;;  %v2110_v55 = vpack.c.bf16 %v5320_v38, %v5326_v53  ;;  %v2181_v22 = vmul.f32 %v4297_v58, %v5320_v38  ;;  %v2333_v4 = vmul.f32 %v5231_v7, %v5107_v45 }
 0x766   : > { %v2109_v50 = vpack.c.bf16 %v5322_v39, %v5318_v36  ;;  %v2334_v35 = vmul.f32 %v5235_v11, %v5118_v49 }
 0x767   : > { %v2337_v32 = vsel %vm6200_vm8, %v2333_v4, 0.0 }
 0x768   : > { %4453 = vmatprep.subr.bf16.mxu1 %v2109_v50 }
 0x769   : > { %4454 = vmatpush3.bf16.msra.mxu1 %v2109_v50  ;;  %v2336_v50 = vsel %vm6200_vm8, %v2332_v31, 0.0 }
 0x76a   : > { %4455 = vmatprep.subr.bf16.mxu1 %v2110_v55 }
 0x76d   : > { %4456 = vmatpush3.bf16.msra.mxu1 %v2110_v55  ;;  %v2338_v55 = vadd.f32 %v2337_v32, %v2336_v50 }
 0x770   : > { %4458 = vmatmul.mubr.msk.bf16.vlgmr.msra.gmra.mrb[8].mxu1 %vm1066_vm0, %v5299_v12  ;;  %v2179_v12 = vmul.f32 %v4297_v58, %v5322_v39  ;;  %v2335_v58 = vmul.f32 %v5241_v17, %v5129_v54 }
 0x843   : > { %v4459_v59 = vpop.f32.mrb[8].mxu1 }
 0x844   : > { %v2169_v60 = vmul.f32 %v4459_v59, %v4296_v56  ;;  %v2145_v61 = vpop.f32.mrb[9].mxu1 }
 0x845   : > { %v2167_v63 = vmul.f32 %v4296_v56, %v2145_v61  ;;  %v4460_v57 = vpop.f32.mrb[10].mxu1 }
 0x846   : > { %v2148_v3 = vpop.f32.mrb[11].mxu1  ;;  %v2184_v48 = vadd.f32 %v2180_v62, %v2169_v60  ;;  %v2170_v16 = vmul.f32 %v4460_v57, %v4296_v56  ;;  %v2341_v60 = vsel %vm6200_vm8, %v2335_v58, 0.0 }
 0x847   : > { %v2168_v8 = vmul.f32 %v4296_v56, %v2148_v3  ;;  %v2182_v13 = vadd.f32 %v2178_v15, %v2167_v63  ;;  %v2339_v56 = vsel %vm6200_vm8, %v2334_v35, 0.0  ;;  %v4298_v63 = vld [vmem:[#allocation3] ss:$0 sm:$0xff] }
 0x848   : > { %v2192_v9 = vsel %vm1066_vm0, %v2184_v48, 0.0  ;;  %v2185_v24 = vadd.f32 %v2181_v22, %v2170_v16  ;;  %v2340_v59 = vadd.f32 %v2339_v56, %v2338_v55 }
 0x849   : > { %2193 = vadd.xlane.f32.xlu1 %v2192_v9  ;;  %v2186_v20 = vsel %vm1066_vm0, %v2182_v13, 0.0  ;;  %v2183_v0 = vadd.f32 %v2179_v12, %v2168_v8 }
 0x84a   : > { %v2195_v30 = vsel %vm1066_vm0, %v2185_v24, 0.0  ;;  %v2342_v62 = vadd.f32 %v2341_v60, %v2340_v59 }
 0x84b   : > { %v2189_v2 = vsel %vm1066_vm0, %v2183_v0, 0.0 }
 0x84c   : > { %v2343_v48 = vrot.slane %v2342_v62, 4 }
 0x84d   : > { %2187 = vadd.xlane.f32.xlu1 %v2186_v20 }
 0x84e   : > { %v2344_v13 = vadd.f32 %v2343_v48, %v2342_v62 }
 0x850   : > { %v2345_v20 = vrot.slane %v2344_v13, 2 }
 0x851   : > { %2190 = vadd.xlane.f32.xlu1 %v2189_v2 }
 0x852   : > { %v2346_v0 = vadd.f32 %v2345_v20, %v2344_v13 }
 0x854   : > { %v2347_v22 = vrot.slane %v2346_v0, 1 }
 0x855   : > { %2196 = vadd.xlane.f32.xlu1 %v2195_v30 }
 0x856   : > { %v2348_v2 = vadd.f32 %v2347_v22, %v2346_v0 }
 0x858   : > { %v2349_v24 = vmul.f32 0.5, %v2348_v2 }
 0x85a   : > { %v5363_v30 = vceil.f32 %v2349_v24 }
 0x85c   : > { %v2352_v4 = vmul.f32 %v5107_v45, %v5363_v30  ;;  %v2353_v32 = vmul.f32 %v5118_v49, %v5363_v30  ;;  %v2351_v50 = vmul.f32 %v5121_v51, %v5363_v30 }
 0x85e   : > { %v2358_v31 = vsel %vm6200_vm8, %v2352_v4, 0.0  ;;  %v2361_v35 = vsel %vm6200_vm8, %v2353_v32, 0.0  ;;  %v2355_v55 = vsel %vm6200_vm8, %v2351_v50, 0.0  ;;  %vm2287_vm8 = vcmp.gt.f32.partialorder %v5235_v11, 0.5  ;;  %v4602_v50 = vld [vmem:[%s6251_s11] sm:$0xff]  }
 0x85f   : > { %v2354_v4 = vmul.f32 %v5129_v54, %v5363_v30  ;;  %4469 = vmatprep.subr.bf16.mxu0 %v4602_v50  ;;  %v4603_v30 = vld [vmem:[%s6251_s11 + $0x8] sm:$0xff]   ;;  %s4679_s11 = sshll.u32 %s4806_s9, 4  ;;  %s4680_s11 = int_to_ptr.vmem [resolvable:$false] %s4679_s11 }
 0x860   : > { %4470 = vmatpush3.bf16.msra.mxu0 %v4602_v50  ;;  %s4681_s12 = scalar_lea.vmem %s4680_s11, 64 }
 0x861   : > { %4471 = vmatprep.subr.bf16.mxu0 %v4603_v30 }
 0x864   : > { %4472 = vmatpush3.bf16.msra.mxu0 %v4603_v30 }
 0x8d6   : > { %v2194_v61 = vpop.xlane.xlu1 %2193 }
 0x8d7   : > { %v5357_v8 = vadd.f32 %v4298_v63, %v2194_v61  ;;  %v2302_v61 = vsel %vm2301_vm9, 1, %v6209_v47 }
 0x8da   : > { %v2188_v57 = vpop.xlane.xlu1 %2187 }
 0x8db   : > { %v5354_v3 = vadd.f32 %v4298_v63, %v2188_v57  ;;  %v2306_v57 = vrot.slane %v2302_v61, %v5151_v25 }
 0x8dd   : > { %2247 = vperm.xlu1 %4593, %v5354_v3   ;;  %vm5388_vm1 = vcmp.eq.s32.totalorder %v2306_v57, 1 }
 0x8de   : > { %v2191_v15 = vpop.xlane.xlu1 %2190 }
 0x8df   : > { %v2206_v9 = vadd.f32 %v4298_v63, %v2191_v15 }
 0x8e1   : > { %2257 = vperm.xlu1 %4593, %v5357_v8   ;;  %2252 = vperm.xlu0 %4592, %v2206_v9   ;;  %4630 = vtanh.f32 %v2206_v9 }
 0x8e2   : > { %v2197_v12 = vpop.xlane.xlu1 %2196  ;;  %4632 = vtanh.f32 %v5354_v3 }
 0x8e3   : > { %v5360_v16 = vadd.f32 %v4298_v63, %v2197_v12  ;;  %4634 = vtanh.f32 %v5357_v8 }
 0x8e5   : > { %2262 = vperm.xlu1 %4593, %v5360_v16   ;;  %4636 = vtanh.f32 %v5360_v16 }
 0x8eb   : > { %v4631_v56 = vpop.eup %4630 }
 0x8ec   : > { %v4633_v32 = vpop.eup %4632 }
 0x900   : > { %2359 = vadd.xlane.f32.xlu0 %v2358_v31 }
 0x904   : > { %2362 = vadd.xlane.f32.xlu0 %v2361_v35  ;;  %v4635_v35 = vpop.eup %4634 }
 0x90e   : > { %2209 = vxpose.xlu1.b32.start [1/4] (short) (narrow) %v5354_v3, 8 }
 0x912   : > { %2210 = vxpose.xlu1.b32.cont [2/4] (short) (narrow) %v2206_v9, 8 }
 0x916   : > { %2211 = vxpose.xlu1.b32.cont [3/4] (short) (narrow) %v5357_v8, 8 }
 0x91a   : > { %2212 = vxpose.xlu1.b32.end [4/4] (short) (narrow) %v5360_v16, 8 }
 0x941   : > { %2356 = vadd.xlane.f32.xlu1 %v2355_v55  ;;  %v4637_v55 = vpop.eup %4636 }
 0x952   : > { %2426 = vperm.xlu1 %4593, %v4631_v56  }
 0x95c   : > { %v2248_v58 = vpop.permute.xlu1 %2247 }
 0x960   : > { %v2258_v59 = vpop.permute.xlu1 %2257  ;;  %v2253_v12 = vpop.permute.xlu0 %2252 }
 0x964   : > { %v2263_v60 = vpop.permute.xlu1 %2262 }
 0x98d   : > { %v2360_v56 = vpop.xlane.xlu0 %2359 }
 0x98e   : > { %v2225_v62 = vpop.trf.xlu1 }
 0x98f   : > { %v2244_v63 = vrot.slane %v2225_v62, %v5151_v25 }
 0x991   : > { %vm2267_vm12 = vcmp.gt.f32.partialorder %v2244_v63, %v2258_v59  ;;  %vm2271_vm14 = vcmp.eq.f32.partialorder %v2244_v63, %v2258_v59  ;;  %vm2269_vm4 = vcmp.eq.f32.partialorder %v2244_v63, %v2248_v58  ;;  %vm2265_vm3 = vcmp.gt.f32.partialorder %v2244_v63, %v2248_v58  ;;  %v2363_v58 = vpop.xlane.xlu0 %2362 }
 0x992   : > { %vm2275_vm15 = vmand %vm2271_vm14, %vm1474_vm2 }
 0x993   : > { %vm2279_vm5 = vmor %vm2267_vm12, %vm2275_vm15  ;;  %vm2285_vm15 = vcmp.gt.f32.partialorder %v5227_v41, 0.5 }
 0x994   : > { %vm2283_vm7 = vmand %vm2279_vm5, %vm6205_vm13  ;;  %vm2272_vm5 = vcmp.eq.f32.partialorder %v2244_v63, %v2263_v60  ;;  %vm2268_vm13 = vcmp.gt.f32.partialorder %v2244_v63, %v2263_v60 }
 0x995   : > { %vm2299_vm9 = vmand %vm2283_vm7, %vm2287_vm8 }
 0x996   : > { %vm2310_vm11 = vmand %vm2299_vm9, %vm5388_vm1 }
 0x997   : > { %v4301_v15 = vsel %vm2310_vm11, 1.0, %v6207_v44  ;;  %vm2273_vm12 = vmand %vm2269_vm4, %vm1472_vm10  ;;  %vm6247_vm4 = vcmp.lt.s32.totalorder %v5094_v40, %v5154_v21 }
 0x998   : > { %v2326_v9 = vsel %vm1066_vm0, %v4301_v15, 0.0  ;;  %vm2277_vm14 = vmor %vm2265_vm3, %vm2273_vm12  ;;  %vm6248_vm12 = vcmp.eq.s32.totalorder %v5092_v37, %v5167_v29 }
 0x999   : > { %2327 = vadd.xlane.f32.xlu0 %v2326_v9  ;;  %vm2281_vm8 = vmand %vm2277_vm14, %vm6206_vm6 }
 0x99a   : > { %vm2297_vm7 = vmand %vm2281_vm8, %vm2285_vm15  ;;  %vm2288_vm8 = vcmp.gt.f32.partialorder %v5241_v17, 0.5  ;;  %vm2270_vm15 = vcmp.eq.f32.partialorder %v2244_v63, %v2253_v12 }
 0x99b   : > { %vm2308_vm11 = vmand %vm2297_vm7, %vm5388_vm1  ;;  %vm2266_vm7 = vcmp.gt.f32.partialorder %v2244_v63, %v2253_v12 }
 0x99c   : > { %v4299_v13 = vsel %vm2308_vm11, 1.0, %v6207_v44  ;;  %vm2276_vm9 = vmand %vm2272_vm5, %vm6247_vm4  ;;  %vm6249_vm5 = vcmp.lt.s32.totalorder %v5094_v40, %v5207_v52 }
 0x99d   : > { %v2320_v20 = vsel %vm1066_vm0, %v4299_v13, 0.0  ;;  %vm2280_vm3 = vmor %vm2268_vm13, %vm2276_vm9  ;;  %vm6250_vm9 = vcmp.eq.s32.totalorder %v5088_v33, %v5167_v29 }
 0x99e   : > { %2321 = vadd.xlane.f32.xlu0 %v2320_v20  ;;  %vm2284_vm14 = vmand %vm2280_vm3, %vm6248_vm12  ;;  %vm2286_vm12 = vcmp.gt.f32.partialorder %v5231_v7, 0.5 }
 0x99f   : > { %vm2300_vm6 = vmand %vm2284_vm14, %vm2288_vm8  ;;  %vm6252_vm8 = vcmask 15360  }
 0x9a0   : > { %vm2311_vm11 = vmand %vm2300_vm6, %vm5388_vm1  ;;  %v2364_v31 = vsel %vm6252_vm8, %v2354_v4, 0.0 }
 0x9a1   : > { %v4302_v0 = vsel %vm2311_vm11, 1.0, %v6207_v44  ;;  %vm2274_vm4 = vmand %vm2270_vm15, %vm6249_vm5 }
 0x9a2   : > { %v2329_v22 = vsel %vm1066_vm0, %v4302_v0, 0.0  ;;  %vm2278_vm13 = vmor %vm2266_vm7, %vm2274_vm4 }
 0x9a3   : > { %2330 = vadd.xlane.f32.xlu0 %v2329_v22  ;;  %vm2282_vm3 = vmand %vm2278_vm13, %vm6250_vm9 }
 0x9a4   : > { %vm2298_vm14 = vmand %vm2282_vm3, %vm2286_vm12 }
 0x9a5   : > { %vm2309_vm6 = vmand %vm2298_vm14, %vm5388_vm1 }
 0x9a6   : > { %v4300_v2 = vsel %vm2309_vm6, 1.0, %v6207_v44  ;;  %vm6257_vm3 = vmmov %vm6252_vm8 }
 0x9a7   : > { %v2323_v24 = vsel %vm1066_vm0, %v4300_v2, 0.0  ;;  %vm6260_vm12 = vmmov %vm6257_vm3 }
 0x9a8   : > { %2324 = vadd.xlane.f32.xlu0 %v2323_v24  ;;  %vm6261_vm14 = vmmov %vm6257_vm3 }
 0x9a9   : > { %vm6262_vm6 = vmmov %vm6257_vm3 }
 0x9aa   : > { %vm6263_vm8 = vmmov %vm6257_vm3 }
 0x9ac   : > { %2365 = vadd.xlane.f32.xlu0 %v2364_v31 }
 0x9c2   : > { %2421 = vperm.xlu0 %4592, %v4633_v32  }
 0x9c6   : > { %2431 = vperm.xlu0 %4592, %v4635_v35  }
 0x9ca   : > { %2436 = vperm.xlu0 %4592, %v4637_v55  }
 0x9ce   : > { %v2357_v3 = vpop.xlane.xlu1 %2356 }
 0x9d2   : > { %v2427_v13 = vpop.permute.xlu1 %2426 }
 0xa26   : > { %v2328_v59 = vpop.xlane.xlu0 %2327 }
 0xa27   : > { %vm2369_vm15 = vcmp.lt.f32.partialorder %v2328_v59, %v2363_v58 }
 0xa28   : > { %v4305_v48 = vsel %vm2369_vm15, 1.0, %v6207_v44 }
 0xa2b   : > { %v2322_v60 = vpop.xlane.xlu0 %2321 }
 0xa2c   : > { %vm2367_vm1 = vcmp.lt.f32.partialorder %v2322_v60, %v2357_v3 }
 0xa2d   : > { %v4303_v8 = vsel %vm2367_vm1, 1.0, %v6207_v44  ;;  %vm6264_vm1 = vmmov %vm6257_vm3 }
 0xa2e   : > { %v5439_v16 = vmul.f32 %v4303_v8, %v5227_v41  ;;  %v5449_v41 = vmul.f32 %v4305_v48, %v5235_v11  ;;  %vm6265_vm15 = vmmov %vm6264_vm1 }
 0xa30   : > { %v2331_v61 = vpop.xlane.xlu0 %2330  ;;  %2383 = vxpose.xlu1.b32.start [1/4] (short) (narrow) %v5439_v16, 8 }
 0xa35   : > { %v2325_v62 = vpop.xlane.xlu0 %2324 }
 0xa36   : > { %vm2368_vm7 = vcmp.lt.f32.partialorder %v2325_v62, %v2360_v56 }
 0xa37   : > { %v4304_v63 = vsel %vm2368_vm7, 1.0, %v6207_v44  ;;  %vm6266_vm7 = vmmov %vm6264_vm1 }
 0xa38   : > { %v5444_v57 = vmul.f32 %v4304_v63, %v5231_v7  ;;  %v2440_v7 = vmul.f32 %v2427_v13, %v5322_v39 }
 0xa39   : > { %v2366_v15 = vpop.xlane.xlu0 %2365 }
 0xa3a   : > { %vm2370_vm11 = vcmp.lt.f32.partialorder %v2331_v61, %v2366_v15  ;;  %2384 = vxpose.xlu1.b32.cont [2/4] (short) (narrow) %v5444_v57, 8  ;;  %v5463_v11 = vmul.f32 %v2440_v7, %v5444_v57 }
 0xa3b   : > { %v4306_v9 = vsel %vm2370_vm11, 1.0, %v6207_v44 }
 0xa3c   : > { %v5454_v12 = vmul.f32 %v4306_v9, %v5241_v17 }
 0xa3e   : > { %2385 = vxpose.xlu1.b32.cont [3/4] (short) (narrow) %v5449_v41, 8  ;;  %v2448_v35 = vpack.c.bf16 %v5454_v12, %v5449_v41 }
 0xa40   : > { %v2471_v58 = vrot.slane %v2448_v35, %v5265_v1  ;;  %v2478_v59 = vrot.slane %v2448_v35, %v5270_v42 }
 0xa41   : > { %v2422_v20 = vpop.permute.xlu0 %2421 }
 0xa42   : > { %v2439_v0 = vmul.f32 %v2422_v20, %v5318_v36  ;;  %2386 = vxpose.xlu1.b32.end [4/4] (short) (narrow) %v5454_v12, 8  ;;  %v2485_v62 = vmul.bf16 %v2471_v58, %v5291_v10  ;;  %v2486_v63 = vmul.bf16 %v2478_v59, %v5293_v14 }
 0xa44   : > { %v5460_v22 = vmul.f32 %v2439_v0, %v5439_v16 }
 0xa45   : > { %v2432_v2 = vpop.permute.xlu0 %2431 }
 0xa46   : > { %v2665_v24 = vpack.c.bf16 %v5463_v11, %v5460_v22  ;;  %v2441_v17 = vmul.f32 %v2432_v2, %v5326_v53  ;;  %v2447_v53 = vpack.c.bf16 %v5444_v57, %v5439_v16 }
 0xa48   : > { %4461 = vmatprep.subr.bf16.mxu1 %v2665_v24  ;;  %4473 = vmatprep.mubr.msk.bf16.mxu0 %vm1066_vm0, %v2665_v24  ;;  %v5471_v4 = vmul.f32 %v2441_v17, %v5449_v41  ;;  %v2457_v55 = vrot.slane %v2447_v53, %v5265_v1  ;;  %v2464_v56 = vrot.slane %v2447_v53, %v5270_v42 }
 0xa49   : > { %v2437_v39 = vpop.permute.xlu0 %2436  ;;  %4462 = vmatpush3.bf16.msra.mxu1 %v2665_v24 }
 0xa4a   : > { %v2442_v36 = vmul.f32 %v2437_v39, %v5320_v38  ;;  %v2483_v60 = vmul.bf16 %v2457_v55, %v5287_v5  ;;  %v2484_v61 = vmul.bf16 %v2464_v56, %v5289_v6  ;;  %v4604_v39 = vld [vmem:[%s6253_s4] sm:$0xff]  }
 0xa4b   : > { %4477 = vmatprep.subr.bf16.mxu0 %v4604_v39 }
 0xa4c   : > { %v5474_v31 = vmul.f32 %v2442_v36, %v5454_v12  ;;  %v4605_v36 = vld [vmem:[%s6253_s4 + $0x8] sm:$0xff]   ;;  %s6291_s4 = sld [smem:[#allocation25_spill]] }
 0xa4e   : > { %v2666_v32 = vpack.c.bf16 %v5474_v31, %v5471_v4 }
 0xa50   : > { %4463 = vmatprep.subr.bf16.mxu1 %v2666_v32  ;;  %4474 = vmatmul.mubr.msk.bf16.vlgmr.msra.gmra.mrb[12].mxu0 %vm1066_vm0, %v2666_v32 }
 0xa51   : > { %4464 = vmatpush3.bf16.msra.mxu1 %v2666_v32  ;;  %4478 = vmatpush3.bf16.msra.mxu0 %v4604_v39 }
 0xa52   : > { %4479 = vmatprep.subr.bf16.mxu0 %v4605_v36 }
 0xa55   : > { %4480 = vmatpush3.bf16.msra.mxu0 %v4605_v36 }
 0xab6   : > { %v5483_v38 = vpop.trf.xlu1 }
 0xab7   : > { %v2487_v50 = vpack.c.bf16 %v5483_v38, %v5483_v38 }
 0xab9   : > { %v2489_v30 = vpack.i.b16 %v2487_v50, %v2487_v50 }
 0xabb   : > { %v2494_v3 = vrot.slane %v2489_v30, %v5151_v25 }
 0xabd   : > { %v4307_v8 = vcombine.low %v2494_v3, %v2494_v3 }
 0xabf   : > { %v5496_v48 = vmul.bf16 %v4307_v8, %v2483_v60  ;;  %v5498_v15 = vmul.bf16 %v4307_v8, %v2484_v61  ;;  %v5500_v9 = vmul.bf16 %v4307_v8, %v2485_v62  ;;  %v5502_v13 = vmul.bf16 %v4307_v8, %v2486_v63 }
 0xac1   : > { %v4308_v20 = vcombine.low %v5496_v48, %v5498_v15  ;;  %v5508_v5 = vcombine.low %v5500_v9, %v5502_v13  ;;  %v2667_v6 = vunpack.c.l.bf16 %v5496_v48  ;;  %v2668_v14 = vunpack.c.l.bf16 %v5498_v15 }
 0xac2   : > { %v2669_v0 = vunpack.c.l.bf16 %v5500_v9  ;;  %v2670_v24 = vunpack.c.l.bf16 %v5502_v13 }
 0xac3   : > { %4465 = vmatprep.mubr.msk.bf16.mxu1 %vm1066_vm0, %v4308_v20  ;;  %v2671_v10 = vsel %vm1066_vm0, %v2667_v6, 0.0  ;;  %v2674_v7 = vsel %vm1066_vm0, %v2668_v14, 0.0 }
 0xac4   : > { %4466 = vmatmul.mubr.msk.bf16.vlgmr.msra.gmra.mrb[12].mxu1 %vm1066_vm0, %v5508_v5  ;;  %2672 = vadd.xlane.f32.xlu0 %v2671_v10  ;;  %v2677_v2 = vsel %vm1066_vm0, %v2669_v0, 0.0  ;;  %v2680_v17 = vsel %vm1066_vm0, %v2670_v24, 0.0  ;;  %v4320_v24 = vld [vmem:[%s6254_s22] ss:$0 sm:$0xff]  ;;  %s6259_s22 = sld [smem:[#allocation21_spill]] }
 0xac5   : > { %4489 = vmatprep.mubr.msk.bf16.mxu1 %vm1066_vm0, %v4308_v20 }
 0xac8   : > { %2675 = vadd.xlane.f32.xlu0 %v2674_v7 }
 0xacc   : > { %2678 = vadd.xlane.f32.xlu0 %v2677_v2 }
 0xad0   : > { %2681 = vadd.xlane.f32.xlu0 %v2680_v17 }
 0xb51   : > { %v2673_v32 = vpop.xlane.xlu0 %2672 }
 0xb52   : > { %v2683_v55 = vmax.f32 %v2673_v32, 1.0 }
 0xb54   : > { %4638 = vrcp.f32 %v2683_v55 }
 0xb55   : > { %v2676_v53 = vpop.xlane.xlu0 %2675 }
 0xb56   : > { %v2684_v58 = vmax.f32 %v2676_v53, 1.0 }
 0xb59   : > { %v2679_v35 = vpop.xlane.xlu0 %2678 }
 0xb5a   : > { %v2685_v30 = vmax.f32 %v2679_v35, 1.0 }
 0xb5c   : > { %4640 = vrcp.f32 %v2685_v30 }
 0xb5d   : > { %v2682_v50 = vpop.xlane.xlu0 %2681 }
 0xb5e   : > { %v2686_v56 = vmax.f32 %v2682_v50, 1.0  ;;  %v4639_v59 = vpop.eup %4638 }
 0xb60   : > { %4642 = vrcp.f32 %v2686_v56 }
 0xb61   : > { %4644 = vrcp.f32 %v2684_v58 }
 0xb66   : > { %v4641_v60 = vpop.eup %4640 }
 0xb6a   : > { %v4643_v61 = vpop.eup %4642 }
 0xb6b   : > { %v4645_v63 = vpop.eup %4644 }
 0xb97   : > { %v4467_v3 = vpop.f32.mrb[12].mxu1 }
 0xb98   : > { %v2741_v8 = vpop.f32.mrb[13].mxu1  ;;  %v2758_v20 = vmul.f32 %v4641_v60, %v4467_v3 }
 0xb99   : > { %v4468_v62 = vpop.f32.mrb[14].mxu1  ;;  %v2756_v14 = vmul.f32 %v4639_v59, %v2741_v8 }
 0xb9a   : > { %v2759_v6 = vmul.f32 %v4643_v61, %v4468_v62  ;;  %v2744_v10 = vpop.f32.mrb[15].mxu1 }
 0xb9b   : > { %v2757_v7 = vmul.f32 %v4645_v63, %v2744_v10 }
 0xb9c   : > { %v2761_v0 = vpack.c.bf16 %v2759_v6, %v2758_v20  ;;  %v3151_v20 = vmul.f32 %v5107_v45, %v5444_v57  ;;  %v3150_v6 = vmul.f32 %v5121_v51, %v5439_v16 }
 0xb9d   : > { %v2760_v2 = vpack.c.bf16 %v2757_v7, %v2756_v14  ;;  %v3152_v14 = vmul.f32 %v5118_v49, %v5449_v41 }
 0xb9e   : > { %v3155_v10 = vsel %vm6257_vm3, %v3151_v20, 0.0  ;;  %v3154_v7 = vsel %vm6260_vm12, %v3150_v6, 0.0  ;;  %vm6212_vm12 = vcmask 254976  }
 0xb9f   : > { %4481 = vmatprep.mubr.msk.bf16.mxu0 %vm1066_vm0, %v2760_v2  ;;  %v3153_v2 = vmul.f32 %v5129_v54, %v5454_v12 }
 0xba0   : > { %4482 = vmatmul.mubr.msk.bf16.vlgmr.msra.gmra.mrb[12].mxu0 %vm1066_vm0, %v2761_v0  ;;  %v3156_v0 = vadd.f32 %v3155_v10, %v3154_v7 }
 0xc73   : > { %v4483_v17 = vpop.f32.mrb[12].mxu0 }
 0xc74   : > { %v2889_v39 = vpop.f32.mrb[13].mxu0  ;;  %v2913_v36 = vadd.f32 %v4483_v17, %v4320_v24  ;;  %v3159_v17 = vsel %vm6262_vm6, %v3153_v2, 0.0 }
 0xc75   : > { %v2911_v32 = vadd.f32 %v4320_v24, %v2889_v39  ;;  %v4484_v53 = vpop.f32.mrb[14].mxu0 }
 0xc76   : > { %v2914_v35 = vadd.f32 %v4484_v53, %v4320_v24  ;;  %v2892_v50 = vpop.f32.mrb[15].mxu0  ;;  %v2921_v58 = vmul.f32 0.1, %v2913_v36  ;;  %vm2917_vm9 = vcmp.ge.f32.partialorder %v2913_v36, 0.0 }
 0xc77   : > { %v2919_v55 = vmul.f32 0.1, %v2911_v32  ;;  %v2912_v30 = vadd.f32 %v4320_v24, %v2892_v50  ;;  %vm2915_vm5 = vcmp.ge.f32.partialorder %v2911_v32, 0.0 }
 0xc78   : > { %vm2918_vm4 = vcmp.ge.f32.partialorder %v2914_v35, 0.0  ;;  %v2922_v56 = vmul.f32 0.1, %v2914_v35  ;;  %v5535_v62 = vsel %vm2917_vm9, %v2913_v36, %v2921_v58 }
 0xc79   : > { %vm2916_vm13 = vcmp.ge.f32.partialorder %v2912_v30, 0.0  ;;  %v2920_v59 = vmul.f32 0.1, %v2912_v30  ;;  %v5527_v3 = vsel %vm2915_vm5, %v2911_v32, %v2919_v55 }
 0xc7a   : > { %v5529_v60 = vsel %vm2918_vm4, %v2914_v35, %v2922_v56  ;;  %v4324_v56 = vld [vmem:[%s6259_s22] ss:$0 sm:$0xff] }
 0xc7b   : > { %6255 = vst [vmem:[#allocation29_spill] sm:$0xff] %v5529_v60  ;;  %v5531_v8 = vsel %vm2916_vm13, %v2912_v30, %v2920_v59  ;;  %v2928_v63 = vpack.c.bf16 %v5529_v60, %v5535_v62  ;;  %v4323_v30 = vld [vmem:[%s6258_s26] ss:$0 sm:$0xff]  ;;  %v2996_v6 = vmul.f32 %v4324_v56, %v5527_v3  ;;  %v2999_v7 = vmul.f32 %v4324_v56, %v5529_v60  ;;  %s6028_s26 = sand.u32 1, %s4761_s16  }
 0xc7c   : > { %6256 = vst [vmem:[#allocation30_spill] sm:$0xff] %v5531_v8  ;;  %v2927_v61 = vpack.c.bf16 %v5531_v8, %v5527_v3  ;;  %s6215_s22 = sshll.u32 %s6028_s26, 1  ;;  %s4033_s6 = scalar_lea.sflag [#allocation8], %s6028_s26 }
 0xc7e   : > { %4485 = vmatprep.subr.bf16.mxu1 %v2927_v61 }
 0xc7f   : > { %4486 = vmatpush3.bf16.msra.mxu1 %v2927_v61 }
 0xc80   : > { %4487 = vmatprep.subr.bf16.mxu1 %v2928_v63 }
 0xc83   : > { %4488 = vmatpush3.bf16.msra.mxu1 %v2928_v63 }
 0xc86   : > { %4490 = vmatmul.mubr.msk.bf16.vlgmr.msra.gmra.mrb[16].mxu1 %vm1066_vm0, %v5508_v5  ;;  %v3157_v5 = vsel %vm6261_vm14, %v3152_v14, 0.0  ;;  %vm3119_vm14 = vcmp.gt.f32.partialorder %v5483_v38, 0.5 }
 0xc87   : > { %v3158_v24 = vadd.f32 %v3157_v5, %v3156_v0 }
 0xc89   : > { %v3160_v39 = vadd.f32 %v3159_v17, %v3158_v24  ;;  %v2997_v24 = vmul.f32 %v4324_v56, %v5531_v8 }
 0xc8b   : > { %v3161_v36 = vrot.slane %v3160_v39, 4 }
 0xc8d   : > { %v3162_v32 = vadd.f32 %v3161_v36, %v3160_v39 }
 0xc8f   : > { %v3163_v53 = vrot.slane %v3162_v32, 2 }
 0xc91   : > { %v3164_v35 = vadd.f32 %v3163_v53, %v3162_v32 }
 0xc93   : > { %v3165_v50 = vrot.slane %v3164_v35, 1 }
 0xc95   : > { %v3166_v55 = vadd.f32 %v3165_v50, %v3164_v35  ;;  %v2998_v50 = vmul.f32 %v4324_v56, %v5535_v62 }
 0xc97   : > { %v3167_v58 = vmul.f32 0.5, %v3166_v55 }
 0xc99   : > { %v3168_v0 = vceil.f32 %v3167_v58 }
 0xc9b   : > { %v3169_v35 = vmul.f32 %v5121_v51, %v3168_v0  ;;  %v3171_v51 = vmul.f32 %v5118_v49, %v3168_v0 }
 0xc9d   : > { %v3179_v56 = vsel %vm6265_vm15, %v3171_v51, 0.0 }
 0xd59   : > { %v4491_v59 = vpop.f32.mrb[16].mxu1 }
 0xd5a   : > { %v2963_v61 = vpop.f32.mrb[17].mxu1  ;;  %v2987_v39 = vmul.f32 %v4491_v59, %v4323_v30 }
 0xd5b   : > { %v2985_v63 = vmul.f32 %v4323_v30, %v2963_v61  ;;  %v4492_v20 = vpop.f32.mrb[18].mxu1  ;;  %v3173_v61 = vsel %vm6263_vm8, %v3169_v35, 0.0 }
 0xd5c   : > { %v2988_v10 = vmul.f32 %v4492_v20, %v4323_v30  ;;  %v2966_v14 = vpop.f32.mrb[19].mxu1  ;;  %v3002_v58 = vadd.f32 %v2998_v50, %v2987_v39  ;;  %v3172_v20 = vmul.f32 %v5129_v54, %v3168_v0  ;;  %v2506_v54 = vrot.slane %v5483_v38, %v5151_v25 }
 0xd5d   : > { %v2986_v2 = vmul.f32 %v4323_v30, %v2966_v14  ;;  %v3000_v5 = vadd.f32 %v2996_v6, %v2985_v63  ;;  %v3170_v30 = vmul.f32 %v5107_v45, %v3168_v0  ;;  %v1686_v45 = vrot.slane %v5274_v43, %v5151_v25 }
 0xd5e   : > { %v3003_v17 = vadd.f32 %v2999_v7, %v2988_v10  ;;  %v3010_v59 = vsel %vm1066_vm0, %v3002_v58, 0.0  ;;  %v3182_v6 = vsel %vm6266_vm7, %v3172_v20, 0.0  ;;  %v4674_v10 = vld [vmem:[%s5158_s7] ss:$0 sm:$0xff]  ;;  %v5582_v7 = vsub.s32 1, %v5148_v23  ;;  %s4805_s7 = smov 32  }
 0xd5f   : > { %v3004_v36 = vsel %vm1066_vm0, %v3000_v5, 0.0  ;;  %v3001_v32 = vadd.f32 %v2997_v24, %v2986_v2  ;;  %v3176_v63 = vsel %vm6264_vm1, %v3170_v30, 0.0  ;;  %vm1057_vm11 = vcmp.eq.s32.totalorder %v5148_v23, %v4674_v10 }
 0xd60   : > { %3005 = vadd.xlane.f32.xlu0 %v3004_v36  ;;  %v3013_v53 = vsel %vm1066_vm0, %v3003_v17, 0.0  ;;  %v5576_v14 = vsel %vm1057_vm11, 1.0, %v6207_v44  ;;  %v4325_v17 = vld [vmem:[#allocation4] ss:$0 sm:$0xff]  ;;  %vm6268_vm7 = vcmp.eq.s32.totalorder %v5090_v34, %v5167_v29 }
 0xd61   : > { %3014 = vadd.xlane.f32.xlu1 %v3013_v53  ;;  %v3007_v55 = vsel %vm1066_vm0, %v3001_v32, 0.0  ;;  %v5579_v49 = vmul.f32 %v5576_v14, %v1686_v45  ;;  %v5592_v43 = vmul.f32 %v5576_v14, %v2506_v54 }
 0xd63   : > { %v5588_v0 = vrot.slane %v5579_v49, %v5582_v7  ;;  %v5597_v2 = vrot.slane %v5592_v43, %v5582_v7  ;;  %v5603_v5 = vrot.slane %v5579_v49, %v5151_v25  ;;  %v5609_v24 = vrot.slane %v5592_v43, %v5151_v25 }
 0xd64   : > { %3008 = vadd.xlane.f32.xlu0 %v3007_v55 }
 0xd65   : > { %3174 = vadd.xlane.f32.xlu1 %v3173_v61 }
 0xd68   : > { %3011 = vadd.xlane.f32.xlu0 %v3010_v59 }
 0xd69   : > { %3177 = vadd.xlane.f32.xlu1 %v3176_v63 }
 0xd6d   : > { %3180 = vadd.xlane.f32.xlu1 %v3179_v56 }
 0xd71   : > { %3183 = vadd.xlane.f32.xlu1 %v3182_v6 }
 0xd82   : > { %1716 = vbcast.lane.b32.xlu1 %v5588_v0, 256 }
 0xd86   : > { %1720 = vbcast.lane.b32.xlu1 %v5588_v0, 264 }
 0xd8a   : > { %2535 = vbcast.lane.b32.xlu1 %v5597_v2, 256 }
 0xd8e   : > { %2539 = vbcast.lane.b32.xlu1 %v5597_v2, 264 }
 0xd92   : > { %1697 = vbcast.lane.b32.xlu1 %v5603_v5, 256 }
 0xd96   : > { %1724 = vbcast.lane.b32.xlu1 %v5588_v0, 272 }
 0xd9a   : > { %2516 = vbcast.lane.b32.xlu1 %v5609_v24, 256 }
 0xd9e   : > { %2520 = vbcast.lane.b32.xlu1 %v5609_v24, 264 }
 0xded   : > { %v3006_v39 = vpop.xlane.xlu0 %3005 }
 0xdee   : > { %v3015_v36 = vpop.xlane.xlu1 %3014  ;;  %v3023_v30 = vadd.f32 %v4325_v17, %v3006_v39 }
 0xdef   : > { %v3026_v32 = vadd.f32 %v4325_v17, %v3015_v36 }
 0xdf1   : > { %4646 = vtanh.f32 %v3026_v32  ;;  %v3009_v53 = vpop.xlane.xlu0 %3008 }
 0xdf2   : > { %v3024_v35 = vadd.f32 %v4325_v17, %v3009_v53  ;;  %v5613_v50 = vpop.xlane.xlu1 %3174 }
 0xdf4   : > { %4648 = vtanh.f32 %v3024_v35 }
 0xdf5   : > { %v3012_v55 = vpop.xlane.xlu0 %3011  ;;  %4650 = vtanh.f32 %v3023_v30 }
 0xdf6   : > { %v3025_v58 = vadd.f32 %v4325_v17, %v3012_v55  ;;  %v5615_v61 = vpop.xlane.xlu1 %3177 }
 0xdf8   : > { %3075 = vperm.xlu0 %4592, %v3025_v58   ;;  %4652 = vtanh.f32 %v3025_v58 }
 0xdfa   : > { %v5617_v59 = vpop.xlane.xlu1 %3180 }
 0xdfb   : > { %v4647_v63 = vpop.eup %4646 }
 0xdfc   : > { %3254 = vperm.xlu1 %4593, %v4647_v63   ;;  %3065 = vperm.xlu0 %4592, %v3023_v30  }
 0xdfe   : > { %v4649_v51 = vpop.eup %4648  ;;  %v5619_v56 = vpop.xlane.xlu1 %3183 }
 0xe00   : > { %3244 = vperm.xlu1 %4593, %v4649_v51   ;;  %3080 = vperm.xlu0 %4592, %v3026_v32  }
 0xe02   : > { %v1717_v20 = vpop.permute.xlu1 %1716 }
 0xe03   : > { %vm1734_vm5 = vcmp.gt.f32.partialorder %v1717_v20, 0.5 }
 0xe04   : > { %3070 = vperm.xlu0 %4592, %v3024_v35   ;;  %v1801_v6 = vsel %vm1734_vm5, %v5244_v18, 0.0 }
 0xe05   : > { %v1818_v54 = vsel %vm1066_vm0, %v1801_v6, 0.0 }
 0xe06   : > { %v5623_v10 = vpop.permute.xlu1 %1720 }
 0xe07   : > { %vm1735_vm4 = vcmp.gt.f32.partialorder %v5623_v10, 0.5 }
 0xe08   : > { %v1802_v45 = vsel %vm1735_vm4, %v5247_v19, 0.0 }
 0xe09   : > { %v1819_v17 = vsel %vm1066_vm0, %v1802_v45, 0.0 }
 0xe0a   : > { %v1820_v39 = vadd.f32 %v1819_v17, %v1818_v54  ;;  %v5631_v36 = vpop.permute.xlu1 %2535  ;;  %v1758_v17 = vsel %vm1734_vm5, %v5244_v18, -3.4028235e+38  ;;  %vm3105_vm5 = vcmp.gt.f32.partialorder %v5449_v41, 0.5 }
 0xe0b   : > { %vm6213_vm13 = vcmp.gt.f32.partialorder %v5631_v36, 0.5  ;;  %v5654_v60 = vsel %vm1066_vm0, %v1758_v17, -inf }
 0xe0c   : > { %v2619_v53 = vsel %vm6213_vm13, %v5460_v22, 0.0 }
 0xe0d   : > { %v2636_v51 = vsel %vm1066_vm0, %v2619_v53, 0.0 }
 0xe0e   : > { %v5637_v55 = vpop.permute.xlu1 %2539 }
 0xe0f   : > { %vm6214_vm9 = vcmp.gt.f32.partialorder %v5637_v55, 0.5 }
 0xe10   : > { %v2620_v63 = vsel %vm6214_vm9, %v5463_v11, 0.0 }
 0xe11   : > { %v2637_v6 = vsel %vm1066_vm0, %v2620_v63, 0.0 }
 0xe12   : > { %v5645_v45 = vadd.f32 %v2637_v6, %v2636_v51  ;;  %v5647_v54 = vpop.permute.xlu1 %1697 }
 0xe16   : > { %v1725_v44 = vpop.permute.xlu1 %1724 }
 0xe17   : > { %vm1736_vm3 = vcmp.gt.f32.partialorder %v1725_v44, 0.5  ;;  %v1689_v44 = vsel %vm6212_vm12, %v5579_v49, 0.0 }
 0xe18   : > { %v1760_v47 = vsel %vm1736_vm3, %v5256_v26, -3.4028235e+38  ;;  %v1803_v8 = vsel %vm1736_vm3, %v5256_v26, 0.0 }
 0xe19   : > { %v5657_v53 = vsel %vm1066_vm0, %v1760_v47, -inf  ;;  %v1821_v63 = vsel %vm1066_vm0, %v1803_v8, 0.0  ;;  %v2508_v47 = vsel %vm6212_vm12, %v5592_v43, 0.0  ;;  %v4651_v8 = vpop.eup %4650  ;;  %v6267_v43 = vmov 0  }
 0xe1a   : > { %v1778_v51 = vmax.f32 %v5654_v60, %v5657_v53  ;;  %v5662_v6 = vadd.f32 %v1821_v63, %v1820_v39  ;;  %v4653_v20 = vpop.eup %4652 }
 0xe22   : > { %3027 = vxpose.xlu0.b32.start [1/4] (short) (narrow) %v3023_v30, 8 }
 0xe26   : > { %3028 = vxpose.xlu0.b32.cont [2/4] (short) (narrow) %v3024_v35, 8 }
 0xe2a   : > { %3029 = vxpose.xlu0.b32.cont [3/4] (short) (narrow) %v3025_v58, 8  ;;  %v3120_v58 = vsel %vm3119_vm14, 1, %v6267_v43 }
 0xe2b   : > { %v3124_v63 = vrot.slane %v3120_v58, %v5151_v25 }
 0xe2d   : > { %vm5683_vm12 = vcmp.eq.s32.totalorder %v3124_v63, 1 }
 0xe2e   : > { %3030 = vxpose.xlu0.b32.end [4/4] (short) (narrow) %v3026_v32, 8 }
 0xe5b   : > { %1690 = vadd.xlane.f32.xlu0 %v1689_v44 }
 0xe5f   : > { %2509 = vadd.xlane.f32.xlu0 %v2508_v47 }
 0xe75   : > { %3239 = vperm.xlu0 %4592, %v4651_v8  }
 0xe77   : > { %v3076_v49 = vpop.permute.xlu0 %3075 }
 0xe79   : > { %3249 = vperm.xlu0 %4592, %v4653_v20   ;;  %v1759_v20 = vsel %vm1735_vm4, %v5247_v19, -3.4028235e+38 }
 0xe7b   : > { %v3066_v32 = vpop.permute.xlu0 %3065 }
 0xe7d   : > { %1701 = vbcast.lane.b32.xlu0 %v5603_v5, 264 }
 0xe7f   : > { %v3081_v35 = vpop.permute.xlu0 %3080 }
 0xe81   : > { %1728 = vbcast.lane.b32.xlu0 %v5588_v0, 280  ;;  %v6271_v0 = vmov 0.0  }
 0xe83   : > { %v3071_v39 = vpop.permute.xlu0 %3070 }
 0xe85   : > { %2547 = vbcast.lane.b32.xlu0 %v5597_v2, 280 }
 0xe89   : > { %1709 = vbcast.lane.b32.xlu0 %v5603_v5, 280 }
 0xea2   : > { %v3043_v30 = vpop.trf.xlu0 }
 0xea3   : > { %v3062_v17 = vrot.slane %v3043_v30, %v5151_v25 }
 0xea5   : > { %vm3085_vm6 = vcmp.gt.f32.partialorder %v3062_v17, %v3076_v49  ;;  %vm3089_vm8 = vcmp.eq.f32.partialorder %v3062_v17, %v3076_v49  ;;  %vm3087_vm3 = vcmp.eq.f32.partialorder %v3062_v17, %v3066_v32  ;;  %vm3083_vm13 = vcmp.gt.f32.partialorder %v3062_v17, %v3066_v32 }
 0xea6   : > { %vm3093_vm1 = vmand %vm3089_vm8, %vm1474_vm2  ;;  %vm6272_vm8 = vcmp.eq.s32.totalorder %v5109_v46, %v5167_v29  ;;  %v1776_v32 = vsel %vm1066_vm0, %v1759_v20, -inf }
 0xea7   : > { %vm3097_vm15 = vmor %vm3085_vm6, %vm3093_vm1 }
 0xea8   : > { %vm3101_vm11 = vmand %vm3097_vm15, %vm6268_vm7  ;;  %vm3103_vm15 = vcmp.gt.f32.partialorder %v5439_v16, 0.5  ;;  %vm3090_vm7 = vcmp.eq.f32.partialorder %v3062_v17, %v3081_v35 }
 0xea9   : > { %vm3117_vm14 = vmand %vm3101_vm11, %vm3105_vm5  ;;  %vm3086_vm5 = vcmp.gt.f32.partialorder %v3062_v17, %v3081_v35 }
 0xeaa   : > { %vm3128_vm9 = vmand %vm3117_vm14, %vm5683_vm12  ;;  %vm6274_vm14 = vcmp.eq.s32.totalorder %v5092_v37, %v5167_v29 }
 0xeab   : > { %v4328_v27 = vsel %vm3128_vm9, 1.0, %v6271_v0  ;;  %vm3091_vm2 = vmand %vm3087_vm3, %vm1472_vm10  ;;  %vm6273_vm10 = vcmp.lt.s32.totalorder %v5094_v40, %v5154_v21 }
 0xeac   : > { %v3144_v34 = vsel %vm1066_vm0, %v4328_v27, 0.0  ;;  %vm3095_vm6 = vmor %vm3083_vm13, %vm3091_vm2 }
 0xead   : > { %3145 = vadd.xlane.f32.xlu1 %v3144_v34  ;;  %vm3099_vm1 = vmand %vm3095_vm6, %vm6272_vm8  ;;  %vm3106_vm6 = vcmp.gt.f32.partialorder %v5454_v12, 0.5  ;;  %vm3088_vm8 = vcmp.eq.f32.partialorder %v3062_v17, %v3071_v39 }
 0xeae   : > { %vm3115_vm11 = vmand %vm3099_vm1, %vm3103_vm15  ;;  %vm3084_vm15 = vcmp.gt.f32.partialorder %v3062_v17, %v3071_v39 }
 0xeaf   : > { %vm3126_vm9 = vmand %vm3115_vm11, %vm5683_vm12 }
 0xeb0   : > { %v4326_v44 = vsel %vm3126_vm9, 1.0, %v6271_v0  ;;  %vm3094_vm3 = vmand %vm3090_vm7, %vm6273_vm10  ;;  %vm6275_vm7 = vcmp.lt.s32.totalorder %v5094_v40, %v5207_v52  ;;  %vm6276_vm10 = vcmp.eq.s32.totalorder %v5088_v33, %v5167_v29 }
 0xeb1   : > { %v3138_v23 = vsel %vm1066_vm0, %v4326_v44, 0.0  ;;  %vm3098_vm13 = vmor %vm3086_vm5, %vm3094_vm3  ;;  %v5780_v44 = vpop.permute.xlu1 %2516 }
 0xeb2   : > { %3139 = vadd.xlane.f32.xlu1 %v3138_v23  ;;  %vm3102_vm2 = vmand %vm3098_vm13, %vm6274_vm14  ;;  %vm3104_vm13 = vcmp.gt.f32.partialorder %v5444_v57, 0.5 }
 0xeb3   : > { %vm3118_vm1 = vmand %vm3102_vm2, %vm3106_vm6  ;;  %vm6277_vm6 = vcmp.gt.f32.partialorder %v5637_v55, 0.5 }
 0xeb4   : > { %vm3129_vm11 = vmand %vm3118_vm1, %vm5683_vm12  ;;  %v2578_v39 = vsel %vm6277_vm6, %v5463_v11, -3.4028235e+38 }
 0xeb5   : > { %v4329_v46 = vsel %vm3129_vm11, 1.0, %v6271_v0  ;;  %vm3092_vm9 = vmand %vm3088_vm8, %vm6275_vm7  ;;  %v2595_v17 = vsel %vm1066_vm0, %v2578_v39, -inf  ;;  %v5782_v23 = vpop.permute.xlu1 %2520 }
 0xeb6   : > { %v3147_v21 = vsel %vm1066_vm0, %v4329_v46, 0.0  ;;  %vm3096_vm5 = vmor %vm3084_vm15, %vm3092_vm9  ;;  %vm6278_vm9 = vcmp.gt.f32.partialorder %v5631_v36, 0.5 }
 0xeb7   : > { %3148 = vadd.xlane.f32.xlu1 %v3147_v21  ;;  %vm3100_vm3 = vmand %vm3096_vm5, %vm6276_vm10 }
 0xeb8   : > { %vm3116_vm14 = vmand %vm3100_vm3, %vm3104_vm13  ;;  %vm6279_vm3 = vcmask 254976   ;;  %vm1730_vm13 = vcmp.gt.f32.partialorder %v5647_v54, 0.5 }
 0xeb9   : > { %vm3127_vm2 = vmand %vm3116_vm14, %vm5683_vm12  ;;  %v5784_v46 = vpop.permute.xlu1 %3254  ;;  %vm2550_vm14 = vcmp.gt.f32.partialorder %v5782_v23, 0.5 }
 0xeba   : > { %v4327_v37 = vsel %vm3127_vm2, 1.0, %v6271_v0  ;;  %vm2549_vm2 = vcmp.gt.f32.partialorder %v5780_v44, 0.5  ;;  %v2574_v44 = vsel %vm2550_vm14, %v5463_v11, -3.4028235e+38 }
 0xebb   : > { %v3141_v47 = vsel %vm1066_vm0, %v4327_v37, 0.0 }
 0xebc   : > { %3142 = vadd.xlane.f32.xlu1 %v3141_v47 }
 0xebd   : > { %v5786_v21 = vpop.permute.xlu1 %3244 }
 0xecd   : > { %2543 = vbcast.lane.b32.xlu1 %v5597_v2, 272 }
 0xee8   : > { %v5725_v40 = vpop.xlane.xlu0 %1690 }
 0xee9   : > { %v1831_v54 = vmax.f32 %v5725_v40, 1.0 }
 0xeeb   : > { %4654 = vrcp.f32 %v1831_v54 }
 0xeec   : > { %v5727_v52 = vpop.xlane.xlu0 %2509 }
 0xef4   : > { %v5729_v8 = vpop.permute.xlu0 %3239 }
 0xef8   : > { %v5731_v33 = vpop.permute.xlu0 %3249 }
 0xefc   : > { %v5733_v29 = vpop.permute.xlu0 %1701 }
 0xefd   : > { %vm1731_vm4 = vcmp.gt.f32.partialorder %v5733_v29, 0.5 }
 0xefe   : > { %v1755_v63 = vsel %vm1731_vm4, %v5247_v19, -3.4028235e+38  ;;  %v1798_v23 = vsel %vm1731_vm4, %v5247_v19, 0.0 }
 0xeff   : > { %v5773_v53 = vsel %vm1066_vm0, %v1755_v63, -inf }
 0xf00   : > { %v5738_v49 = vpop.permute.xlu0 %1728 }
 0xf01   : > { %vm1737_vm12 = vcmp.gt.f32.partialorder %v5738_v49, 0.5 }
 0xf02   : > { %v1761_v2 = vsel %vm1737_vm12, %v5259_v28, -3.4028235e+38 }
 0xf03   : > { %v1779_v35 = vsel %vm1066_vm0, %v1761_v2, -inf }
 0xf04   : > { %v1780_v43 = vmax.f32 %v1776_v32, %v1779_v35  ;;  %v5749_v58 = vpop.permute.xlu0 %2547 }
 0xf05   : > { %vm2556_vm8 = vcmp.gt.f32.partialorder %v5749_v58, 0.5 }
 0xf06   : > { %v5756_v10 = vmax.f32 %v1778_v51, %v1780_v43  ;;  %v2580_v30 = vsel %vm2556_vm8, %v5474_v31, -3.4028235e+38 }
 0xf07   : > { %v2598_v55 = vsel %vm1066_vm0, %v2580_v30, -inf }
 0xf08   : > { %v2599_v38 = vmax.f32 %v2595_v17, %v2598_v55  ;;  %v5766_v27 = vpop.permute.xlu0 %1709  ;;  %v1782_v29 = vrot.slane %v5756_v10, 4 }
 0xf09   : > { %vm1733_vm1 = vcmp.gt.f32.partialorder %v5766_v27, 0.5 }
 0xf0a   : > { %v1757_v60 = vsel %vm1733_vm1, %v5259_v28, -3.4028235e+38 }
 0xf0b   : > { %v5776_v51 = vsel %vm1066_vm0, %v1757_v60, -inf }
 0xf0c   : > { %v1767_v34 = vmax.f32 %v5773_v53, %v5776_v51 }
 0xf3a   : > { %v3146_v37 = vpop.xlane.xlu1 %3145 }
 0xf3b   : > { %vm3187_vm11 = vcmp.lt.f32.partialorder %v3146_v37, %v5617_v59 }
 0xf3f   : > { %v3140_v47 = vpop.xlane.xlu1 %3139 }
 0xf40   : > { %vm3185_vm15 = vcmp.lt.f32.partialorder %v3140_v47, %v5613_v50  ;;  %v2577_v50 = vsel %vm6278_vm9, %v5460_v22, -3.4028235e+38 }
 0xf41   : > { %v4330_v20 = vsel %vm3185_vm15, 1.0, %v6271_v0  ;;  %v2594_v59 = vsel %vm1066_vm0, %v2577_v50, -inf  ;;  %vm2607_vm15 = vcmp.gt.f32.partialorder %v5727_v52, 0.0 }
 0xf42   : > { %v5791_v2 = vmul.f32 %v4330_v20, %v5439_v16  ;;  %v4332_v16 = vsel %vm3187_vm11, 1.0, %v6271_v0 }
 0xf44   : > { %v3149_v32 = vpop.xlane.xlu1 %3148  ;;  %3201 = vxpose.xlu1.b32.start [1/4] (short) (narrow) %v5791_v2, 8 }
 0xf45   : > { %vm3188_vm5 = vcmp.lt.f32.partialorder %v3149_v32, %v5619_v56 }
 0xf46   : > { %v4333_v36 = vsel %vm3188_vm5, 1.0, %v6271_v0 }
 0xf47   : > { %v5818_v56 = vmul.f32 %v4333_v36, %v5454_v12 }
 0xf49   : > { %v3143_v35 = vpop.xlane.xlu1 %3142 }
 0xf4a   : > { %vm3186_vm7 = vcmp.lt.f32.partialorder %v3143_v35, %v5615_v61 }
 0xf4b   : > { %v4331_v39 = vsel %vm3186_vm7, 1.0, %v6271_v0 }
 0xf4c   : > { %v5798_v43 = vmul.f32 %v4331_v39, %v5444_v57  ;;  %v5810_v57 = vmul.f32 %v4332_v16, %v5449_v41 }
 0xf4d   : > { %v2544_v30 = vpop.permute.xlu1 %2543 }
 0xf4e   : > { %vm2555_vm10 = vcmp.gt.f32.partialorder %v2544_v30, 0.5  ;;  %3202 = vxpose.xlu1.b32.cont [2/4] (short) (narrow) %v5798_v43, 8  ;;  %v3266_v41 = vpack.c.bf16 %v5818_v56, %v5810_v57  ;;  %v3265_v0 = vpack.c.bf16 %v5798_v43, %v5791_v2 }
 0xf4f   : > { %v2579_v61 = vsel %vm2555_vm10, %v5471_v4, -3.4028235e+38 }
 0xf50   : > { %v2596_v17 = vsel %vm1066_vm0, %v2579_v61, -inf  ;;  %v3289_v12 = vrot.slane %v3266_v41, %v5265_v1  ;;  %v3296_v47 = vrot.slane %v3266_v41, %v5270_v42  ;;  %v3275_v32 = vrot.slane %v3265_v0, %v5265_v1 }
 0xf51   : > { %v2597_v55 = vmax.f32 %v2594_v59, %v2596_v17  ;;  %v2621_v41 = vsel %vm2555_vm10, %v5471_v4, 0.0 }
 0xf52   : > { %3203 = vxpose.xlu1.b32.cont [3/4] (short) (narrow) %v5810_v57, 8  ;;  %v3303_v16 = vmul.bf16 %v3289_v12, %v5500_v9  ;;  %v3304_v61 = vmul.bf16 %v3296_v47, %v5502_v13  ;;  %v2639_v47 = vsel %vm1066_vm0, %v2621_v41, 0.0  ;;  %v2573_v41 = vsel %vm2549_vm2, %v5460_v22, -3.4028235e+38 }
 0xf53   : > { %v5815_v63 = vmax.f32 %v2597_v55, %v2599_v38 }
 0xf56   : > { %3204 = vxpose.xlu1.b32.end [4/4] (short) (narrow) %v5818_v56, 8 }
 0xf74   : > { %1705 = vbcast.lane.b32.xlu1 %v5603_v5, 272 }
 0xf78   : > { %2524 = vbcast.lane.b32.xlu1 %v5609_v24, 272 }
 0xf7c   : > { %2528 = vbcast.lane.b32.xlu1 %v5609_v24, 280  ;;  %v3282_v24 = vrot.slane %v3265_v0, %v5270_v42  ;;  %v1804_v42 = vsel %vm1737_vm12, %v5259_v28, 0.0 }
 0xf7d   : > { %v1823_v49 = vsel %vm1066_vm0, %v1804_v42, 0.0  ;;  %v1797_v42 = vsel %vm1730_vm13, %v5244_v18, 0.0 }
 0xf7e   : > { %v3302_v1 = vmul.bf16 %v3282_v24, %v5498_v15 }
 0xfca   : > { %v3217_v60 = vpop.trf.xlu1 }
 0xfcb   : > { %v3305_v38 = vpack.c.bf16 %v3217_v60, %v3217_v60  ;;  %v3324_v37 = vrot.slane %v3217_v60, %v5151_v25 }
 0xfcd   : > { %v3307_v20 = vpack.i.b16 %v3305_v38, %v3305_v38  ;;  %v3325_v5 = vmul.f32 %v5576_v14, %v3324_v37  ;;  %v3301_v14 = vmul.bf16 %v3275_v32, %v5496_v48 }
 0xfcf   : > { %v3312_v35 = vrot.slane %v3307_v20, %v5151_v25  ;;  %v3326_v39 = vsel %vm6279_vm3, %v3325_v5, 0.0  ;;  %v5837_v50 = vrot.slane %v3325_v5, %v5582_v7  ;;  %v5848_v17 = vrot.slane %v3325_v5, %v5151_v25 }
 0xfd0   : > { %3327 = vadd.xlane.f32.xlu0 %v3326_v39  ;;  %v1824_v5 = vadd.f32 %v1823_v49, %v5662_v6  ;;  %v2640_v39 = vadd.f32 %v2639_v47, %v5645_v45  ;;  %v1754_v45 = vsel %vm1730_vm13, %v5244_v18, -3.4028235e+38  ;;  %v1805_v18 = vsel %vm1066_vm0, %v1797_v42, 0.0 }
 0xfd1   : > { %v4334_v59 = vcombine.low %v3312_v35, %v3312_v35  ;;  %3353 = vbcast.lane.b32.xlu1 %v5837_v50, 256  ;;  %v2622_v35 = vsel %vm2556_vm8, %v5474_v31, 0.0  ;;  %v1762_v49 = vsel %vm1066_vm0, %v1754_v45, -inf  ;;  %v1806_v47 = vsel %vm1066_vm0, %v1798_v23, 0.0 }
 0xfd2   : > { %v2641_v6 = vsel %vm1066_vm0, %v2622_v35, 0.0  ;;  %v1783_v45 = vmax.f32 %v5756_v10, %v1782_v29  ;;  %vm1793_vm8 = vcmask 1041409  }
 0xfd3   : > { %v5850_v36 = vmul.bf16 %v4334_v59, %v3303_v16  ;;  %v5852_v9 = vmul.bf16 %v4334_v59, %v3304_v61  ;;  %v3317_v55 = vmul.bf16 %v4334_v59, %v3301_v14  ;;  %v3318_v13 = vmul.bf16 %v4334_v59, %v3302_v1 }
 0xfd4   : > { %v1825_v59 = vrot.slane %v1824_v5, 4  ;;  %v2642_v58 = vadd.f32 %v2641_v6, %v2640_v39 }
 0xfd5   : > { %v3485_v48 = vunpack.c.l.bf16 %v5850_v36  ;;  %3334 = vbcast.lane.b32.xlu1 %v5848_v17, 256  ;;  %v3483_v15 = vunpack.c.l.bf16 %v3317_v55  ;;  %v3484_v0 = vunpack.c.l.bf16 %v3318_v13  ;;  %v4335_v60 = vcombine.low %v3317_v55, %v3318_v13 }
 0xfd6   : > { %v4336_v38 = vcombine.low %v5850_v36, %v5852_v9  ;;  %v3486_v37 = vunpack.c.l.bf16 %v5852_v9  ;;  %v2616_v55 = vsel %vm2550_vm14, %v5463_v11, 0.0  ;;  %v1826_v13 = vadd.f32 %v1825_v59, %v1824_v5 }
 0xfd7   : > { %v5863_v12 = vsel %vm1066_vm0, %v3483_v15, 0.0  ;;  %v5866_v30 = vsel %vm1066_vm0, %v3484_v0, 0.0  ;;  %4497 = vmatprep.mubr.msk.bf16.mxu1 %vm1066_vm0, %v4335_v60  ;;  %v5874_v32 = vsel %vm1066_vm0, %v3485_v48, 0.0  ;;  %v2615_v48 = vsel %vm2549_vm2, %v5460_v22, 0.0 }
 0xfd8   : > { %v3499_v20 = vadd.f32 %v5866_v30, %v5863_v12  ;;  %v5883_v16 = vsel %vm1066_vm0, %v3486_v37, 0.0  ;;  %v2643_v15 = vrot.slane %v2642_v58, 4  ;;  %v2624_v60 = vsel %vm1066_vm0, %v2616_v55, 0.0 }
 0xfd9   : > { %3361 = vbcast.lane.b32.xlu1 %v5837_v50, 272  ;;  %v5905_v37 = vsel %vm1066_vm0, %v2573_v41, -inf  ;;  %v1827_v19 = vrot.slane %v1826_v13, 2  ;;  %v2623_v22 = vsel %vm1066_vm0, %v2615_v48, 0.0  ;;  %v5911_v11 = vsel %vm1066_vm0, %v2574_v44, -inf }
 0xfda   : > { %v3500_v24 = vadd.f32 %v3499_v20, %v5874_v32  ;;  %v2649_v20 = vmax.f32 %v5727_v52, 1.0  ;;  %v2644_v35 = vadd.f32 %v2643_v15, %v2642_v58  ;;  %v1800_v59 = vsel %vm1733_vm1, %v5259_v28, 0.0 }
 0xfdb   : > { %v1828_v42 = vadd.f32 %v1827_v19, %v1826_v13  ;;  %v2601_v58 = vrot.slane %v5815_v63, 4  ;;  %v1810_v28 = vsel %vm1066_vm0, %v1800_v59, 0.0  ;;  %v1784_v44 = vrot.slane %v1783_v45, 2 }
 0xfdc   : > { %v3501_v61 = vadd.f32 %v3500_v24, %v5883_v16  ;;  %v2625_v24 = vadd.f32 %v2624_v60, %v2623_v22  ;;  %4656 = vrcp.f32 %v2649_v20  ;;  %v2645_v27 = vrot.slane %v2644_v35, 2 }
 0xfdd   : > { %3365 = vbcast.lane.b32.xlu1 %v5837_v50, 280  ;;  %v1829_v15 = vrot.slane %v1828_v42, 1  ;;  %vm1788_vm1 = vcmp.gt.f32.partialorder %v5725_v40, 0.0  ;;  %v3259_v52 = vmul.f32 %v5731_v33, %v5535_v62  ;;  %v6280_v33 = vld [vmem:[#allocation29_spill] sm:$0xff] }
 0xfde   : > { %v3502_v14 = vrot.slane %v3501_v61, 4  ;;  %v2646_v53 = vadd.f32 %v2645_v27, %v2644_v35 }
 0xfdf   : > { %v1830_v59 = vadd.f32 %v1829_v15, %v1828_v42 }
 0xfe0   : > { %v3503_v1 = vadd.f32 %v3502_v14, %v3501_v61  ;;  %v1807_v61 = vadd.f32 %v1806_v47, %v1805_v18  ;;  %v2602_v18 = vmax.f32 %v5815_v63, %v2601_v58  ;;  %v1785_v63 = vmax.f32 %v1783_v45, %v1784_v44 }
 0xfe2   : > { %v3504_v0 = vrot.slane %v3503_v1, 2  ;;  %v1786_v27 = vrot.slane %v1785_v63, 1 }
 0xfe4   : > { %v3505_v39 = vadd.f32 %v3504_v0, %v3503_v1 }
 0xfe6   : > { %v1706_v5 = vpop.permute.xlu1 %1705  ;;  %3357 = vbcast.lane.b32.xlu0 %v5837_v50, 264 }
 0xfe7   : > { %vm1732_vm12 = vcmp.gt.f32.partialorder %v1706_v5, 0.5 }
 0xfe8   : > { %v1756_v6 = vsel %vm1732_vm12, %v5256_v26, -3.4028235e+38  ;;  %v1799_v14 = vsel %vm1732_vm12, %v5256_v26, 0.0  ;;  %v3506_v26 = vrot.slane %v3505_v39, 1 }
 0xfe9   : > { %v1764_v55 = vsel %vm1066_vm0, %v1756_v6, -inf  ;;  %v1808_v50 = vsel %vm1066_vm0, %v1799_v14, 0.0 }
 0xfea   : > { %v1765_v1 = vmax.f32 %v1762_v49, %v1764_v55  ;;  %v1809_v41 = vadd.f32 %v1808_v50, %v1807_v61  ;;  %v2525_v54 = vpop.permute.xlu1 %2524  ;;  %3338 = vbcast.lane.b32.xlu0 %v5848_v17, 264  ;;  %v2647_v50 = vrot.slane %v2646_v53, 1 }
 0xfeb   : > { %vm2551_vm6 = vcmp.gt.f32.partialorder %v2525_v54, 0.5 }
 0xfec   : > { %v1768_v10 = vmax.f32 %v1765_v1, %v1767_v34  ;;  %v1811_v13 = vadd.f32 %v1810_v28, %v1809_v41  ;;  %v2575_v23 = vsel %vm2551_vm6, %v5471_v4, -3.4028235e+38  ;;  %v2617_v48 = vsel %vm2551_vm6, %v5471_v4, 0.0  ;;  %v4655_v4 = vpop.eup %4654 }
 0xfed   : > { %v2583_v0 = vsel %vm1066_vm0, %v2575_v23, -inf  ;;  %v2626_v49 = vsel %vm1066_vm0, %v2617_v48, 0.0  ;;  %v5936_v34 = vadd.f32 %v3506_v26, %v3505_v39  ;;  %v2603_v39 = vrot.slane %v2602_v18, 2  ;;  %v4657_v41 = vpop.eup %4656 }
 0xfee   : > { %v1769_v60 = vrot.slane %v1768_v10, 4  ;;  %v1812_v47 = vrot.slane %v1811_v13, 4  ;;  %v2584_v29 = vmax.f32 %v5905_v37, %v2583_v0  ;;  %v2529_v19 = vpop.permute.xlu1 %2528  ;;  %3342 = vbcast.lane.b32.xlu0 %v5848_v17, 272  ;;  %v2627_v51 = vadd.f32 %v2626_v49, %v2625_v24 }
 0xfef   : > { %vm2552_vm4 = vcmp.gt.f32.partialorder %v2529_v19, 0.5  ;;  %v1834_v58 = vrot.slane %v4655_v4, 1  ;;  %v3525_v1 = vmax.f32 %v5936_v34, 1.0  ;;  %v2648_v48 = vadd.f32 %v2647_v50, %v2646_v53 }
 0xff0   : > { %v1770_v22 = vmax.f32 %v1768_v10, %v1769_v60  ;;  %v1813_v20 = vadd.f32 %v1812_v47, %v1811_v13  ;;  %v2576_v5 = vsel %vm2552_vm4, %v5474_v31, -3.4028235e+38  ;;  %v2618_v61 = vsel %vm2552_vm4, %v5474_v31, 0.0 }
 0xff1   : > { %v2585_v6 = vsel %vm1066_vm0, %v2576_v5, -inf  ;;  %v2628_v37 = vsel %vm1066_vm0, %v2618_v61, 0.0  ;;  %v1838_v28 = vmul.f32 %v1834_v58, %v1830_v59  ;;  %4658 = vrsqrt.f32 %v3525_v1 }
 0xff2   : > { %v1771_v14 = vrot.slane %v1770_v22, 2  ;;  %v1814_v55 = vrot.slane %v1813_v20, 2  ;;  %v2586_v24 = vmax.f32 %v5911_v11, %v2585_v6  ;;  %v2629_v35 = vadd.f32 %v2628_v37, %v2627_v51  ;;  %3346 = vbcast.lane.b32.xlu0 %v5848_v17, 280 }
 0xff3   : > { %v2604_v11 = vmax.f32 %v2602_v18, %v2603_v39  ;;  %v2652_v0 = vrot.slane %v4657_v41, 1  ;;  %v1787_v60 = vmax.f32 %v1785_v63, %v1786_v27  ;;  %v1841_v51 = vrot.slane %v1838_v28, 7 }
 0xff4   : > { %v1772_v31 = vmax.f32 %v1770_v22, %v1771_v14  ;;  %v1815_v45 = vadd.f32 %v1814_v55, %v1813_v20  ;;  %v2587_v42 = vmax.f32 %v2584_v29, %v2586_v24  ;;  %v2630_v54 = vrot.slane %v2629_v35, 4 }
 0xff5   : > { %v2656_v22 = vmul.f32 %v2652_v0, %v2648_v48  ;;  %v2605_v5 = vrot.slane %v2604_v11, 1  ;;  %vm3524_vm11 = vcmp.gt.f32.partialorder %v5936_v34, 0.0  ;;  %v3257_v1 = vmul.f32 %v5729_v8, %v5527_v3 }
 0xff6   : > { %v1816_v26 = vrot.slane %v1815_v45, 1  ;;  %v2588_v10 = vrot.slane %v2587_v42, 4  ;;  %v2631_v13 = vadd.f32 %v2630_v54, %v2629_v35  ;;  %v1773_v23 = vrot.slane %v1772_v31, 1 }
 0xff7   : > { %v2606_v55 = vmax.f32 %v2604_v11, %v2605_v5  ;;  %v3260_v27 = vmul.f32 %v5784_v46, %v6280_v33 }
 0xff8   : > { %v2589_v17 = vmax.f32 %v2587_v42, %v2588_v10  ;;  %v2632_v44 = vrot.slane %v2631_v13, 2  ;;  %v1817_v15 = vadd.f32 %v1816_v26, %v1815_v45  ;;  %v1774_v49 = vmax.f32 %v1772_v31, %v1773_v23  ;;  %v6281_v10 = vld [vmem:[#allocation30_spill] sm:$0xff] }
 0xff9   : > { %v5963_v31 = vmul.f32 %v3257_v1, %v5791_v2  ;;  %v5966_v45 = vmul.f32 %v3259_v52, %v5810_v57  ;;  %v5981_v23 = vmul.f32 %v3260_v27, %v5818_v56 }
 0xffa   : > { %v2590_v47 = vrot.slane %v2589_v17, 2  ;;  %v2633_v19 = vadd.f32 %v2632_v44, %v2631_v13  ;;  %v1837_v29 = vmul.f32 %v4655_v4, %v1817_v15  ;;  %v1794_v20 = vsel %vm1793_vm8, %v1787_v60, %v1774_v49 }
 0xffb   : > { %v5948_v59 = vsel %vm1788_vm1, %v1794_v20, 0.0  ;;  %v2659_v4 = vrot.slane %v2656_v22, 7  ;;  %v4659_v40 = vpop.eup %4658  ;;  %v3258_v13 = vmul.f32 %v5786_v21, %v6281_v10 }
 0xffc   : > { %v2591_v18 = vmax.f32 %v2589_v17, %v2590_v47  ;;  %v2634_v61 = vrot.slane %v2633_v19, 1  ;;  %v1842_v53 = vsel %vm1793_vm8, %v1841_v51, %v1837_v29  ;;  %v3527_v50 = vsel %vm3524_vm11, %v4659_v40, 0.0 }
 0xffd   : > { %1843 = vrot.lane.b32.xlu0 %v1842_v53, %s4805_s7  ;;  %v5984_v11 = vmul.f32 %v3258_v13, %v5798_v43 }
 0xffe   : > { %v2635_v63 = vadd.f32 %v2634_v61, %v2633_v19  ;;  %v2592_v6 = vrot.slane %v2591_v18, 1 }
0x1000   : > { %v2655_v37 = vmul.f32 %v4657_v41, %v2635_v63  ;;  %v2593_v14 = vmax.f32 %v2591_v18, %v2592_v6 }
0x1002   : > { %v2660_v24 = vsel %vm1793_vm8, %v2659_v4, %v2655_v37  ;;  %v2612_v35 = vsel %vm1793_vm8, %v2606_v55, %v2593_v14 }
0x1003   : > { %2661 = vrot.lane.b32.xlu0 %v2660_v24, %s4805_s7  ;;  %v5955_v39 = vsel %vm2607_vm15, %v2612_v35, 0.0  ;;  %vm3713_vm15 = vcmask 517120  }
0x1006   : > { %3528 = vxpose.xlu1.b32.start.end [1/1] (short) (narrow) %v3527_v50, 32 }
0x1043   : > { %v3354_v58 = vpop.permute.xlu1 %3353 }
0x1044   : > { %vm3371_vm7 = vcmp.gt.f32.partialorder %v3354_v58, 0.5 }
0x1045   : > { %v3395_v34 = vsel %vm3371_vm7, %v5963_v31, -3.4028235e+38  ;;  %v3437_v48 = vsel %vm3371_vm7, %v5963_v31, 0.0 }
0x1046   : > { %v3412_v3 = vsel %vm1066_vm0, %v3395_v34, -inf  ;;  %v3454_v0 = vsel %vm1066_vm0, %v3437_v48, 0.0 }
0x1047   : > { %v3335_v41 = vpop.permute.xlu1 %3334 }
0x1048   : > { %vm3367_vm3 = vcmp.gt.f32.partialorder %v3335_v41, 0.5 }
0x1049   : > { %v3391_v6 = vsel %vm3367_vm3, %v5963_v31, -3.4028235e+38  ;;  %v3433_v37 = vsel %vm3367_vm3, %v5963_v31, 0.0 }
0x104a   : > { %v3399_v58 = vsel %vm1066_vm0, %v3391_v6, -inf  ;;  %v3441_v1 = vsel %vm1066_vm0, %v3433_v37, 0.0 }
0x104b   : > { %v3362_v42 = vpop.permute.xlu1 %3361 }
0x104c   : > { %vm3373_vm9 = vcmp.gt.f32.partialorder %v3362_v42, 0.5 }
0x104d   : > { %v3397_v54 = vsel %vm3373_vm9, %v5966_v45, -3.4028235e+38  ;;  %v3439_v46 = vsel %vm3373_vm9, %v5966_v45, 0.0 }
0x104e   : > { %v3414_v8 = vsel %vm1066_vm0, %v3397_v54, -inf  ;;  %v3457_v20 = vsel %vm1066_vm0, %v3439_v46, 0.0 }
0x104f   : > { %v3415_v28 = vmax.f32 %v3412_v3, %v3414_v8  ;;  %v3366_v62 = vpop.permute.xlu1 %3365 }
0x1050   : > { %vm3374_vm5 = vcmp.gt.f32.partialorder %v3366_v62, 0.5 }
0x1051   : > { %v3398_v17 = vsel %vm3374_vm5, %v5981_v23, -3.4028235e+38  ;;  %v3440_v19 = vsel %vm3374_vm5, %v5981_v23, 0.0 }
0x1052   : > { %v3416_v49 = vsel %vm1066_vm0, %v3398_v17, -inf  ;;  %v3459_v63 = vsel %vm1066_vm0, %v3440_v19, 0.0 }
0x105d   : > { %v5976_v26 = vpop.xlane.xlu0 %3327 }
0x105e   : > { %v3467_v5 = vmax.f32 %v5976_v26, 1.0  ;;  %vm3425_vm4 = vcmp.gt.f32.partialorder %v5976_v26, 0.0 }
0x1060   : > { %4660 = vrcp.f32 %v3467_v5 }
0x1061   : > { %v3358_v44 = vpop.permute.xlu0 %3357 }
0x1062   : > { %vm3372_vm10 = vcmp.gt.f32.partialorder %v3358_v44, 0.5 }
0x1063   : > { %v3396_v15 = vsel %vm3372_vm10, %v5984_v11, -3.4028235e+38  ;;  %v3438_v21 = vsel %vm3372_vm10, %v5984_v11, 0.0 }
0x1064   : > { %v3413_v60 = vsel %vm1066_vm0, %v3396_v15, -inf  ;;  %v3455_v47 = vsel %vm1066_vm0, %v3438_v21, 0.0 }
0x1065   : > { %v3417_v29 = vmax.f32 %v3413_v60, %v3416_v49  ;;  %v3456_v51 = vadd.f32 %v3455_v47, %v3454_v0  ;;  %v3339_v22 = vpop.permute.xlu0 %3338 }
0x1066   : > { %vm3368_vm13 = vcmp.gt.f32.partialorder %v3339_v22, 0.5 }
0x1067   : > { %v3418_v18 = vmax.f32 %v3415_v28, %v3417_v29  ;;  %v3458_v61 = vadd.f32 %v3457_v20, %v3456_v51  ;;  %v3434_v53 = vsel %vm3368_vm13, %v5984_v11, 0.0  ;;  %v3392_v42 = vsel %vm3368_vm13, %v5984_v11, -3.4028235e+38 }
0x1068   : > { %v3442_v40 = vsel %vm1066_vm0, %v3434_v53, 0.0  ;;  %v3400_v13 = vsel %vm1066_vm0, %v3392_v42, -inf  ;;  %vm6285_vm13 = vcmask 130048  }
0x1069   : > { %v3460_v4 = vadd.f32 %v3459_v63, %v3458_v61  ;;  %v3343_v14 = vpop.permute.xlu0 %3342  ;;  %v3419_v55 = vrot.slane %v3418_v18, 4  ;;  %v3443_v54 = vadd.f32 %v3442_v40, %v3441_v1 }
0x106a   : > { %vm3369_vm14 = vcmp.gt.f32.partialorder %v3343_v14, 0.5  ;;  %v4661_v29 = vpop.eup %4660 }
0x106b   : > { %v3461_v24 = vrot.slane %v3460_v4, 4  ;;  %v3393_v35 = vsel %vm3369_vm14, %v5966_v45, -3.4028235e+38  ;;  %v3435_v50 = vsel %vm3369_vm14, %v5966_v45, 0.0  ;;  %v3420_v28 = vmax.f32 %v3418_v18, %v3419_v55  ;;  %vm6286_vm14 = vmmov %vm6285_vm13 }
0x106c   : > { %v3401_v41 = vsel %vm1066_vm0, %v3393_v35, -inf  ;;  %v3444_v52 = vsel %vm1066_vm0, %v3435_v50, 0.0 }
0x106d   : > { %v3462_v34 = vadd.f32 %v3461_v24, %v3460_v4  ;;  %v3402_v3 = vmax.f32 %v3399_v58, %v3401_v41  ;;  %v3347_v8 = vpop.permute.xlu0 %3346  ;;  %v3445_v33 = vadd.f32 %v3444_v52, %v3443_v54  ;;  %v3421_v0 = vrot.slane %v3420_v28, 2 }
0x106e   : > { %vm3370_vm2 = vcmp.gt.f32.partialorder %v3347_v8, 0.5  ;;  %v3470_v4 = vrot.slane %v4661_v29, 1 }
0x106f   : > { %v3463_v62 = vrot.slane %v3462_v34, 2  ;;  %v3394_v27 = vsel %vm3370_vm2, %v5981_v23, -3.4028235e+38  ;;  %v3436_v10 = vsel %vm3370_vm2, %v5981_v23, 0.0  ;;  %v3422_v18 = vmax.f32 %v3420_v28, %v3421_v0 }
0x1070   : > { %v3403_v48 = vsel %vm1066_vm0, %v3394_v27, -inf  ;;  %v3446_v17 = vsel %vm1066_vm0, %v3436_v10, 0.0 }
0x1071   : > { %v3464_v44 = vadd.f32 %v3463_v62, %v3462_v34  ;;  %v3404_v46 = vmax.f32 %v3400_v13, %v3403_v48  ;;  %v3447_v15 = vadd.f32 %v3446_v17, %v3445_v33  ;;  %v1844_v21 = vpop.permute.xlu0 %1843  ;;  %v3423_v1 = vrot.slane %v3422_v18, 1 }
0x1072   : > { %v1846_v49 = vsel %vm1066_vm0, %v5948_v59, %v1844_v21 }
0x1073   : > { %v3405_v60 = vmax.f32 %v3402_v3, %v3404_v46  ;;  %v3448_v47 = vrot.slane %v3447_v15, 4  ;;  %v3465_v19 = vrot.slane %v3464_v44, 1  ;;  %v3703_v20 = vmul.f32 0.1, %v1846_v49 }
0x1074   : > { %vm3702_vm12 = vcmp.ge.f32.partialorder %v1846_v49, 0.0  ;;  %v3424_v54 = vmax.f32 %v3422_v18, %v3423_v1 }
0x1075   : > { %v3406_v51 = vrot.slane %v3405_v60, 4  ;;  %v3449_v22 = vadd.f32 %v3448_v47, %v3447_v15  ;;  %v2662_v5 = vpop.permute.xlu0 %2661  ;;  %v3466_v53 = vadd.f32 %v3465_v19, %v3464_v44  ;;  %v3704_v55 = vsel %vm3702_vm12, %v1846_v49, %v3703_v20 }
0x1076   : > { %v2664_v61 = vsel %vm1066_vm0, %v5955_v39, %v2662_v5 }
0x1077   : > { %v3407_v63 = vmax.f32 %v3405_v60, %v3406_v51  ;;  %v3450_v6 = vrot.slane %v3449_v22, 2  ;;  %vm3705_vm6 = vcmp.ge.f32.partialorder %v2664_v61, 0.0  ;;  %v3706_v37 = vmul.f32 0.1, %v2664_v61 }
0x1078   : > { %v3474_v58 = vmul.f32 %v3470_v4, %v3466_v53 }
0x1079   : > { %v3408_v59 = vrot.slane %v3407_v63, 2  ;;  %v3451_v14 = vadd.f32 %v3450_v6, %v3449_v22  ;;  %v3707_v40 = vsel %vm3705_vm6, %v2664_v61, %v3706_v37 }
0x107a   : > { %v3708_v24 = vadd.f32 %v3707_v40, %v3704_v55  ;;  %v3477_v42 = vrot.slane %v3474_v58, 7 }
0x107b   : > { %v3409_v35 = vmax.f32 %v3407_v63, %v3408_v59  ;;  %v3452_v50 = vrot.slane %v3451_v14, 1 }
0x107d   : > { %v3453_v41 = vadd.f32 %v3452_v50, %v3451_v14  ;;  %v3410_v52 = vrot.slane %v3409_v35, 1 }
0x107f   : > { %v3473_v34 = vmul.f32 %v4661_v29, %v3453_v41  ;;  %v3411_v39 = vmax.f32 %v3409_v35, %v3410_v52 }
0x1081   : > { %v3478_v3 = vsel %vm1793_vm8, %v3477_v42, %v3473_v34  ;;  %v3430_v8 = vsel %vm1793_vm8, %v3424_v54, %v3411_v39 }
0x1082   : > { %3479 = vrot.lane.b32.xlu0 %v3478_v3, %s4805_s7  ;;  %v3432_v28 = vsel %vm3425_vm4, %v3430_v8, 0.0  ;;  %s6034_s7 = scalar_lea.vmem [#allocation7], %s6215_s22  ;;  %s6282_s22 = sld [smem:[#allocation22_spill]] }
0x1083   : > { %s4062_s5 = sshll.u32 %s6034_s7, 4  ;;  %s4063_s5 = int_to_ptr.vmem [resolvable:$true] %s4062_s5 }
0x1084   : > { %s4675_s8 = scalar_lea.vmem %s4063_s5, 32  ;;  %p4682_p0 = scmp.lt.s32.totalorder %s4063_s5, %s4680_s11 }
0x1085   : > { %p4676_p11 = scmp.ne.s32.totalorder %s4063_s5, %s4675_s8  ;;  %p4683_p1 = scmp.lt.s32.totalorder %s4681_s12, %s4675_s8 }
0x1086   : > { %v3544_v62 = vpop.trf.xlu1 }
0x1087   : > { %3562 = vperm.xlu0 %4592, %v3544_v62   ;;  %p4677_p12 = pnand %p4676_p11, %p5000_p5  ;;  %p4684_p2 = por %p4683_p1, %p4682_p0 }
0x1088   : > { %v3722_v55 = vld [vmem:[%s6282_s22] sm:$0xff]  ;;  %v3725_v41 = vld [vmem:[%s6282_s22 + $0x18] sm:$0xff] }
0x1089   : > { %v3726_v54 = vld [vmem:[%s6282_s22 + $0x20] sm:$0xff]  ;;  %p4678_p13 = pneg %p4677_p12 }
0x108a   : > { %v3545_v33 = vpop.trf.xlu1 }
0x108b   : > { %3567 = vperm.xlu0 %4592, %v3545_v33   ;;  %p4685_p3 = pnand %p4684_p2, %p4678_p13 }
0x108e   : > { %v3546_v27 = vpop.trf.xlu1 }
0x108f   : > { %3572 = vperm.xlu0 %4592, %v3546_v27  }
0x1092   : > { %v3547_v10 = vpop.trf.xlu1 }
0x1093   : > { %3577 = vperm.xlu0 %4592, %v3547_v10   ;;  %v3727_v10 = vld [vmem:[%s6282_s22 + $0x28] sm:$0xff] }
0x10f4   : > { %v3480_v26 = vpop.permute.xlu0 %3479 }
0x10f5   : > { %v3482_v13 = vsel %vm1066_vm0, %v3432_v28, %v3480_v26 }
0x10f6   : > { %vm3709_vm1 = vcmp.ge.f32.partialorder %v3482_v13, 0.0  ;;  %v3710_v48 = vmul.f32 0.1, %v3482_v13 }
0x10f8   : > { %v3711_v17 = vsel %vm3709_vm1, %v3482_v13, %v3710_v48 }
0x10f9   : > { %v3712_v44 = vadd.f32 %v3711_v17, %v3708_v24  ;;  %v3724_v24 = vld [vmem:[%s6282_s22 + $0x10] sm:$0xff] }
0x10fb   : > { %v3715_v46 = vmul.f32 %v3712_v44, %v3712_v44  ;;  %3714 = vst.msk [vmem:[%s6034_s7] sm:$0x3] %vm3713_vm15, %v3712_v44 }
0x10fd   : > { %v3716_v15 = vsel %vm3713_vm15, %v3715_v46, 0.0 }
0x10fe   : > { %3717 = vadd.xlane.f32.xlu0 %v3716_v15 }
0x1106   : > { %v3563_v21 = vpop.permute.xlu0 %3562 }
0x1107   : > { %v3580_v49 = vmul.f32 %v3563_v21, %v5963_v31 }
0x110a   : > { %v3568_v0 = vpop.permute.xlu0 %3567 }
0x110b   : > { %v3581_v60 = vmul.f32 %v3568_v0, %v5984_v11 }
0x110d   : > { %v3584_v47 = vpack.c.bf16 %v3581_v60, %v3580_v49 }
0x110e   : > { %v3573_v19 = vpop.permute.xlu0 %3572 }
0x110f   : > { %4493 = vmatprep.subr.bf16.mxu1 %v3584_v47  ;;  %v3582_v51 = vmul.f32 %v3573_v19, %v5966_v45 }
0x1110   : > { %4494 = vmatpush3.bf16.msra.mxu1 %v3584_v47 }
0x1112   : > { %v3578_v29 = vpop.permute.xlu0 %3577 }
0x1113   : > { %v3583_v22 = vmul.f32 %v3578_v29, %v5981_v23 }
0x1115   : > { %v3585_v20 = vpack.c.bf16 %v3583_v22, %v3582_v51  ;;  %v3728_v51 = vld [vmem:[%s6282_s22 + $0x30] sm:$0xff] }
0x1117   : > { %4495 = vmatprep.subr.bf16.mxu1 %v3585_v20 }
0x1118   : > { %4496 = vmatpush3.bf16.msra.mxu1 %v3585_v20 }
0x111b   : > { %4498 = vmatmul.mubr.msk.bf16.vlgmr.msra.gmra.mrb[20].mxu1 %vm1066_vm0, %v4336_v38 }
0x118b   : > { %v3718_v5 = vpop.xlane.xlu0 %3717 }
0x118c   : > { %v3719_v18 = vmax.f32 %v3718_v5, 1e-24 }
0x118e   : > { %4662 = vrsqrt.f32 %v3719_v18 }
0x1198   : > { %v4663_v61 = vpop.eup %4662 }
0x1199   : > { %v3721_v53 = vmul.f32 %v4663_v61, %v3712_v44 }
0x119b   : > { %v3769_v63 = vrot.slane %v3721_v53, %v5582_v7  ;;  %v3734_v6 = vrot.slane %v3721_v53, %v5151_v25 }
0x119d   : > { %3775 = vbcast.lane.b32.xlu0 %v3769_v63, 264  ;;  %3771 = vbcast.lane.b32.xlu1 %v3769_v63, 256 }
0x11a1   : > { %3740 = vbcast.lane.b32.xlu0 %v3734_v6, 264  ;;  %3736 = vbcast.lane.b32.xlu1 %v3734_v6, 256 }
0x11a5   : > { %3744 = vbcast.lane.b32.xlu0 %v3734_v6, 272  ;;  %3779 = vbcast.lane.b32.xlu1 %v3769_v63, 272 }
0x11a9   : > { %3748 = vbcast.lane.b32.xlu0 %v3734_v6, 280  ;;  %3783 = vbcast.lane.b32.xlu1 %v3769_v63, 280 }
0x11ad   : > { %3752 = vbcast.lane.b32.xlu0 %v3734_v6, 288  ;;  %3787 = vbcast.lane.b32.xlu1 %v3769_v63, 288 }
0x11b1   : > { %3756 = vbcast.lane.b32.xlu0 %v3734_v6, 296  ;;  %3791 = vbcast.lane.b32.xlu1 %v3769_v63, 296 }
0x11b5   : > { %3760 = vbcast.lane.b32.xlu0 %v3734_v6, 304  ;;  %3795 = vbcast.lane.b32.xlu1 %v3769_v63, 304 }
0x11b9   : > { %3764 = vbcast.lane.b32.xlu0 %v3734_v6, 312  ;;  %3799 = vbcast.lane.b32.xlu1 %v3769_v63, 312 }
0x11d8   : > { %3491 = vadd.xlane.f32.xlu0 %v5866_v30 }
0x11dc   : > { %3494 = vadd.xlane.f32.xlu0 %v5874_v32 }
0x11dd   : > { %3488 = vadd.xlane.f32.xlu1 %v5863_v12  ;;  %v3723_v12 = vld [vmem:[%s6282_s22 + $0x8] sm:$0xff] }
0x11e1   : > { %3497 = vadd.xlane.f32.xlu1 %v5883_v16 }
0x11ee   : > { %v6051_v7 = vpop.f32.mrb[20].mxu1 }
0x11ef   : > { %v6053_v36 = vpop.f32.mrb[21].mxu1 }
0x11f0   : > { %v6055_v9 = vpop.f32.mrb[22].mxu1 }
0x11f1   : > { %v6057_v38 = vpop.f32.mrb[23].mxu1 }
0x120f   : > { %v3776_v37 = vpop.permute.xlu0 %3775  ;;  %v3772_v4 = vpop.permute.xlu1 %3771 }
0x1210   : > { %v3810_v40 = vmul.f32 %v3776_v37, %v3723_v12  ;;  %v3809_v16 = vmul.f32 %v3772_v4, %v3722_v55 }
0x1212   : > { %v3839_v42 = vsel %vm1066_vm0, %v3810_v40, 0.0  ;;  %v3838_v39 = vsel %vm1066_vm0, %v3809_v16, 0.0 }
0x1213   : > { %v3741_v59 = vpop.permute.xlu0 %3740  ;;  %v3737_v30 = vpop.permute.xlu1 %3736  ;;  %v3840_v44 = vadd.f32 %v3839_v42, %v3838_v39 }
0x1214   : > { %v3802_v58 = vmul.f32 %v3741_v59, %v3723_v12  ;;  %v3801_v1 = vmul.f32 %v3737_v30, %v3722_v55 }
0x1216   : > { %v3818_v28 = vsel %vm1066_vm0, %v3802_v58, 0.0  ;;  %v3817_v62 = vsel %vm1066_vm0, %v3801_v1, 0.0 }
0x1217   : > { %v3745_v14 = vpop.permute.xlu0 %3744  ;;  %v3780_v32 = vpop.permute.xlu1 %3779  ;;  %v3819_v46 = vadd.f32 %v3818_v28, %v3817_v62 }
0x1218   : > { %v3803_v52 = vmul.f32 %v3745_v14, %v3724_v24  ;;  %v3811_v34 = vmul.f32 %v3780_v32, %v3724_v24  ;;  %v3729_v14 = vld [vmem:[%s6282_s22 + $0x38] sm:$0xff] }
0x121a   : > { %v3820_v26 = vsel %vm1066_vm0, %v3803_v52, 0.0  ;;  %v3841_v13 = vsel %vm1066_vm0, %v3811_v34, 0.0 }
0x121b   : > { %v3749_v35 = vpop.permute.xlu0 %3748  ;;  %v3784_v50 = vpop.permute.xlu1 %3783  ;;  %v3821_v19 = vadd.f32 %v3820_v26, %v3819_v46  ;;  %v3842_v29 = vadd.f32 %v3841_v13, %v3840_v44  ;;  %v4339_v13 = vld [vmem:[%s6283_s3] ss:$0 sm:$0xff]  ;;  %s6284_s3 = sld [smem:[#allocation24_spill]] }
0x121c   : > { %v3804_v33 = vmul.f32 %v3749_v35, %v3725_v41  ;;  %v3812_v27 = vmul.f32 %v3784_v50, %v3725_v41 }
0x121e   : > { %v3822_v0 = vsel %vm1066_vm0, %v3804_v33, 0.0  ;;  %v3843_v49 = vsel %vm1066_vm0, %v3812_v27, 0.0 }
0x121f   : > { %v3753_v3 = vpop.permute.xlu0 %3752  ;;  %v3788_v8 = vpop.permute.xlu1 %3787  ;;  %v3823_v5 = vadd.f32 %v3822_v0, %v3821_v19  ;;  %v3844_v18 = vadd.f32 %v3843_v49, %v3842_v29 }
0x1220   : > { %v3805_v48 = vmul.f32 %v3753_v3, %v3726_v54  ;;  %v3813_v17 = vmul.f32 %v3788_v8, %v3726_v54 }
0x1222   : > { %v3824_v22 = vsel %vm1066_vm0, %v3805_v48, 0.0  ;;  %v3845_v20 = vsel %vm1066_vm0, %v3813_v17, 0.0 }
0x1223   : > { %v3757_v15 = vpop.permute.xlu0 %3756  ;;  %v3792_v21 = vpop.permute.xlu1 %3791  ;;  %v3825_v59 = vadd.f32 %v3824_v22, %v3823_v5  ;;  %v3846_v30 = vadd.f32 %v3845_v20, %v3844_v18 }
0x1224   : > { %v3806_v60 = vmul.f32 %v3757_v15, %v3727_v10  ;;  %v3814_v47 = vmul.f32 %v3792_v21, %v3727_v10 }
0x1226   : > { %v3826_v63 = vsel %vm1066_vm0, %v3806_v60, 0.0  ;;  %v3847_v6 = vsel %vm1066_vm0, %v3814_v47, 0.0 }
0x1227   : > { %v3761_v61 = vpop.permute.xlu0 %3760  ;;  %v3796_v53 = vpop.permute.xlu1 %3795  ;;  %v3827_v55 = vadd.f32 %v3826_v63, %v3825_v59  ;;  %v3848_v40 = vadd.f32 %v3847_v6, %v3846_v30 }
0x1228   : > { %v3807_v37 = vmul.f32 %v3761_v61, %v3728_v51  ;;  %v3815_v4 = vmul.f32 %v3796_v53, %v3728_v51 }
0x122a   : > { %v3828_v32 = vsel %vm1066_vm0, %v3807_v37, 0.0  ;;  %v3849_v12 = vsel %vm1066_vm0, %v3815_v4, 0.0 }
0x122b   : > { %v3765_v16 = vpop.permute.xlu0 %3764  ;;  %v3800_v24 = vpop.permute.xlu1 %3799  ;;  %v3829_v58 = vadd.f32 %v3828_v32, %v3827_v55  ;;  %v3850_v1 = vadd.f32 %v3849_v12, %v3848_v40 }
0x122c   : > { %v3808_v35 = vmul.f32 %v3765_v16, %v3729_v14  ;;  %v3816_v50 = vmul.f32 %v3800_v24, %v3729_v14 }
0x122e   : > { %v3830_v41 = vsel %vm1066_vm0, %v3808_v35, 0.0  ;;  %v3851_v52 = vsel %vm1066_vm0, %v3816_v50, 0.0 }
0x122f   : > { %v3831_v34 = vadd.f32 %v3830_v41, %v3829_v58  ;;  %v3852_v42 = vadd.f32 %v3851_v52, %v3850_v1 }
0x1231   : > { %v3832_v39 = vrot.slane %v3831_v34, 4  ;;  %v3853_v54 = vrot.slane %v3852_v42, 4 }
0x1233   : > { %v3833_v3 = vadd.f32 %v3832_v39, %v3831_v34  ;;  %v3854_v8 = vadd.f32 %v3853_v54, %v3852_v42  ;;  %v3873_v34 = vld [vmem:[%s6284_s3] sm:$0xff]  ;;  %v3874_v42 = vld [vmem:[%s6284_s3 + $0x8] sm:$0xff] }
0x1235   : > { %v3834_v28 = vrot.slane %v3833_v3, 2  ;;  %v3855_v62 = vrot.slane %v3854_v8, 2 }
0x1237   : > { %v3835_v33 = vadd.f32 %v3834_v28, %v3833_v3  ;;  %v3856_v27 = vadd.f32 %v3855_v62, %v3854_v8  ;;  %v3875_v62 = vld [vmem:[%s6284_s3 + $0x10] sm:$0xff] }
0x1239   : > { %v3836_v10 = vrot.slane %v3835_v33, 1  ;;  %v3857_v26 = vrot.slane %v3856_v27, 1 }
0x123b   : > { %v3837_v48 = vadd.f32 %v3836_v10, %v3835_v33  ;;  %v3858_v17 = vadd.f32 %v3857_v26, %v3856_v27 }
0x123d   : > { %v3865_v44 = vadd.f32 %v4339_v13, %v3837_v48  ;;  %v3866_v46 = vadd.f32 %v4339_v13, %v3858_v17 }
0x123f   : > { %vm3868_vm11 = vcmp.ge.f32.partialorder %v3866_v46, 0.0  ;;  %v3870_v15 = vmul.f32 0.1, %v3866_v46  ;;  %v3869_v21 = vmul.f32 0.1, %v3865_v44  ;;  %vm3867_vm7 = vcmp.ge.f32.partialorder %v3865_v44, 0.0 }
0x1241   : > { %v3872_v0 = vsel %vm3868_vm11, %v3866_v46, %v3870_v15  ;;  %v3871_v60 = vsel %vm3867_vm7, %v3865_v44, %v3869_v21  ;;  %v3876_v44 = vld [vmem:[%s6284_s3 + $0x18] sm:$0xff] }
0x1242   : > { %v3900_v49 = vrot.slane %v3872_v0, %v5151_v25  ;;  %v3881_v47 = vrot.slane %v3871_v60, %v5151_v25 }
0x1244   : > { %3906 = vbcast.lane.b32.xlu1 %v3900_v49, 264  ;;  %3902 = vbcast.lane.b32.xlu0 %v3900_v49, 256 }
0x1248   : > { %3883 = vbcast.lane.b32.xlu1 %v3881_v47, 256  ;;  %3887 = vbcast.lane.b32.xlu0 %v3881_v47, 264 }
0x124c   : > { %3910 = vbcast.lane.b32.xlu1 %v3900_v49, 272  ;;  %3891 = vbcast.lane.b32.xlu0 %v3881_v47, 272 }
0x1250   : > { %3914 = vbcast.lane.b32.xlu1 %v3900_v49, 280  ;;  %3895 = vbcast.lane.b32.xlu0 %v3881_v47, 280 }
0x1265   : > { %v3492_v19 = vpop.xlane.xlu0 %3491 }
0x1266   : > { %v3513_v29 = vmax.f32 %v3492_v19, 1.0  ;;  %vm3509_vm9 = vcmp.gt.f32.partialorder %v3492_v19, 0.0 }
0x1268   : > { %4664 = vrsqrt.f32 %v3513_v29 }
0x1269   : > { %v3495_v51 = vpop.xlane.xlu0 %3494 }
0x126a   : > { %v3514_v22 = vmax.f32 %v3495_v51, 1.0  ;;  %v3489_v20 = vpop.xlane.xlu1 %3488  ;;  %vm3510_vm5 = vcmp.gt.f32.partialorder %v3495_v51, 0.0 }
0x126b   : > { %v3512_v5 = vmax.f32 %v3489_v20, 1.0  ;;  %vm3508_vm10 = vcmp.gt.f32.partialorder %v3489_v20, 0.0 }
0x126c   : > { %4666 = vrsqrt.f32 %v3514_v22 }
0x126d   : > { %4668 = vrsqrt.f32 %v3512_v5 }
0x126e   : > { %v3498_v18 = vpop.xlane.xlu1 %3497 }
0x126f   : > { %v3515_v61 = vmax.f32 %v3498_v18, 1.0  ;;  %vm3511_vm3 = vcmp.gt.f32.partialorder %v3498_v18, 0.0 }
0x1271   : > { %4670 = vrsqrt.f32 %v3515_v61 }
0x1272   : > { %v4665_v53 = vpop.eup %4664 }
0x1273   : > { %v3521_v63 = vsel %vm3509_vm9, %v4665_v53, 0.0 }
0x1274   : > { %v3652_v6 = vmul.f32 %v6057_v38, %v3521_v63 }
0x1276   : > { %v4667_v37 = vpop.eup %4666  ;;  %v3656_v4 = vsub.f32 %v5984_v11, %v3652_v6 }
0x1277   : > { %v4669_v59 = vpop.eup %4668  ;;  %v3522_v30 = vsel %vm3510_vm5, %v4667_v37, 0.0 }
0x1278   : > { %v3653_v14 = vmul.f32 %v6051_v7, %v3522_v30  ;;  %v3520_v32 = vsel %vm3508_vm10, %v4669_v59, 0.0  ;;  %v3660_v12 = vand.u32 2147483647, %v3656_v4 }
0x1279   : > { %v3651_v55 = vmul.f32 %v6053_v36, %v3520_v32 }
0x127a   : > { %v3666_v40 = vsel %vm1066_vm0, %v3660_v12, 0.0  ;;  %v3657_v16 = vsub.f32 %v5966_v45, %v3653_v14  ;;  %v4340_v12 = vld [vmem:[%s6291_s4] ss:$0 sm:$0xff]  ;;  %s4344_s4 = sshll.u32 %s4983_s0, 5 }
0x127b   : > { %v4671_v24 = vpop.eup %4670  ;;  %3667 = vadd.xlane.f32.xlu0 %v3666_v40  ;;  %v3655_v38 = vsub.f32 %v5963_v31, %v3651_v55  ;;  %s6117_s3 = scalar_lea.hbm %s4949_s23, %s4344_s4 }
0x127c   : > { %v3523_v11 = vsel %vm3511_vm3, %v4671_v24, 0.0  ;;  %v3661_v35 = vand.u32 2147483647, %v3657_v16 }
0x127d   : > { %v3654_v50 = vmul.f32 %v6055_v9, %v3523_v11  ;;  %v3659_v7 = vand.u32 2147483647, %v3655_v38 }
0x127e   : > { %v3669_v58 = vsel %vm1066_vm0, %v3661_v35, 0.0 }
0x127f   : > { %3670 = vadd.xlane.f32.xlu0 %v3669_v58  ;;  %v3663_v36 = vsel %vm1066_vm0, %v3659_v7, 0.0  ;;  %v3658_v45 = vsub.f32 %v5981_v23, %v3654_v50 }
0x1280   : > { %3664 = vadd.xlane.f32.xlu1 %v3663_v36 }
0x1281   : > { %v3662_v1 = vand.u32 2147483647, %v3658_v45 }
0x1283   : > { %v3672_v41 = vsel %vm1066_vm0, %v3662_v1, 0.0  ;;  %vm6287_vm0 = vmmov %vm6285_vm13 }
0x1284   : > { %3673 = vadd.xlane.f32.xlu1 %v3672_v41  ;;  %vm6288_vm2 = vmmov %vm6287_vm0 }
0x1285   : > { %vm6289_vm12 = vmmov %vm6287_vm0 }
0x1286   : > { %vm6290_vm6 = vmmov %vm6287_vm0 }
0x1287   : > { %vm6292_vm4 = vmmov %vm6287_vm0 }
0x1288   : > { %vm6293_vm1 = vmmov %vm6287_vm0 }
0x12b6   : > { %v3903_v31 = vpop.permute.xlu0 %3902  ;;  %v3907_v52 = vpop.permute.xlu1 %3906 }
0x12b7   : > { %v3920_v9 = vmul.f32 %v3903_v31, %v3873_v34  ;;  %v3921_v39 = vmul.f32 %v3907_v52, %v3874_v42 }
0x12b9   : > { %v3937_v33 = vsel %vm6285_vm13, %v3920_v9, 0.0  ;;  %v3938_v23 = vsel %vm6286_vm14, %v3921_v39, 0.0 }
0x12ba   : > { %v3888_v54 = vpop.permute.xlu0 %3887  ;;  %v3884_v3 = vpop.permute.xlu1 %3883  ;;  %v3939_v21 = vadd.f32 %v3938_v23, %v3937_v33 }
0x12bb   : > { %v3917_v8 = vmul.f32 %v3888_v54, %v3874_v42  ;;  %v3916_v28 = vmul.f32 %v3884_v3, %v3873_v34 }
0x12bd   : > { %v3925_v26 = vsel %vm6287_vm0, %v3917_v8, 0.0  ;;  %v3924_v13 = vsel %vm6288_vm2, %v3916_v28, 0.0 }
0x12be   : > { %v3892_v27 = vpop.permute.xlu0 %3891  ;;  %v3911_v10 = vpop.permute.xlu1 %3910  ;;  %v3926_v0 = vadd.f32 %v3925_v26, %v3924_v13 }
0x12bf   : > { %v3918_v48 = vmul.f32 %v3892_v27, %v3875_v62  ;;  %v3922_v17 = vmul.f32 %v3911_v10, %v3875_v62 }
0x12c1   : > { %v3927_v46 = vsel %vm6289_vm12, %v3918_v48, 0.0  ;;  %v3940_v15 = vsel %vm6290_vm6, %v3922_v17, 0.0 }
0x12c2   : > { %v3896_v49 = vpop.permute.xlu0 %3895  ;;  %v3915_v60 = vpop.permute.xlu1 %3914  ;;  %v3928_v29 = vadd.f32 %v3927_v46, %v3926_v0  ;;  %v3941_v51 = vadd.f32 %v3940_v15, %v3939_v21 }
0x12c3   : > { %v3919_v47 = vmul.f32 %v3896_v49, %v3876_v44  ;;  %v3923_v19 = vmul.f32 %v3915_v60, %v3876_v44 }
0x12c5   : > { %v3929_v22 = vsel %vm6292_vm4, %v3919_v47, 0.0  ;;  %v3942_v20 = vsel %vm6293_vm1, %v3923_v19, 0.0 }
0x12c6   : > { %v3930_v5 = vadd.f32 %v3929_v22, %v3928_v29  ;;  %v3943_v18 = vadd.f32 %v3942_v20, %v3941_v51 }
0x12c8   : > { %v3931_v61 = vrot.slane %v3930_v5, 4  ;;  %v3944_v53 = vrot.slane %v3943_v18, 4 }
0x12ca   : > { %v3932_v63 = vadd.f32 %v3931_v61, %v3930_v5  ;;  %v3945_v6 = vadd.f32 %v3944_v53, %v3943_v18 }
0x12cc   : > { %v3933_v37 = vrot.slane %v3932_v63, 2  ;;  %v3946_v4 = vrot.slane %v3945_v6, 2 }
0x12ce   : > { %v3934_v59 = vadd.f32 %v3933_v37, %v3932_v63  ;;  %v3947_v30 = vadd.f32 %v3946_v4, %v3945_v6 }
0x12d0   : > { %v3935_v14 = vrot.slane %v3934_v59, 1  ;;  %v3948_v32 = vrot.slane %v3947_v30, 1 }
0x12d2   : > { %v3936_v55 = vadd.f32 %v3935_v14, %v3934_v59  ;;  %v3949_v40 = vadd.f32 %v3948_v32, %v3947_v30 }
0x12d4   : > { %v3957_v16 = vadd.f32 %v4340_v12, %v3949_v40  ;;  %v3956_v24 = vadd.f32 %v4340_v12, %v3936_v55 }
0x12d6   : > { %vm3959_vm15 = vcmp.ge.f32.partialorder %v3957_v16, 0.0  ;;  %v3961_v38 = vmul.f32 0.1, %v3957_v16  ;;  %v3960_v11 = vmul.f32 0.1, %v3956_v24  ;;  %vm3958_vm11 = vcmp.ge.f32.partialorder %v3956_v24, 0.0 }
0x12d8   : > { %v3963_v35 = vsel %vm3959_vm15, %v3957_v16, %v3961_v38  ;;  %v3962_v7 = vsel %vm3958_vm11, %v3956_v24, %v3960_v11 }
0x12d9   : > { %v3981_v50 = vrot.slane %v3963_v35, %v5151_v25  ;;  %v3970_v58 = vrot.slane %v3962_v7, %v5151_v25 }
0x12db   : > { %3987 = vbcast.lane.b32.xlu1 %v3981_v50, 264  ;;  %3983 = vbcast.lane.b32.xlu0 %v3981_v50, 256 }
0x12df   : > { %3972 = vbcast.lane.b32.xlu1 %v3970_v58, 256  ;;  %3976 = vbcast.lane.b32.xlu0 %v3970_v58, 264 }
0x12e0   : > { %4688 = shalt.err (!%p4685_p3)
}
0x12e1   : > { %s4689_s7 = scalar_lea.hbm %s6117_s3, 32  ;;  %s4693_s9 = scalar_lea.hbm %s4949_s23, 96 }
0x12e2   : > { %p4690_p4 = scmp.ne.s32.totalorder %s6117_s3, %s4689_s7  ;;  %p4694_p9 = scmp.lt.u32.totalorder %s6117_s3, %s4949_s23 }
0x12e3   : > { %p4695_p10 = scmp.lt.u32.totalorder %s4693_s9, %s4689_s7  ;;  %p4697_p12 = scmp.lt.u32.totalorder %s4689_s7, %s6117_s3 }
0x12e4   : > { %p4691_p7 = pnand %p4690_p4, %p5000_p5 }
0x12e5   : > { %p4696_p11 = por %p4695_p10, %p4694_p9 }
0x12e6   : > { %p4692_p8 = pneg %p4691_p7 }
0x12e7   : > { %p4698_p0 = por %p4697_p12, %p4696_p11 }
0x12e9   : > { %p4699_p13 = pnand %p4698_p0, %p4692_p8 }
0x12eb   : > { %4702 = shalt.err (!%p4699_p13)
}
0x12ec   : > { %4514 = dma.vmem_to_hbm [thread:$0]  (%p5000_p5), %s4063_s5, 32, %s6117_s3, %s4033_s6   ;;  %v3688_v25 = vadd.f32 %v5798_v43, %v5791_v2  ;;  %vm3700_vm7 = vcmask 0   ;;  %vm3993_vm9 = vcmask 31744   ;;  %vm4025_vm5 = vcmask 25600  }
0x12ed   : > { %s6294_s5 = sld [smem:[#allocation26_spill]]  ;;  %s1007_s8 = scalar_lea.vmem %s4954_s27, %s5012_s10 }
0x12ee   : > { %v3689_v36 = vadd.f32 %v3688_v25, %v5810_v57  ;;  %s6295_s6 = sld [smem:[#allocation27_spill]]  ;;  %s6296_s12 = sld [smem:[#allocation28_spill]] }
0x12ef   : > { %s6297_s10 = sshll.u32 %s6028_s26, 1  ;;  %s4028_s9 = scalar_lea.sflag [#allocation6], %s6028_s26 }
0x12f0   : > { %v3690_v45 = vadd.f32 %v3689_v36, %v5818_v56  ;;  %s974_s11 = scalar_lea.vmem [#allocation5], %s6297_s10 }
0x12f1   : > { %s4049_s3 = sshll.u32 %s974_s11, 4  ;;  %s6154_s3 = int_to_ptr.vmem [resolvable:$true] %s4049_s3 }
0x12f2   : > { %v3691_v1 = vrot.slane %v3690_v45, 4 }
0x12f3   : > { %v3964_v15 = vld [vmem:[%s6294_s5] sm:$0xff]  ;;  %v3965_v21 = vld [vmem:[%s6294_s5 + $0x8] sm:$0xff] }
0x12f4   : > { %v3692_v41 = vadd.f32 %v3691_v1, %v3690_v45  ;;  %v4341_v12 = vld [vmem:[%s6295_s6] ss:$0 sm:$0xff]  ;;  %s6152_s7 = scalar_lea.hbm %s6296_s12, %s4344_s4  ;;  %s4807_s6 = smov [#allocation5]  }
0x12f5   : > { %s4707_s10 = sshll.u32 %s4807_s6, 4  ;;  %s4708_s10 = int_to_ptr.vmem [resolvable:$false] %s4707_s10 }
0x12f6   : > { %v3693_v31 = vrot.slane %v3692_v41, 2  ;;  %s4709_s0 = scalar_lea.vmem %s4708_s10, 64  ;;  %p4710_p4 = scmp.lt.s32.totalorder %s6154_s3, %s4708_s10 }
0x12f8   : > { %v3694_v52 = vadd.f32 %v3693_v31, %v3692_v41 }
0x12fa   : > { %v3695_v42 = vrot.slane %v3694_v52, 1 }
0x12fc   : > { %v3696_v8 = vadd.f32 %v3695_v42, %v3694_v52 }
0x12fe   : > { %v3697_v10 = vmax.f32 %v3696_v8, 1.0 }
0x1300   : > { %4672 = vrcp.f32 %v3697_v10 }
0x1308   : > { %v3668_v34 = vpop.xlane.xlu0 %3667 }
0x1309   : > { %v3676_v54 = vmul.f32 %v3668_v34, %v5798_v43 }
0x130a   : > { %v4673_v46 = vpop.eup %4672 }
0x130c   : > { %v3671_v9 = vpop.xlane.xlu0 %3670 }
0x130d   : > { %v3665_v39 = vpop.xlane.xlu1 %3664  ;;  %v3677_v28 = vmul.f32 %v3671_v9, %v5810_v57 }
0x130e   : > { %v3675_v3 = vmul.f32 %v3665_v39, %v5791_v2 }
0x1310   : > { %v3679_v62 = vadd.f32 %v3676_v54, %v3675_v3 }
0x1311   : > { %v3674_v33 = vpop.xlane.xlu1 %3673 }
0x1312   : > { %v3680_v23 = vadd.f32 %v3679_v62, %v3677_v28  ;;  %v3678_v27 = vmul.f32 %v3674_v33, %v5818_v56 }
0x1314   : > { %v3681_v26 = vadd.f32 %v3680_v23, %v3678_v27 }
0x1316   : > { %v3682_v13 = vrot.slane %v3681_v26, 4 }
0x1318   : > { %v3683_v48 = vadd.f32 %v3682_v13, %v3681_v26 }
0x131a   : > { %v3684_v43 = vrot.slane %v3683_v48, 2 }
0x131c   : > { %v3685_v17 = vadd.f32 %v3684_v43, %v3683_v48 }
0x131e   : > { %v3686_v2 = vrot.slane %v3685_v17, 1 }
0x1320   : > { %v3687_v44 = vadd.f32 %v3686_v2, %v3685_v17 }
0x1322   : > { %v3699_v57 = vmul.f32 %v4673_v46, %v3687_v44 }
0x1324   : > { %3701 = vst.msk [vmem:[%s1007_s8] sm:$0x1] %vm3700_vm7, %v3699_v57  ;;  %s4703_s8 = scalar_lea.vmem %s6154_s3, 32 }
0x1325   : > { %p4704_p1 = scmp.ne.s32.totalorder %s6154_s3, %s4703_s8  ;;  %p4711_p7 = scmp.lt.s32.totalorder %s4709_s0, %s4703_s8 }
0x1327   : > { %p4705_p2 = pnand %p4704_p1, %p5000_p5  ;;  %p4712_p8 = por %p4711_p7, %p4710_p4 }
0x1329   : > { %p4706_p3 = pneg %p4705_p2 }
0x132b   : > { %p4713_p9 = pnand %p4712_p8, %p4706_p3 }
0x134d   : > { %v3984_v0 = vpop.permute.xlu0 %3983  ;;  %v3988_v56 = vpop.permute.xlu1 %3987 }
0x134e   : > { %v3991_v49 = vmul.f32 %v3984_v0, %v3964_v15  ;;  %v3992_v60 = vmul.f32 %v3988_v56, %v3965_v21 }
0x1350   : > { %v4003_v47 = vsel %vm3993_vm9, %v3991_v49, 0.0  ;;  %v4004_v19 = vsel %vm3993_vm9, %v3992_v60, 0.0 }
0x1351   : > { %v4005_v29 = vadd.f32 %v4004_v19, %v4003_v47  ;;  %v3977_v51 = vpop.permute.xlu0 %3976  ;;  %v3973_v22 = vpop.permute.xlu1 %3972 }
0x1352   : > { %v3990_v20 = vmul.f32 %v3977_v51, %v3965_v21  ;;  %v3989_v5 = vmul.f32 %v3973_v22, %v3964_v15 }
0x1353   : > { %v4006_v18 = vrot.slane %v4005_v29, 4 }
0x1354   : > { %v3995_v61 = vsel %vm3993_vm9, %v3990_v20, 0.0  ;;  %v3994_v53 = vsel %vm3993_vm9, %v3989_v5, 0.0 }
0x1355   : > { %v4007_v63 = vadd.f32 %v4006_v18, %v4005_v29  ;;  %v3996_v6 = vadd.f32 %v3995_v61, %v3994_v53 }
0x1357   : > { %v4008_v37 = vrot.slane %v4007_v63, 2  ;;  %v3997_v4 = vrot.slane %v3996_v6, 4 }
0x1359   : > { %v4009_v59 = vadd.f32 %v4008_v37, %v4007_v63  ;;  %v3998_v30 = vadd.f32 %v3997_v4, %v3996_v6 }
0x135b   : > { %v4010_v14 = vrot.slane %v4009_v59, 1  ;;  %v3999_v32 = vrot.slane %v3998_v30, 2 }
0x135d   : > { %v4011_v55 = vadd.f32 %v4010_v14, %v4009_v59  ;;  %v4000_v40 = vadd.f32 %v3999_v32, %v3998_v30 }
0x135f   : > { %v4001_v16 = vrot.slane %v4000_v40, 1  ;;  %v4019_v24 = vadd.f32 %v4341_v12, %v4011_v55 }
0x1361   : > { %v4002_v38 = vadd.f32 %v4001_v16, %v4000_v40  ;;  %v4022_v35 = vrot.slane %v4019_v24, 7 }
0x1363   : > { %v4018_v11 = vadd.f32 %v4341_v12, %v4002_v38 }
0x1365   : > { %v4023_v50 = vsel %vm1793_vm8, %v4022_v35, %v4018_v11 }
0x1366   : > { %4026 = vst.msk [vmem:[%s974_s11] sm:$0x3] %vm4025_vm5, %v4023_v50 }
0x1367   : > { %4716 = shalt.err (!%p4713_p9)
}
0x1368   : > { %s4717_s26 = scalar_lea.hbm %s6152_s7, 32  ;;  %s4721_s4 = scalar_lea.hbm %s6296_s12, 96 }
0x1369   : > { %p4718_p10 = scmp.ne.s32.totalorder %s6152_s7, %s4717_s26  ;;  %p4722_p0 = scmp.lt.u32.totalorder %s6152_s7, %s6296_s12 }
0x136a   : > { %p4723_p13 = scmp.lt.u32.totalorder %s4721_s4, %s4717_s26  ;;  %p4725_p2 = scmp.lt.u32.totalorder %s4717_s26, %s6152_s7 }
0x136b   : > { %p4719_p11 = pnand %p4718_p10, %p5000_p5 }
0x136c   : > { %p4724_p1 = por %p4723_p13, %p4722_p0 }
0x136d   : > { %p4720_p12 = pneg %p4719_p11 }
0x136e   : > { %p4726_p4 = por %p4725_p2, %p4724_p1 }
0x1370   : > { %p4727_p3 = pnand %p4726_p4, %p4720_p12 }
0x1372   : > { %4730 = shalt.err (!%p4727_p3)
}
0x1373   : > { %4513 = dma.vmem_to_hbm [thread:$0]  (%p5000_p5), %s6154_s3, 32, %s6152_s7, %s4028_s9  }
0x1374 PF: > { %p4524_p7 = scmp.ge.s32.totalorder %s4769_s20, 2  ;;  %s4077_s11 = sand.u32 1, %s4757_s14  }
0x1375   : > { %s4078_s8 = scalar_lea.sflag [#allocation6], %s4077_s11 }
0x1376   : > { %p4518_p8 = pnand %p4524_p7, %p5004_p6 }
0x1378   : > { %4748 = dma.done.wait (!%p4518_p8), %s4078_s8, 32  }
0x1379   : > { %4750 = vsyncadd (!%p4518_p8), %s4078_s8, 4294967264  ;;  %s4087_s6 = scalar_lea.sflag [#allocation8], %s4077_s11 }
0x137a   : > { %4752 = dma.done.wait (!%p4518_p8), %s4087_s6, 32  }
0x137b   : > { %4754 = vsyncadd (!%p4518_p8), %s4087_s6, 4294967264  ;;  %p81_p5 = scmp.ge.s32.totalorder %s4987_s15, 5   ;;  %s6298_s14 = smov %s4761_s16 }
0x137c   : > { %s6299_s16 = smov %s4765_s18  ;;  %s6300_s18 = smov %s4998_s28 }
0x137d   : > { %s6301_s20 = smov %s4987_s15  ;;  %83 = sbr.rel (!%p81_p5) target bundleno = 66 (0x42), region = 235 }
0x1384   :  { %4098 = vsyncpa [#allocation6], 1 }
0x1385   :  { %4100 = vsyncpa [#allocation6 + $0x1], 1 }
0x1386   :  { %4101 = vsyncpa [#allocation8], 1 }
0x1387   :  { %4103 = vsyncpa [#allocation8 + $0x1], 1 }

</bundles_post_ra>
